<compile_context>
chip_gen: v7x
topology: tpu7x:2x2x1
jax: 0.10.0
libtpu: 0.0.40
codegen_flags: <defaults>
</compile_context>

<pallas_src>
import math
import numpy as np
import jax
import jax.numpy as jnp
from jax.experimental import pallas as pl
from jax.experimental.pallas import tpu as pltpu

# ----------------------------- model config ---------------------------------
B = 2
C, H, W = 4, 16, 16            # chw
N_PATCHES = 4                  # chw[1] % n_patches == 0, chw[2] % n_patches == 0
N_BLOCKS = 2
D_HIDDEN = 32
N_HEADS = 2
OUT_D = 10
FF_DIM = 4 * D_HIDDEN          # 128

PATCH_H, PATCH_W = H // N_PATCHES, W // N_PATCHES
INPUT_D = C * PATCH_H * PATCH_W            # 64
SEQ = N_PATCHES ** 2 + 1                   # 17  ([class] token + patches)
D_HEAD = D_HIDDEN // N_HEADS               # 16
EPS = 1e-5
LANES = 128                                # lane width of packed parameter blobs

# ------------------- packed-parameter row layout (static) --------------------
# matrix blob (W_ROWS, 128):
#   [0 : INPUT_D)                       w_map                (cols 0:32)
#   per block (base = INPUT_D + blk*W_BLOCK_ROWS):
#     [+0  : +32)                       fused block-diag Wqkv (cols 0:96, Wq pre-scaled)
#     [+32 : +64)                       W1                    (cols 0:128)
#     [+64 : +192)                      W2                    (cols 0:32)
#   [W_HEAD_ROW : +32)                  w_head (zero-padded to 128 cols)
W_BLOCK_ROWS = 2 * D_HIDDEN + FF_DIM
W_HEAD_ROW = INPUT_D + N_BLOCKS * W_BLOCK_ROWS
W_ROWS = W_HEAD_ROW + D_HIDDEN

# vector blob (V_ROWS, 128): one vector per row, zero-padded to 128 lanes.
#   [0:SEQ)      additive term = pos (+ v_class on row 0, + b_map on rows 1:)
#   per block (base = SEQ + blk*7):  ln1_g, ln1_b, bqkv(96, bq pre-scaled),
#                                    ln2_g, ln2_b, b1(128), b2
#   tail:        lnh_g, lnh_b, b_head (padded to 128)
V_BLOCK_ROWS = 7
V_HEAD_ROW = SEQ + N_BLOCKS * V_BLOCK_ROWS
V_ROWS = V_HEAD_ROW + 3


# ----------------------------- Pallas kernel --------------------------------
def _layer_norm(v, g, b):
    # One-pass statistics: var = E[x^2] - mu^2; single dependent cross-lane
    # reduce, rsqrt on the EUP, gamma folded into the rsqrt factor.
    mu = jnp.mean(v, axis=-1, keepdims=True)
    m2 = jnp.mean(v * v, axis=-1, keepdims=True)
    inv = jax.lax.rsqrt(m2 - mu * mu + EPS)
    return (v - mu) * (inv * g) + b


def make_vit_kernel(bc):
    """Kernel processing `bc` images per grid step, tokens packed (bc*SEQ, D)."""
    rows = bc * SEQ

    def vit_kernel(patches_ref, w_ref, v_ref, out_ref):
        f32 = jnp.float32

        # ---- patch embedding for the whole chunk (single MXU push) ----------
        # Row 0 of each image's patch tile is all-zero (the [class]-token slot);
        # v_class, the linear-mapper bias and the positional embeddings are
        # pre-folded into the additive rows of the vector blob.
        patches = jnp.concatenate([patches_ref[b] for b in range(bc)], axis=0)  # (rows, 64)
        w_map = w_ref[0:INPUT_D, 0:D_HIDDEN]                                    # (64, 32)
        add = v_ref[0:SEQ, 0:D_HIDDEN]                                          # (SEQ, 32)
        add_full = jnp.concatenate([add] * bc, axis=0)                          # (rows, 32)
        x = jnp.dot(patches, w_map, preferred_element_type=f32) + add_full      # (rows, 32)

        for blk in range(N_BLOCKS):
            rw = INPUT_D + blk * W_BLOCK_ROWS
            rv = SEQ + blk * V_BLOCK_ROWS

            wqkv = w_ref[rw:rw + D_HIDDEN, 0:3 * D_HIDDEN]                 # (32, 96)
            w1 = w_ref[rw + D_HIDDEN:rw + 2 * D_HIDDEN, 0:FF_DIM]          # (32, 128)
            w2 = w_ref[rw + 2 * D_HIDDEN:rw + 2 * D_HIDDEN + FF_DIM,
                       0:D_HIDDEN]                                         # (128, 32)

            ln1_g = v_ref[rv:rv + 1, 0:D_HIDDEN]
            ln1_b = v_ref[rv + 1:rv + 2, 0:D_HIDDEN]
            bqkv = v_ref[rv + 2:rv + 3, 0:3 * D_HIDDEN]
            ln2_g = v_ref[rv + 3:rv + 4, 0:D_HIDDEN]
            ln2_b = v_ref[rv + 4:rv + 5, 0:D_HIDDEN]
            b1 = v_ref[rv + 5:rv + 6, 0:FF_DIM]
            b2 = v_ref[rv + 6:rv + 7, 0:D_HIDDEN]

            # ---- LayerNorm -> fused QKV matmul -> per-head attention --------
            xn = _layer_norm(x, ln1_g, ln1_b)                              # (rows, 32)
            qkv = jnp.dot(xn, wqkv, preferred_element_type=f32) + bqkv     # (rows, 96)

            # Attention: small static (image, head) loop of 2-D einsums; the
            # four (17x17) softmaxes are independent so the scheduler overlaps
            # MXU / EUP / XLU work across them.
            attn_rows = []
            for b in range(bc):
                r0 = b * SEQ
                heads = []
                for h in range(N_HEADS):
                    qh = qkv[r0:r0 + SEQ, h * D_HEAD:(h + 1) * D_HEAD]     # scale folded in
                    kh = qkv[r0:r0 + SEQ,
                             D_HIDDEN + h * D_HEAD:D_HIDDEN + (h + 1) * D_HEAD]
                    vh = qkv[r0:r0 + SEQ,
                             2 * D_HIDDEN + h * D_HEAD:2 * D_HIDDEN + (h + 1) * D_HEAD]
                    s = jnp.einsum('qd,kd->qk', qh, kh,
                                   preferred_element_type=jnp.float32)     # (SEQ, SEQ)
                    s = s - jnp.max(s, axis=-1, keepdims=True)
                    e = jnp.exp(s)
                    a = e * pl.reciprocal(jnp.sum(e, axis=-1, keepdims=True),
                                          approx=True)
                    heads.append(jnp.dot(a, vh, preferred_element_type=f32))  # (SEQ, 16)
                attn_rows.append(jnp.concatenate(heads, axis=-1))          # (SEQ, 32)
            x = x + jnp.concatenate(attn_rows, axis=0)                     # (rows, 32)

            # ---- LayerNorm -> feed-forward (Linear/ReLU/Linear) -> residual -
            xn2 = _layer_norm(x, ln2_g, ln2_b)
            h1 = jnp.maximum(jnp.dot(xn2, w1, preferred_element_type=f32) + b1, 0.0)
            x = x + jnp.dot(h1, w2, preferred_element_type=f32) + b2

        # ---- classification head on the [class] tokens (lane-dense, padded) -
        rvh = V_HEAD_ROW
        cls = jnp.concatenate([x[b * SEQ:b * SEQ + 1, :] for b in range(bc)],
                              axis=0)                                      # (bc, 32)
        cls = _layer_norm(cls,
                          v_ref[rvh:rvh + 1, 0:D_HIDDEN],
                          v_ref[rvh + 1:rvh + 2, 0:D_HIDDEN])
        logits = jnp.dot(cls, w_ref[W_HEAD_ROW:W_HEAD_ROW + D_HIDDEN, :],
                         preferred_element_type=f32) \
            + v_ref[rvh + 2:rvh + 3, :]                                    # (bc, 128)
        out_ref[:, 0, :] = logits

    return vit_kernel


# ------------------------------- wrapper -------------------------------------
def patchify(images):
    # Matches torch patchify: each patch flattened in (C, ph, pw) order.
    n = images.shape[0]
    p = images.reshape(n, C, N_PATCHES, PATCH_H, N_PATCHES, PATCH_W)
    p = p.transpose(0, 2, 4, 1, 3, 5).reshape(n, N_PATCHES ** 2, INPUT_D)
    return p


def pack_params(p):
    """Pack every parameter into two lane-dense (rows, 128) f32 blobs."""
    scale = 1.0 / math.sqrt(D_HEAD)

    # ---------------- matrix blob ----------------
    wblob = jnp.zeros((W_ROWS, LANES), jnp.float32)
    wblob = wblob.at[0:INPUT_D, 0:D_HIDDEN].set(p['w_map'])
    for blk in range(N_BLOCKS):
        rw = INPUT_D + blk * W_BLOCK_ROWS
        # block-diagonal fused QKV projection; attention scale folded into Wq
        wq_full = jnp.zeros((D_HIDDEN, D_HIDDEN), jnp.float32)
        wk_full = jnp.zeros((D_HIDDEN, D_HIDDEN), jnp.float32)
        wv_full = jnp.zeros((D_HIDDEN, D_HIDDEN), jnp.float32)
        for h in range(N_HEADS):
            sl = slice(h * D_HEAD, (h + 1) * D_HEAD)
            wq_full = wq_full.at[sl, sl].set(p['wq'][blk, h] * scale)
            wk_full = wk_full.at[sl, sl].set(p['wk'][blk, h])
            wv_full = wv_full.at[sl, sl].set(p['wv'][blk, h])
        wqkv = jnp.concatenate([wq_full, wk_full, wv_full], axis=1)    # (32, 96)
        wblob = wblob.at[rw:rw + D_HIDDEN, 0:3 * D_HIDDEN].set(wqkv)
        wblob = wblob.at[rw + D_HIDDEN:rw + 2 * D_HIDDEN, 0:FF_DIM].set(p['w1'][blk])
        wblob = wblob.at[rw + 2 * D_HIDDEN:rw + 2 * D_HIDDEN + FF_DIM,
                         0:D_HIDDEN].set(p['w2'][blk])
    wblob = wblob.at[W_HEAD_ROW:W_HEAD_ROW + D_HIDDEN, 0:OUT_D].set(p['w_head'])

    # ---------------- vector blob ----------------
    # fold v_class + linear bias + positional embeddings into one additive term
    add = p['pos'].at[0].add(p['v_class'][0])
    add = add.at[1:].add(p['b_map'])

    vblob = jnp.zeros((V_ROWS, LANES), jnp.float32)
    vblob = vblob.at[0:SEQ, 0:D_HIDDEN].set(add)
    for blk in range(N_BLOCKS):
        rv = SEQ + blk * V_BLOCK_ROWS
        bqkv = jnp.concatenate([(p['bq'][blk] * scale).reshape(-1),
                                p['bk'][blk].reshape(-1),
                                p['bv'][blk].reshape(-1)])             # (96,)
        vblob = vblob.at[rv, 0:D_HIDDEN].set(p['ln1_g'][blk])
        vblob = vblob.at[rv + 1, 0:D_HIDDEN].set(p['ln1_b'][blk])
        vblob = vblob.at[rv + 2, 0:3 * D_HIDDEN].set(bqkv)
        vblob = vblob.at[rv + 3, 0:D_HIDDEN].set(p['ln2_g'][blk])
        vblob = vblob.at[rv + 4, 0:D_HIDDEN].set(p['ln2_b'][blk])
        vblob = vblob.at[rv + 5, 0:FF_DIM].set(p['b1'][blk])
        vblob = vblob.at[rv + 6, 0:D_HIDDEN].set(p['b2'][blk])
    vblob = vblob.at[V_HEAD_ROW, 0:D_HIDDEN].set(p['lnh_g'][0])
    vblob = vblob.at[V_HEAD_ROW + 1, 0:D_HIDDEN].set(p['lnh_b'][0])
    vblob = vblob.at[V_HEAD_ROW + 2, 0:OUT_D].set(p['b_head'][0])
    return wblob, vblob


def vit_forward(images, p, images_per_step=None):
    n = images.shape[0]
    # Default: whole batch in a single grid step (best on v5e/v6e, 1 TC/chip).
    # On v7x pass images_per_step = n // 2 to put one batch chunk per TensorCore
    # (grid axis is marked "parallel").
    if images_per_step is None:
        images_per_step = n
    assert n % images_per_step == 0
    bc = images_per_step

    patches = patchify(images)
    # prepend an all-zero "patch" row for the [class]-token slot
    patches_ext = jnp.concatenate(
        [jnp.zeros((n, 1, INPUT_D), jnp.float32), patches], axis=1)    # (n, SEQ, 64)
    wblob, vblob = pack_params(p)

    out = pl.pallas_call(
        make_vit_kernel(bc),
        out_shape=jax.ShapeDtypeStruct((n, 1, LANES), jnp.float32),
        grid=(n // bc,),
        in_specs=[
            pl.BlockSpec((bc, SEQ, INPUT_D), lambda i: (i, 0, 0)),
            pl.BlockSpec((W_ROWS, LANES), lambda i: (0, 0)),
            pl.BlockSpec((V_ROWS, LANES), lambda i: (0, 0)),
        ],
        out_specs=pl.BlockSpec((bc, 1, LANES), lambda i: (i, 0, 0)),
        compiler_params=pltpu.CompilerParams(
            dimension_semantics=("parallel",)),     # 2x on v7x when bc = n // 2
    )(patches_ext, wblob, vblob)
    return out[:, 0, :OUT_D]


# -------------------------- deterministic parameters -------------------------
def positional_embeddings(seq_length, d):
    result = np.ones((seq_length, d), dtype=np.float32)
    for i in range(seq_length):
        for j in range(d):
            if j % 2 == 0:
                result[i, j] = np.sin(i / 10000 ** (j / d))
            else:
                result[i, j] = np.cos(i / 10000 ** (j / d))
    return result


def init_params(key):
    ks = jax.random.split(key, 16)

    def nrm(k, shape, scale=0.05):
        return scale * jax.random.normal(k, shape, dtype=jnp.float32)

    return dict(
        w_map=nrm(ks[0], (INPUT_D, D_HIDDEN)),
        b_map=nrm(ks[1], (D_HIDDEN,), 0.01),
        v_class=nrm(ks[2], (1, D_HIDDEN), 1.0),
        ln1_g=jnp.ones((N_BLOCKS, D_HIDDEN), jnp.float32),
        ln1_b=jnp.zeros((N_BLOCKS, D_HIDDEN), jnp.float32),
        wq=nrm(ks[3], (N_BLOCKS, N_HEADS, D_HEAD, D_HEAD)),
        bq=nrm(ks[4], (N_BLOCKS, N_HEADS, D_HEAD), 0.01),
        wk=nrm(ks[5], (N_BLOCKS, N_HEADS, D_HEAD, D_HEAD)),
        bk=nrm(ks[6], (N_BLOCKS, N_HEADS, D_HEAD), 0.01),
        wv=nrm(ks[7], (N_BLOCKS, N_HEADS, D_HEAD, D_HEAD)),
        bv=nrm(ks[8], (N_BLOCKS, N_HEADS, D_HEAD), 0.01),
        ln2_g=jnp.ones((N_BLOCKS, D_HIDDEN), jnp.float32),
        ln2_b=jnp.zeros((N_BLOCKS, D_HIDDEN), jnp.float32),
        w1=nrm(ks[9], (N_BLOCKS, D_HIDDEN, FF_DIM)),
        b1=nrm(ks[10], (N_BLOCKS, FF_DIM), 0.01),
        w2=nrm(ks[11], (N_BLOCKS, FF_DIM, D_HIDDEN)),
        b2=nrm(ks[12], (N_BLOCKS, D_HIDDEN), 0.01),
        lnh_g=jnp.ones((1, D_HIDDEN), jnp.float32),
        lnh_b=jnp.zeros((1, D_HIDDEN), jnp.float32),
        w_head=nrm(ks[13], (D_HIDDEN, OUT_D)),
        b_head=nrm(ks[14], (1, OUT_D), 0.01),
        pos=jnp.asarray(positional_embeddings(SEQ, D_HIDDEN)),
    )


# ----------------------------- pure-JAX reference ----------------------------
def vit_reference(images, p):
    n = images.shape[0]
    patches = patchify(images)
    tokens = patches @ p['w_map'] + p['b_map']
    cls = jnp.broadcast_to(p['v_class'][None], (n, 1, D_HIDDEN))
    x = jnp.concatenate([cls, tokens], axis=1) + p['pos'][None]

    def ln(v, g, b):
        mu = v.mean(-1, keepdims=True)
        var = ((v - mu) ** 2).mean(-1, keepdims=True)
        return (v - mu) / jnp.sqrt(var + EPS) * g + b

    for blk in range(N_BLOCKS):
        xn = ln(x, p['ln1_g'][blk], p['ln1_b'][blk])
        heads = []
        for h in range(N_HEADS):
            xh = xn[..., h * D_HEAD:(h + 1) * D_HEAD]
            q = xh @ p['wq'][blk, h] + p['bq'][blk, h]
            k = xh @ p['wk'][blk, h] + p['bk'][blk, h]
            v = xh @ p['wv'][blk, h] + p['bv'][blk, h]
            s = jnp.einsum('bqd,bkd->bqk', q, k) / math.sqrt(D_HEAD)
            a = jax.nn.softmax(s, axis=-1)
            heads.append(jnp.einsum('bqk,bkd->bqd', a, v))
        x = x + jnp.concatenate(heads, axis=-1)
        xn2 = ln(x, p['ln2_g'][blk], p['ln2_b'][blk])
        ffo = jnp.maximum(xn2 @ p['w1'][blk] + p['b1'][blk], 0.0)
        x = x + (ffo @ p['w2'][blk] + p['b2'][blk])

    c = ln(x[:, 0, :], p['lnh_g'][0], p['lnh_b'][0])
    return c @ p['w_head'] + p['b_head'][0]


# ----------------------------------- main ------------------------------------
if __name__ == "__main__":
    key = jax.random.PRNGKey(0)
    pkey, xkey = jax.random.split(key)
    params = init_params(pkey)
    images = jax.random.normal(xkey, (B, C, H, W), dtype=jnp.float32)

    out = vit_forward(images, params)
    out = jax.block_until_ready(out)

    ref = vit_reference(images, params)
    np.testing.assert_allclose(np.asarray(out), np.asarray(ref),
                               rtol=2e-2, atol=2e-2)
    print("KERNEL_OK")
</pallas_src>

<mosaic_0001>
module attributes {stable_mosaic.version = 11 : i64} {
  func.func @vit_kernel(%arg0: i32, %arg1: memref<2x17x64xf32, #tpu.memory_space<vmem>>, %arg2: memref<480x128xf32, #tpu.memory_space<vmem>>, %arg3: memref<34x128xf32, #tpu.memory_space<vmem>>, %arg4: memref<2x1x128xf32, #tpu.memory_space<vmem>>) attributes {dimension_semantics = [#tpu.dimension_semantics<parallel>], iteration_bounds = array<i64: 1>, scalar_prefetch = 0 : i64, scratch_operands = 0 : i64, tpu.core_type = #tpu.core_type<tc>, window_params = [{transform_indices = @transform_0, window_bounds = array<i64: 2, 17, 64>}, {pipeline_mode = #tpu.pipeline_mode<synchronous>, transform_indices = @transform_1, window_bounds = array<i64: 480, 128>}, {pipeline_mode = #tpu.pipeline_mode<synchronous>, transform_indices = @transform_2, window_bounds = array<i64: 34, 128>}, {transform_indices = @transform_3, window_bounds = array<i64: 2, 1, 128>}]} {
    %c0 = arith.constant 0 : index
    %c0_0 = arith.constant 0 : index
    %c0_1 = arith.constant 0 : index
    %0 = vector.load %arg1[%c0, %c0_0, %c0_1] : memref<2x17x64xf32, #tpu.memory_space<vmem>>, vector<1x17x64xf32>
    %1 = vector.shape_cast %0 : vector<1x17x64xf32> to vector<17x64xf32>
    %c1 = arith.constant 1 : index
    %c0_2 = arith.constant 0 : index
    %c0_3 = arith.constant 0 : index
    %2 = vector.load %arg1[%c1, %c0_2, %c0_3] : memref<2x17x64xf32, #tpu.memory_space<vmem>>, vector<1x17x64xf32>
    %3 = vector.shape_cast %2 : vector<1x17x64xf32> to vector<17x64xf32>
    %4 = tpu.concatenate %1, %3 in 0 : vector<17x64xf32>, vector<17x64xf32> -> vector<34x64xf32>
    %c0_4 = arith.constant 0 : index
    %c0_5 = arith.constant 0 : index
    %5 = vector.load %arg2[%c0_4, %c0_5] : memref<480x128xf32, #tpu.memory_space<vmem>>, vector<64x32xf32>
    %c0_6 = arith.constant 0 : index
    %c0_7 = arith.constant 0 : index
    %6 = vector.load %arg3[%c0_6, %c0_7] : memref<34x128xf32, #tpu.memory_space<vmem>>, vector<17x32xf32>
    %7 = tpu.concatenate %6, %6 in 0 : vector<17x32xf32>, vector<17x32xf32> -> vector<34x32xf32>
    %cst = arith.constant dense<0.000000e+00> : vector<34x32xf32>
    %8 = tpu.matmul %4, %5, %cst {dimension_numbers = #tpu.dot_dimension_numbers<[1], [0], [0], [1], [0, 0, 1, 1], [], []>} : vector<34x64xf32>, vector<64x32xf32>, vector<34x32xf32> -> vector<34x32xf32>
    %9 = arith.addf %8, %7 : vector<34x32xf32>
    %c64 = arith.constant 64 : index
    %c0_8 = arith.constant 0 : index
    %10 = vector.load %arg2[%c64, %c0_8] : memref<480x128xf32, #tpu.memory_space<vmem>>, vector<32x96xf32>
    %c96 = arith.constant 96 : index
    %c0_9 = arith.constant 0 : index
    %11 = vector.load %arg2[%c96, %c0_9] : memref<480x128xf32, #tpu.memory_space<vmem>>, vector<32x128xf32>
    %c128 = arith.constant 128 : index
    %c0_10 = arith.constant 0 : index
    %12 = vector.load %arg2[%c128, %c0_10] : memref<480x128xf32, #tpu.memory_space<vmem>>, vector<128x32xf32>
    %c17 = arith.constant 17 : index
    %c0_11 = arith.constant 0 : index
    %13 = vector.load %arg3[%c17, %c0_11] : memref<34x128xf32, #tpu.memory_space<vmem>>, vector<1x32xf32>
    %c18 = arith.constant 18 : index
    %c0_12 = arith.constant 0 : index
    %14 = vector.load %arg3[%c18, %c0_12] : memref<34x128xf32, #tpu.memory_space<vmem>>, vector<1x32xf32>
    %c19 = arith.constant 19 : index
    %c0_13 = arith.constant 0 : index
    %15 = vector.load %arg3[%c19, %c0_13] : memref<34x128xf32, #tpu.memory_space<vmem>>, vector<1x96xf32>
    %c20 = arith.constant 20 : index
    %c0_14 = arith.constant 0 : index
    %16 = vector.load %arg3[%c20, %c0_14] : memref<34x128xf32, #tpu.memory_space<vmem>>, vector<1x32xf32>
    %c21 = arith.constant 21 : index
    %c0_15 = arith.constant 0 : index
    %17 = vector.load %arg3[%c21, %c0_15] : memref<34x128xf32, #tpu.memory_space<vmem>>, vector<1x32xf32>
    %c22 = arith.constant 22 : index
    %c0_16 = arith.constant 0 : index
    %18 = vector.load %arg3[%c22, %c0_16] : memref<34x128xf32, #tpu.memory_space<vmem>>, vector<1x128xf32>
    %c23 = arith.constant 23 : index
    %c0_17 = arith.constant 0 : index
    %19 = vector.load %arg3[%c23, %c0_17] : memref<34x128xf32, #tpu.memory_space<vmem>>, vector<1x32xf32>
    %cst_18 = arith.constant dense<0.000000e+00> : vector<34xf32>
    %20 = vector.multi_reduction <add>, %9, %cst_18 [1] : vector<34x32xf32> to vector<34xf32>
    %21 = vector.shape_cast %20 : vector<34xf32> to vector<34x1xf32>
    %cst_19 = arith.constant 3.200000e+01 : f32
    %22 = vector.broadcast %cst_19 : f32 to vector<34x1xf32>
    %23 = arith.divf %21, %22 : vector<34x1xf32>
    %24 = arith.mulf %9, %9 : vector<34x32xf32>
    %cst_20 = arith.constant dense<0.000000e+00> : vector<34xf32>
    %25 = vector.multi_reduction <add>, %24, %cst_20 [1] : vector<34x32xf32> to vector<34xf32>
    %26 = vector.shape_cast %25 : vector<34xf32> to vector<34x1xf32>
    %cst_21 = arith.constant 3.200000e+01 : f32
    %27 = vector.broadcast %cst_21 : f32 to vector<34x1xf32>
    %28 = arith.divf %26, %27 : vector<34x1xf32>
    %29 = arith.mulf %23, %23 : vector<34x1xf32>
    %30 = arith.subf %28, %29 : vector<34x1xf32>
    %cst_22 = arith.constant 9.99999974E-6 : f32
    %31 = vector.broadcast %cst_22 : f32 to vector<34x1xf32>
    %32 = arith.addf %30, %31 : vector<34x1xf32>
    %33 = math.rsqrt %32 : vector<34x1xf32>
    %34 = vector.broadcast %23 : vector<34x1xf32> to vector<34x32xf32>
    %35 = arith.subf %9, %34 : vector<34x32xf32>
    %36 = vector.broadcast %33 : vector<34x1xf32> to vector<34x32xf32>
    %37 = vector.broadcast %13 : vector<1x32xf32> to vector<34x32xf32>
    %38 = arith.mulf %36, %37 : vector<34x32xf32>
    %39 = arith.mulf %35, %38 : vector<34x32xf32>
    %40 = vector.broadcast %14 : vector<1x32xf32> to vector<34x32xf32>
    %41 = arith.addf %39, %40 : vector<34x32xf32>
    %cst_23 = arith.constant dense<0.000000e+00> : vector<34x96xf32>
    %42 = tpu.matmul %41, %10, %cst_23 {dimension_numbers = #tpu.dot_dimension_numbers<[1], [0], [0], [1], [0, 0, 1, 1], [], []>} : vector<34x32xf32>, vector<32x96xf32>, vector<34x96xf32> -> vector<34x96xf32>
    %43 = vector.broadcast %15 : vector<1x96xf32> to vector<34x96xf32>
    %44 = arith.addf %42, %43 : vector<34x96xf32>
    %45 = vector.extract_strided_slice %44 {offsets = [0, 0], sizes = [17, 16], strides = [1, 1]} : vector<34x96xf32> to vector<17x16xf32>
    %46 = vector.extract_strided_slice %44 {offsets = [0, 32], sizes = [17, 16], strides = [1, 1]} : vector<34x96xf32> to vector<17x16xf32>
    %47 = vector.extract_strided_slice %44 {offsets = [0, 64], sizes = [17, 16], strides = [1, 1]} : vector<34x96xf32> to vector<17x16xf32>
    "tpu.trace_start"() <{level = 10 : i32, message = "qd,kd->qk"}> : () -> ()
    %cst_24 = arith.constant dense<0.000000e+00> : vector<17x17xf32>
    %48 = tpu.matmul %45, %46, %cst_24 {dimension_numbers = #tpu.dot_dimension_numbers<[1], [1], [0], [0], [0, 0, 1, 0], [], []>} : vector<17x16xf32>, vector<17x16xf32>, vector<17x17xf32> -> vector<17x17xf32>
    "tpu.trace_stop"() : () -> ()
    %cst_25 = arith.constant dense<0xFF800000> : vector<17xf32>
    %49 = vector.multi_reduction <maximumf>, %48, %cst_25 [1] : vector<17x17xf32> to vector<17xf32>
    %50 = vector.shape_cast %49 : vector<17xf32> to vector<17x1xf32>
    %51 = vector.broadcast %50 : vector<17x1xf32> to vector<17x17xf32>
    %52 = arith.subf %48, %51 : vector<17x17xf32>
    %53 = math.exp %52 : vector<17x17xf32>
    %cst_26 = arith.constant dense<0.000000e+00> : vector<17xf32>
    %54 = vector.multi_reduction <add>, %53, %cst_26 [1] : vector<17x17xf32> to vector<17xf32>
    %55 = vector.shape_cast %54 : vector<17xf32> to vector<17x1xf32>
    %56 = tpu.reciprocal %55 {approx = true} : vector<17x1xf32> -> vector<17x1xf32>
    %57 = vector.broadcast %56 : vector<17x1xf32> to vector<17x17xf32>
    %58 = arith.mulf %53, %57 : vector<17x17xf32>
    %cst_27 = arith.constant dense<0.000000e+00> : vector<17x16xf32>
    %59 = tpu.matmul %58, %47, %cst_27 {dimension_numbers = #tpu.dot_dimension_numbers<[1], [0], [0], [1], [0, 0, 1, 1], [], []>} : vector<17x17xf32>, vector<17x16xf32>, vector<17x16xf32> -> vector<17x16xf32>
    %60 = vector.extract_strided_slice %44 {offsets = [0, 16], sizes = [17, 16], strides = [1, 1]} : vector<34x96xf32> to vector<17x16xf32>
    %61 = vector.extract_strided_slice %44 {offsets = [0, 48], sizes = [17, 16], strides = [1, 1]} : vector<34x96xf32> to vector<17x16xf32>
    %62 = vector.extract_strided_slice %44 {offsets = [0, 80], sizes = [17, 16], strides = [1, 1]} : vector<34x96xf32> to vector<17x16xf32>
    "tpu.trace_start"() <{level = 10 : i32, message = "qd,kd->qk"}> : () -> ()
    %cst_28 = arith.constant dense<0.000000e+00> : vector<17x17xf32>
    %63 = tpu.matmul %60, %61, %cst_28 {dimension_numbers = #tpu.dot_dimension_numbers<[1], [1], [0], [0], [0, 0, 1, 0], [], []>} : vector<17x16xf32>, vector<17x16xf32>, vector<17x17xf32> -> vector<17x17xf32>
    "tpu.trace_stop"() : () -> ()
    %cst_29 = arith.constant dense<0xFF800000> : vector<17xf32>
    %64 = vector.multi_reduction <maximumf>, %63, %cst_29 [1] : vector<17x17xf32> to vector<17xf32>
    %65 = vector.shape_cast %64 : vector<17xf32> to vector<17x1xf32>
    %66 = vector.broadcast %65 : vector<17x1xf32> to vector<17x17xf32>
    %67 = arith.subf %63, %66 : vector<17x17xf32>
    %68 = math.exp %67 : vector<17x17xf32>
    %cst_30 = arith.constant dense<0.000000e+00> : vector<17xf32>
    %69 = vector.multi_reduction <add>, %68, %cst_30 [1] : vector<17x17xf32> to vector<17xf32>
    %70 = vector.shape_cast %69 : vector<17xf32> to vector<17x1xf32>
    %71 = tpu.reciprocal %70 {approx = true} : vector<17x1xf32> -> vector<17x1xf32>
    %72 = vector.broadcast %71 : vector<17x1xf32> to vector<17x17xf32>
    %73 = arith.mulf %68, %72 : vector<17x17xf32>
    %cst_31 = arith.constant dense<0.000000e+00> : vector<17x16xf32>
    %74 = tpu.matmul %73, %62, %cst_31 {dimension_numbers = #tpu.dot_dimension_numbers<[1], [0], [0], [1], [0, 0, 1, 1], [], []>} : vector<17x17xf32>, vector<17x16xf32>, vector<17x16xf32> -> vector<17x16xf32>
    %75 = tpu.concatenate %59, %74 in 1 : vector<17x16xf32>, vector<17x16xf32> -> vector<17x32xf32>
    %76 = vector.extract_strided_slice %44 {offsets = [17, 0], sizes = [17, 16], strides = [1, 1]} : vector<34x96xf32> to vector<17x16xf32>
    %77 = vector.extract_strided_slice %44 {offsets = [17, 32], sizes = [17, 16], strides = [1, 1]} : vector<34x96xf32> to vector<17x16xf32>
    %78 = vector.extract_strided_slice %44 {offsets = [17, 64], sizes = [17, 16], strides = [1, 1]} : vector<34x96xf32> to vector<17x16xf32>
    "tpu.trace_start"() <{level = 10 : i32, message = "qd,kd->qk"}> : () -> ()
    %cst_32 = arith.constant dense<0.000000e+00> : vector<17x17xf32>
    %79 = tpu.matmul %76, %77, %cst_32 {dimension_numbers = #tpu.dot_dimension_numbers<[1], [1], [0], [0], [0, 0, 1, 0], [], []>} : vector<17x16xf32>, vector<17x16xf32>, vector<17x17xf32> -> vector<17x17xf32>
    "tpu.trace_stop"() : () -> ()
    %cst_33 = arith.constant dense<0xFF800000> : vector<17xf32>
    %80 = vector.multi_reduction <maximumf>, %79, %cst_33 [1] : vector<17x17xf32> to vector<17xf32>
    %81 = vector.shape_cast %80 : vector<17xf32> to vector<17x1xf32>
    %82 = vector.broadcast %81 : vector<17x1xf32> to vector<17x17xf32>
    %83 = arith.subf %79, %82 : vector<17x17xf32>
    %84 = math.exp %83 : vector<17x17xf32>
    %cst_34 = arith.constant dense<0.000000e+00> : vector<17xf32>
    %85 = vector.multi_reduction <add>, %84, %cst_34 [1] : vector<17x17xf32> to vector<17xf32>
    %86 = vector.shape_cast %85 : vector<17xf32> to vector<17x1xf32>
    %87 = tpu.reciprocal %86 {approx = true} : vector<17x1xf32> -> vector<17x1xf32>
    %88 = vector.broadcast %87 : vector<17x1xf32> to vector<17x17xf32>
    %89 = arith.mulf %84, %88 : vector<17x17xf32>
    %cst_35 = arith.constant dense<0.000000e+00> : vector<17x16xf32>
    %90 = tpu.matmul %89, %78, %cst_35 {dimension_numbers = #tpu.dot_dimension_numbers<[1], [0], [0], [1], [0, 0, 1, 1], [], []>} : vector<17x17xf32>, vector<17x16xf32>, vector<17x16xf32> -> vector<17x16xf32>
    %91 = vector.extract_strided_slice %44 {offsets = [17, 16], sizes = [17, 16], strides = [1, 1]} : vector<34x96xf32> to vector<17x16xf32>
    %92 = vector.extract_strided_slice %44 {offsets = [17, 48], sizes = [17, 16], strides = [1, 1]} : vector<34x96xf32> to vector<17x16xf32>
    %93 = vector.extract_strided_slice %44 {offsets = [17, 80], sizes = [17, 16], strides = [1, 1]} : vector<34x96xf32> to vector<17x16xf32>
    "tpu.trace_start"() <{level = 10 : i32, message = "qd,kd->qk"}> : () -> ()
    %cst_36 = arith.constant dense<0.000000e+00> : vector<17x17xf32>
    %94 = tpu.matmul %91, %92, %cst_36 {dimension_numbers = #tpu.dot_dimension_numbers<[1], [1], [0], [0], [0, 0, 1, 0], [], []>} : vector<17x16xf32>, vector<17x16xf32>, vector<17x17xf32> -> vector<17x17xf32>
    "tpu.trace_stop"() : () -> ()
    %cst_37 = arith.constant dense<0xFF800000> : vector<17xf32>
    %95 = vector.multi_reduction <maximumf>, %94, %cst_37 [1] : vector<17x17xf32> to vector<17xf32>
    %96 = vector.shape_cast %95 : vector<17xf32> to vector<17x1xf32>
    %97 = vector.broadcast %96 : vector<17x1xf32> to vector<17x17xf32>
    %98 = arith.subf %94, %97 : vector<17x17xf32>
    %99 = math.exp %98 : vector<17x17xf32>
    %cst_38 = arith.constant dense<0.000000e+00> : vector<17xf32>
    %100 = vector.multi_reduction <add>, %99, %cst_38 [1] : vector<17x17xf32> to vector<17xf32>
    %101 = vector.shape_cast %100 : vector<17xf32> to vector<17x1xf32>
    %102 = tpu.reciprocal %101 {approx = true} : vector<17x1xf32> -> vector<17x1xf32>
    %103 = vector.broadcast %102 : vector<17x1xf32> to vector<17x17xf32>
    %104 = arith.mulf %99, %103 : vector<17x17xf32>
    %cst_39 = arith.constant dense<0.000000e+00> : vector<17x16xf32>
    %105 = tpu.matmul %104, %93, %cst_39 {dimension_numbers = #tpu.dot_dimension_numbers<[1], [0], [0], [1], [0, 0, 1, 1], [], []>} : vector<17x17xf32>, vector<17x16xf32>, vector<17x16xf32> -> vector<17x16xf32>
    %106 = tpu.concatenate %90, %105 in 1 : vector<17x16xf32>, vector<17x16xf32> -> vector<17x32xf32>
    %107 = tpu.concatenate %75, %106 in 0 : vector<17x32xf32>, vector<17x32xf32> -> vector<34x32xf32>
    %108 = arith.addf %9, %107 : vector<34x32xf32>
    %cst_40 = arith.constant dense<0.000000e+00> : vector<34xf32>
    %109 = vector.multi_reduction <add>, %108, %cst_40 [1] : vector<34x32xf32> to vector<34xf32>
    %110 = vector.shape_cast %109 : vector<34xf32> to vector<34x1xf32>
    %cst_41 = arith.constant 3.200000e+01 : f32
    %111 = vector.broadcast %cst_41 : f32 to vector<34x1xf32>
    %112 = arith.divf %110, %111 : vector<34x1xf32>
    %113 = arith.mulf %108, %108 : vector<34x32xf32>
    %cst_42 = arith.constant dense<0.000000e+00> : vector<34xf32>
    %114 = vector.multi_reduction <add>, %113, %cst_42 [1] : vector<34x32xf32> to vector<34xf32>
    %115 = vector.shape_cast %114 : vector<34xf32> to vector<34x1xf32>
    %cst_43 = arith.constant 3.200000e+01 : f32
    %116 = vector.broadcast %cst_43 : f32 to vector<34x1xf32>
    %117 = arith.divf %115, %116 : vector<34x1xf32>
    %118 = arith.mulf %112, %112 : vector<34x1xf32>
    %119 = arith.subf %117, %118 : vector<34x1xf32>
    %cst_44 = arith.constant 9.99999974E-6 : f32
    %120 = vector.broadcast %cst_44 : f32 to vector<34x1xf32>
    %121 = arith.addf %119, %120 : vector<34x1xf32>
    %122 = math.rsqrt %121 : vector<34x1xf32>
    %123 = vector.broadcast %112 : vector<34x1xf32> to vector<34x32xf32>
    %124 = arith.subf %108, %123 : vector<34x32xf32>
    %125 = vector.broadcast %122 : vector<34x1xf32> to vector<34x32xf32>
    %126 = vector.broadcast %16 : vector<1x32xf32> to vector<34x32xf32>
    %127 = arith.mulf %125, %126 : vector<34x32xf32>
    %128 = arith.mulf %124, %127 : vector<34x32xf32>
    %129 = vector.broadcast %17 : vector<1x32xf32> to vector<34x32xf32>
    %130 = arith.addf %128, %129 : vector<34x32xf32>
    %cst_45 = arith.constant dense<0.000000e+00> : vector<34x128xf32>
    %131 = tpu.matmul %130, %11, %cst_45 {dimension_numbers = #tpu.dot_dimension_numbers<[1], [0], [0], [1], [0, 0, 1, 1], [], []>} : vector<34x32xf32>, vector<32x128xf32>, vector<34x128xf32> -> vector<34x128xf32>
    %132 = vector.broadcast %18 : vector<1x128xf32> to vector<34x128xf32>
    %133 = arith.addf %131, %132 : vector<34x128xf32>
    %cst_46 = arith.constant 0.000000e+00 : f32
    %134 = vector.broadcast %cst_46 : f32 to vector<34x128xf32>
    %135 = arith.maximumf %133, %134 : vector<34x128xf32>
    %cst_47 = arith.constant dense<0.000000e+00> : vector<34x32xf32>
    %136 = tpu.matmul %135, %12, %cst_47 {dimension_numbers = #tpu.dot_dimension_numbers<[1], [0], [0], [1], [0, 0, 1, 1], [], []>} : vector<34x128xf32>, vector<128x32xf32>, vector<34x32xf32> -> vector<34x32xf32>
    %137 = arith.addf %108, %136 : vector<34x32xf32>
    %138 = vector.broadcast %19 : vector<1x32xf32> to vector<34x32xf32>
    %139 = arith.addf %137, %138 : vector<34x32xf32>
    %c256 = arith.constant 256 : index
    %c0_48 = arith.constant 0 : index
    %140 = vector.load %arg2[%c256, %c0_48] : memref<480x128xf32, #tpu.memory_space<vmem>>, vector<32x96xf32>
    %c288 = arith.constant 288 : index
    %c0_49 = arith.constant 0 : index
    %141 = vector.load %arg2[%c288, %c0_49] : memref<480x128xf32, #tpu.memory_space<vmem>>, vector<32x128xf32>
    %c320 = arith.constant 320 : index
    %c0_50 = arith.constant 0 : index
    %142 = vector.load %arg2[%c320, %c0_50] : memref<480x128xf32, #tpu.memory_space<vmem>>, vector<128x32xf32>
    %c24 = arith.constant 24 : index
    %c0_51 = arith.constant 0 : index
    %143 = vector.load %arg3[%c24, %c0_51] : memref<34x128xf32, #tpu.memory_space<vmem>>, vector<1x32xf32>
    %c25 = arith.constant 25 : index
    %c0_52 = arith.constant 0 : index
    %144 = vector.load %arg3[%c25, %c0_52] : memref<34x128xf32, #tpu.memory_space<vmem>>, vector<1x32xf32>
    %c26 = arith.constant 26 : index
    %c0_53 = arith.constant 0 : index
    %145 = vector.load %arg3[%c26, %c0_53] : memref<34x128xf32, #tpu.memory_space<vmem>>, vector<1x96xf32>
    %c27 = arith.constant 27 : index
    %c0_54 = arith.constant 0 : index
    %146 = vector.load %arg3[%c27, %c0_54] : memref<34x128xf32, #tpu.memory_space<vmem>>, vector<1x32xf32>
    %c28 = arith.constant 28 : index
    %c0_55 = arith.constant 0 : index
    %147 = vector.load %arg3[%c28, %c0_55] : memref<34x128xf32, #tpu.memory_space<vmem>>, vector<1x32xf32>
    %c29 = arith.constant 29 : index
    %c0_56 = arith.constant 0 : index
    %148 = vector.load %arg3[%c29, %c0_56] : memref<34x128xf32, #tpu.memory_space<vmem>>, vector<1x128xf32>
    %c30 = arith.constant 30 : index
    %c0_57 = arith.constant 0 : index
    %149 = vector.load %arg3[%c30, %c0_57] : memref<34x128xf32, #tpu.memory_space<vmem>>, vector<1x32xf32>
    %cst_58 = arith.constant dense<0.000000e+00> : vector<34xf32>
    %150 = vector.multi_reduction <add>, %139, %cst_58 [1] : vector<34x32xf32> to vector<34xf32>
    %151 = vector.shape_cast %150 : vector<34xf32> to vector<34x1xf32>
    %cst_59 = arith.constant 3.200000e+01 : f32
    %152 = vector.broadcast %cst_59 : f32 to vector<34x1xf32>
    %153 = arith.divf %151, %152 : vector<34x1xf32>
    %154 = arith.mulf %139, %139 : vector<34x32xf32>
    %cst_60 = arith.constant dense<0.000000e+00> : vector<34xf32>
    %155 = vector.multi_reduction <add>, %154, %cst_60 [1] : vector<34x32xf32> to vector<34xf32>
    %156 = vector.shape_cast %155 : vector<34xf32> to vector<34x1xf32>
    %cst_61 = arith.constant 3.200000e+01 : f32
    %157 = vector.broadcast %cst_61 : f32 to vector<34x1xf32>
    %158 = arith.divf %156, %157 : vector<34x1xf32>
    %159 = arith.mulf %153, %153 : vector<34x1xf32>
    %160 = arith.subf %158, %159 : vector<34x1xf32>
    %cst_62 = arith.constant 9.99999974E-6 : f32
    %161 = vector.broadcast %cst_62 : f32 to vector<34x1xf32>
    %162 = arith.addf %160, %161 : vector<34x1xf32>
    %163 = math.rsqrt %162 : vector<34x1xf32>
    %164 = vector.broadcast %153 : vector<34x1xf32> to vector<34x32xf32>
    %165 = arith.subf %139, %164 : vector<34x32xf32>
    %166 = vector.broadcast %163 : vector<34x1xf32> to vector<34x32xf32>
    %167 = vector.broadcast %143 : vector<1x32xf32> to vector<34x32xf32>
    %168 = arith.mulf %166, %167 : vector<34x32xf32>
    %169 = arith.mulf %165, %168 : vector<34x32xf32>
    %170 = vector.broadcast %144 : vector<1x32xf32> to vector<34x32xf32>
    %171 = arith.addf %169, %170 : vector<34x32xf32>
    %cst_63 = arith.constant dense<0.000000e+00> : vector<34x96xf32>
    %172 = tpu.matmul %171, %140, %cst_63 {dimension_numbers = #tpu.dot_dimension_numbers<[1], [0], [0], [1], [0, 0, 1, 1], [], []>} : vector<34x32xf32>, vector<32x96xf32>, vector<34x96xf32> -> vector<34x96xf32>
    %173 = vector.broadcast %145 : vector<1x96xf32> to vector<34x96xf32>
    %174 = arith.addf %172, %173 : vector<34x96xf32>
    %175 = vector.extract_strided_slice %174 {offsets = [0, 0], sizes = [17, 16], strides = [1, 1]} : vector<34x96xf32> to vector<17x16xf32>
    %176 = vector.extract_strided_slice %174 {offsets = [0, 32], sizes = [17, 16], strides = [1, 1]} : vector<34x96xf32> to vector<17x16xf32>
    %177 = vector.extract_strided_slice %174 {offsets = [0, 64], sizes = [17, 16], strides = [1, 1]} : vector<34x96xf32> to vector<17x16xf32>
    "tpu.trace_start"() <{level = 10 : i32, message = "qd,kd->qk"}> : () -> ()
    %cst_64 = arith.constant dense<0.000000e+00> : vector<17x17xf32>
    %178 = tpu.matmul %175, %176, %cst_64 {dimension_numbers = #tpu.dot_dimension_numbers<[1], [1], [0], [0], [0, 0, 1, 0], [], []>} : vector<17x16xf32>, vector<17x16xf32>, vector<17x17xf32> -> vector<17x17xf32>
    "tpu.trace_stop"() : () -> ()
    %cst_65 = arith.constant dense<0xFF800000> : vector<17xf32>
    %179 = vector.multi_reduction <maximumf>, %178, %cst_65 [1] : vector<17x17xf32> to vector<17xf32>
    %180 = vector.shape_cast %179 : vector<17xf32> to vector<17x1xf32>
    %181 = vector.broadcast %180 : vector<17x1xf32> to vector<17x17xf32>
    %182 = arith.subf %178, %181 : vector<17x17xf32>
    %183 = math.exp %182 : vector<17x17xf32>
    %cst_66 = arith.constant dense<0.000000e+00> : vector<17xf32>
    %184 = vector.multi_reduction <add>, %183, %cst_66 [1] : vector<17x17xf32> to vector<17xf32>
    %185 = vector.shape_cast %184 : vector<17xf32> to vector<17x1xf32>
    %186 = tpu.reciprocal %185 {approx = true} : vector<17x1xf32> -> vector<17x1xf32>
    %187 = vector.broadcast %186 : vector<17x1xf32> to vector<17x17xf32>
    %188 = arith.mulf %183, %187 : vector<17x17xf32>
    %cst_67 = arith.constant dense<0.000000e+00> : vector<17x16xf32>
    %189 = tpu.matmul %188, %177, %cst_67 {dimension_numbers = #tpu.dot_dimension_numbers<[1], [0], [0], [1], [0, 0, 1, 1], [], []>} : vector<17x17xf32>, vector<17x16xf32>, vector<17x16xf32> -> vector<17x16xf32>
    %190 = vector.extract_strided_slice %174 {offsets = [0, 16], sizes = [17, 16], strides = [1, 1]} : vector<34x96xf32> to vector<17x16xf32>
    %191 = vector.extract_strided_slice %174 {offsets = [0, 48], sizes = [17, 16], strides = [1, 1]} : vector<34x96xf32> to vector<17x16xf32>
    %192 = vector.extract_strided_slice %174 {offsets = [0, 80], sizes = [17, 16], strides = [1, 1]} : vector<34x96xf32> to vector<17x16xf32>
    "tpu.trace_start"() <{level = 10 : i32, message = "qd,kd->qk"}> : () -> ()
    %cst_68 = arith.constant dense<0.000000e+00> : vector<17x17xf32>
    %193 = tpu.matmul %190, %191, %cst_68 {dimension_numbers = #tpu.dot_dimension_numbers<[1], [1], [0], [0], [0, 0, 1, 0], [], []>} : vector<17x16xf32>, vector<17x16xf32>, vector<17x17xf32> -> vector<17x17xf32>
    "tpu.trace_stop"() : () -> ()
    %cst_69 = arith.constant dense<0xFF800000> : vector<17xf32>
    %194 = vector.multi_reduction <maximumf>, %193, %cst_69 [1] : vector<17x17xf32> to vector<17xf32>
    %195 = vector.shape_cast %194 : vector<17xf32> to vector<17x1xf32>
    %196 = vector.broadcast %195 : vector<17x1xf32> to vector<17x17xf32>
    %197 = arith.subf %193, %196 : vector<17x17xf32>
    %198 = math.exp %197 : vector<17x17xf32>
    %cst_70 = arith.constant dense<0.000000e+00> : vector<17xf32>
    %199 = vector.multi_reduction <add>, %198, %cst_70 [1] : vector<17x17xf32> to vector<17xf32>
    %200 = vector.shape_cast %199 : vector<17xf32> to vector<17x1xf32>
    %201 = tpu.reciprocal %200 {approx = true} : vector<17x1xf32> -> vector<17x1xf32>
    %202 = vector.broadcast %201 : vector<17x1xf32> to vector<17x17xf32>
    %203 = arith.mulf %198, %202 : vector<17x17xf32>
    %cst_71 = arith.constant dense<0.000000e+00> : vector<17x16xf32>
    %204 = tpu.matmul %203, %192, %cst_71 {dimension_numbers = #tpu.dot_dimension_numbers<[1], [0], [0], [1], [0, 0, 1, 1], [], []>} : vector<17x17xf32>, vector<17x16xf32>, vector<17x16xf32> -> vector<17x16xf32>
    %205 = tpu.concatenate %189, %204 in 1 : vector<17x16xf32>, vector<17x16xf32> -> vector<17x32xf32>
    %206 = vector.extract_strided_slice %174 {offsets = [17, 0], sizes = [17, 16], strides = [1, 1]} : vector<34x96xf32> to vector<17x16xf32>
    %207 = vector.extract_strided_slice %174 {offsets = [17, 32], sizes = [17, 16], strides = [1, 1]} : vector<34x96xf32> to vector<17x16xf32>
    %208 = vector.extract_strided_slice %174 {offsets = [17, 64], sizes = [17, 16], strides = [1, 1]} : vector<34x96xf32> to vector<17x16xf32>
    "tpu.trace_start"() <{level = 10 : i32, message = "qd,kd->qk"}> : () -> ()
    %cst_72 = arith.constant dense<0.000000e+00> : vector<17x17xf32>
    %209 = tpu.matmul %206, %207, %cst_72 {dimension_numbers = #tpu.dot_dimension_numbers<[1], [1], [0], [0], [0, 0, 1, 0], [], []>} : vector<17x16xf32>, vector<17x16xf32>, vector<17x17xf32> -> vector<17x17xf32>
    "tpu.trace_stop"() : () -> ()
    %cst_73 = arith.constant dense<0xFF800000> : vector<17xf32>
    %210 = vector.multi_reduction <maximumf>, %209, %cst_73 [1] : vector<17x17xf32> to vector<17xf32>
    %211 = vector.shape_cast %210 : vector<17xf32> to vector<17x1xf32>
    %212 = vector.broadcast %211 : vector<17x1xf32> to vector<17x17xf32>
    %213 = arith.subf %209, %212 : vector<17x17xf32>
    %214 = math.exp %213 : vector<17x17xf32>
    %cst_74 = arith.constant dense<0.000000e+00> : vector<17xf32>
    %215 = vector.multi_reduction <add>, %214, %cst_74 [1] : vector<17x17xf32> to vector<17xf32>
    %216 = vector.shape_cast %215 : vector<17xf32> to vector<17x1xf32>
    %217 = tpu.reciprocal %216 {approx = true} : vector<17x1xf32> -> vector<17x1xf32>
    %218 = vector.broadcast %217 : vector<17x1xf32> to vector<17x17xf32>
    %219 = arith.mulf %214, %218 : vector<17x17xf32>
    %cst_75 = arith.constant dense<0.000000e+00> : vector<17x16xf32>
    %220 = tpu.matmul %219, %208, %cst_75 {dimension_numbers = #tpu.dot_dimension_numbers<[1], [0], [0], [1], [0, 0, 1, 1], [], []>} : vector<17x17xf32>, vector<17x16xf32>, vector<17x16xf32> -> vector<17x16xf32>
    %221 = vector.extract_strided_slice %174 {offsets = [17, 16], sizes = [17, 16], strides = [1, 1]} : vector<34x96xf32> to vector<17x16xf32>
    %222 = vector.extract_strided_slice %174 {offsets = [17, 48], sizes = [17, 16], strides = [1, 1]} : vector<34x96xf32> to vector<17x16xf32>
    %223 = vector.extract_strided_slice %174 {offsets = [17, 80], sizes = [17, 16], strides = [1, 1]} : vector<34x96xf32> to vector<17x16xf32>
    "tpu.trace_start"() <{level = 10 : i32, message = "qd,kd->qk"}> : () -> ()
    %cst_76 = arith.constant dense<0.000000e+00> : vector<17x17xf32>
    %224 = tpu.matmul %221, %222, %cst_76 {dimension_numbers = #tpu.dot_dimension_numbers<[1], [1], [0], [0], [0, 0, 1, 0], [], []>} : vector<17x16xf32>, vector<17x16xf32>, vector<17x17xf32> -> vector<17x17xf32>
    "tpu.trace_stop"() : () -> ()
    %cst_77 = arith.constant dense<0xFF800000> : vector<17xf32>
    %225 = vector.multi_reduction <maximumf>, %224, %cst_77 [1] : vector<17x17xf32> to vector<17xf32>
    %226 = vector.shape_cast %225 : vector<17xf32> to vector<17x1xf32>
    %227 = vector.broadcast %226 : vector<17x1xf32> to vector<17x17xf32>
    %228 = arith.subf %224, %227 : vector<17x17xf32>
    %229 = math.exp %228 : vector<17x17xf32>
    %cst_78 = arith.constant dense<0.000000e+00> : vector<17xf32>
    %230 = vector.multi_reduction <add>, %229, %cst_78 [1] : vector<17x17xf32> to vector<17xf32>
    %231 = vector.shape_cast %230 : vector<17xf32> to vector<17x1xf32>
    %232 = tpu.reciprocal %231 {approx = true} : vector<17x1xf32> -> vector<17x1xf32>
    %233 = vector.broadcast %232 : vector<17x1xf32> to vector<17x17xf32>
    %234 = arith.mulf %229, %233 : vector<17x17xf32>
    %cst_79 = arith.constant dense<0.000000e+00> : vector<17x16xf32>
    %235 = tpu.matmul %234, %223, %cst_79 {dimension_numbers = #tpu.dot_dimension_numbers<[1], [0], [0], [1], [0, 0, 1, 1], [], []>} : vector<17x17xf32>, vector<17x16xf32>, vector<17x16xf32> -> vector<17x16xf32>
    %236 = tpu.concatenate %220, %235 in 1 : vector<17x16xf32>, vector<17x16xf32> -> vector<17x32xf32>
    %237 = tpu.concatenate %205, %236 in 0 : vector<17x32xf32>, vector<17x32xf32> -> vector<34x32xf32>
    %238 = arith.addf %139, %237 : vector<34x32xf32>
    %cst_80 = arith.constant dense<0.000000e+00> : vector<34xf32>
    %239 = vector.multi_reduction <add>, %238, %cst_80 [1] : vector<34x32xf32> to vector<34xf32>
    %240 = vector.shape_cast %239 : vector<34xf32> to vector<34x1xf32>
    %cst_81 = arith.constant 3.200000e+01 : f32
    %241 = vector.broadcast %cst_81 : f32 to vector<34x1xf32>
    %242 = arith.divf %240, %241 : vector<34x1xf32>
    %243 = arith.mulf %238, %238 : vector<34x32xf32>
    %cst_82 = arith.constant dense<0.000000e+00> : vector<34xf32>
    %244 = vector.multi_reduction <add>, %243, %cst_82 [1] : vector<34x32xf32> to vector<34xf32>
    %245 = vector.shape_cast %244 : vector<34xf32> to vector<34x1xf32>
    %cst_83 = arith.constant 3.200000e+01 : f32
    %246 = vector.broadcast %cst_83 : f32 to vector<34x1xf32>
    %247 = arith.divf %245, %246 : vector<34x1xf32>
    %248 = arith.mulf %242, %242 : vector<34x1xf32>
    %249 = arith.subf %247, %248 : vector<34x1xf32>
    %cst_84 = arith.constant 9.99999974E-6 : f32
    %250 = vector.broadcast %cst_84 : f32 to vector<34x1xf32>
    %251 = arith.addf %249, %250 : vector<34x1xf32>
    %252 = math.rsqrt %251 : vector<34x1xf32>
    %253 = vector.broadcast %242 : vector<34x1xf32> to vector<34x32xf32>
    %254 = arith.subf %238, %253 : vector<34x32xf32>
    %255 = vector.broadcast %252 : vector<34x1xf32> to vector<34x32xf32>
    %256 = vector.broadcast %146 : vector<1x32xf32> to vector<34x32xf32>
    %257 = arith.mulf %255, %256 : vector<34x32xf32>
    %258 = arith.mulf %254, %257 : vector<34x32xf32>
    %259 = vector.broadcast %147 : vector<1x32xf32> to vector<34x32xf32>
    %260 = arith.addf %258, %259 : vector<34x32xf32>
    %cst_85 = arith.constant dense<0.000000e+00> : vector<34x128xf32>
    %261 = tpu.matmul %260, %141, %cst_85 {dimension_numbers = #tpu.dot_dimension_numbers<[1], [0], [0], [1], [0, 0, 1, 1], [], []>} : vector<34x32xf32>, vector<32x128xf32>, vector<34x128xf32> -> vector<34x128xf32>
    %262 = vector.broadcast %148 : vector<1x128xf32> to vector<34x128xf32>
    %263 = arith.addf %261, %262 : vector<34x128xf32>
    %cst_86 = arith.constant 0.000000e+00 : f32
    %264 = vector.broadcast %cst_86 : f32 to vector<34x128xf32>
    %265 = arith.maximumf %263, %264 : vector<34x128xf32>
    %cst_87 = arith.constant dense<0.000000e+00> : vector<34x32xf32>
    %266 = tpu.matmul %265, %142, %cst_87 {dimension_numbers = #tpu.dot_dimension_numbers<[1], [0], [0], [1], [0, 0, 1, 1], [], []>} : vector<34x128xf32>, vector<128x32xf32>, vector<34x32xf32> -> vector<34x32xf32>
    %267 = arith.addf %238, %266 : vector<34x32xf32>
    %268 = vector.broadcast %149 : vector<1x32xf32> to vector<34x32xf32>
    %269 = arith.addf %267, %268 : vector<34x32xf32>
    %270 = vector.extract_strided_slice %269 {offsets = [0, 0], sizes = [1, 32], strides = [1, 1]} : vector<34x32xf32> to vector<1x32xf32>
    %271 = vector.extract_strided_slice %269 {offsets = [17, 0], sizes = [1, 32], strides = [1, 1]} : vector<34x32xf32> to vector<1x32xf32>
    %272 = tpu.concatenate %270, %271 in 0 : vector<1x32xf32>, vector<1x32xf32> -> vector<2x32xf32>
    %c31 = arith.constant 31 : index
    %c0_88 = arith.constant 0 : index
    %273 = vector.load %arg3[%c31, %c0_88] : memref<34x128xf32, #tpu.memory_space<vmem>>, vector<1x32xf32>
    %c32 = arith.constant 32 : index
    %c0_89 = arith.constant 0 : index
    %274 = vector.load %arg3[%c32, %c0_89] : memref<34x128xf32, #tpu.memory_space<vmem>>, vector<1x32xf32>
    %cst_90 = arith.constant dense<0.000000e+00> : vector<2xf32>
    %275 = vector.multi_reduction <add>, %272, %cst_90 [1] : vector<2x32xf32> to vector<2xf32>
    %276 = vector.shape_cast %275 : vector<2xf32> to vector<2x1xf32>
    %cst_91 = arith.constant 3.200000e+01 : f32
    %277 = vector.broadcast %cst_91 : f32 to vector<2x1xf32>
    %278 = arith.divf %276, %277 : vector<2x1xf32>
    %279 = arith.mulf %272, %272 : vector<2x32xf32>
    %cst_92 = arith.constant dense<0.000000e+00> : vector<2xf32>
    %280 = vector.multi_reduction <add>, %279, %cst_92 [1] : vector<2x32xf32> to vector<2xf32>
    %281 = vector.shape_cast %280 : vector<2xf32> to vector<2x1xf32>
    %cst_93 = arith.constant 3.200000e+01 : f32
    %282 = vector.broadcast %cst_93 : f32 to vector<2x1xf32>
    %283 = arith.divf %281, %282 : vector<2x1xf32>
    %284 = arith.mulf %278, %278 : vector<2x1xf32>
    %285 = arith.subf %283, %284 : vector<2x1xf32>
    %cst_94 = arith.constant 9.99999974E-6 : f32
    %286 = vector.broadcast %cst_94 : f32 to vector<2x1xf32>
    %287 = arith.addf %285, %286 : vector<2x1xf32>
    %288 = math.rsqrt %287 : vector<2x1xf32>
    %289 = vector.broadcast %278 : vector<2x1xf32> to vector<2x32xf32>
    %290 = arith.subf %272, %289 : vector<2x32xf32>
    %291 = vector.broadcast %288 : vector<2x1xf32> to vector<2x32xf32>
    %292 = vector.broadcast %273 : vector<1x32xf32> to vector<2x32xf32>
    %293 = arith.mulf %291, %292 : vector<2x32xf32>
    %294 = arith.mulf %290, %293 : vector<2x32xf32>
    %295 = vector.broadcast %274 : vector<1x32xf32> to vector<2x32xf32>
    %296 = arith.addf %294, %295 : vector<2x32xf32>
    %c448 = arith.constant 448 : index
    %c0_95 = arith.constant 0 : index
    %297 = vector.load %arg2[%c448, %c0_95] : memref<480x128xf32, #tpu.memory_space<vmem>>, vector<32x128xf32>
    %cst_96 = arith.constant dense<0.000000e+00> : vector<2x128xf32>
    %298 = tpu.matmul %296, %297, %cst_96 {dimension_numbers = #tpu.dot_dimension_numbers<[1], [0], [0], [1], [0, 0, 1, 1], [], []>} : vector<2x32xf32>, vector<32x128xf32>, vector<2x128xf32> -> vector<2x128xf32>
    %c33 = arith.constant 33 : index
    %c0_97 = arith.constant 0 : index
    %299 = vector.load %arg3[%c33, %c0_97] : memref<34x128xf32, #tpu.memory_space<vmem>>, vector<1x128xf32>
    %300 = vector.broadcast %299 : vector<1x128xf32> to vector<2x128xf32>
    %301 = arith.addf %298, %300 : vector<2x128xf32>
    %c0_98 = arith.constant 0 : index
    %c0_99 = arith.constant 0 : index
    %c0_100 = arith.constant 0 : index
    %302 = vector.load %arg4[%c0_98, %c0_99, %c0_100] : memref<2x1x128xf32, #tpu.memory_space<vmem>>, vector<2x1x128xf32>
    %303 = vector.shape_cast %302 : vector<2x1x128xf32> to vector<2x128xf32>
    %304 = vector.shape_cast %301 : vector<2x128xf32> to vector<2x1x128xf32>
    tpu.vector_store %arg4[%c0_98, %c0_99, %c0_100], %304 {strides = array<i32>} : memref<2x1x128xf32, #tpu.memory_space<vmem>>, vector<2x1x128xf32>,
    return
  }
  func.func @transform_0(%arg0: i32) -> (i32, i32, i32) {
    %c0_i32 = arith.constant 0 : i32
    %c0_i32_0 = arith.constant 0 : i32
    %c0_i32_1 = arith.constant 0 : i32
    return %arg0, %c0_i32, %c0_i32_0 : i32, i32, i32
  }
  func.func @transform_1(%arg0: i32) -> (i32, i32) {
    %c0_i32 = arith.constant 0 : i32
    %c0_i32_0 = arith.constant 0 : i32
    %c0_i32_1 = arith.constant 0 : i32
    return %c0_i32, %c0_i32_0 : i32, i32
  }
  func.func @transform_2(%arg0: i32) -> (i32, i32) {
    %c0_i32 = arith.constant 0 : i32
    %c0_i32_0 = arith.constant 0 : i32
    %c0_i32_1 = arith.constant 0 : i32
    return %c0_i32, %c0_i32_0 : i32, i32
  }
  func.func @transform_3(%arg0: i32) -> (i32, i32, i32) {
    %c0_i32 = arith.constant 0 : i32
    %c0_i32_0 = arith.constant 0 : i32
    %c0_i32_1 = arith.constant 0 : i32
    return %arg0, %c0_i32, %c0_i32_0 : i32, i32, i32
  }
}

</mosaic_0001>

<bundles_post_ra>
// kernel: tpu_custom_call.1
= control target key start
LH: loop header
LB: loop body
LE: loop exit
PB: predicated region body
PF: predicated region fallthrough
CT: control target
= control target key end

     0   :  { %8 = vsyncpa [#allocation3], 0  ;;  %s5631_s0 = inlined_call_operand.vmem [shape: f32[2,17,64], index: 0, kind: input, shape index: {}]   ;;  %s5632_s1 = inlined_call_operand.hbm [shape: f32[480,128], index: 1, kind: input, shape index: {}]   ;;  %s5633_s2 = inlined_call_operand.vmem [shape: f32[34,128], index: 2, kind: input, shape index: {}]   ;;  %s5634_s3 = inlined_call_operand.hbm [shape: f32[2,1,128], index: 3, kind: output, shape index: {}]  }
   0x1   :  { %9 = vsyncpa [#allocation4], 0  ;;  %s4607_s12 = smov [#allocation2]   ;;  %s4559_s16 = scalar_lea.hbm %s5632_s1, 7680 }
   0x2   :  { %s17_s13 = sshll.u32 %s4607_s12, 4  ;;  %p4560_p0 = scmp.ne.s32.totalorder %s5632_s1, %s4559_s16  ;;  %s18_s13 = int_to_ptr.vmem [resolvable:$true] %s17_s13 }
   0x3   :  { %p4563_p1 = scmp.lt.u32.totalorder %s4559_s16, %s5632_s1 }
   0x5   :  { %p4565_p2 = pnand %p4563_p1, %p4560_p0 }
   0x7   :  { %4568 = shalt.err (!%p4565_p2)
}
   0x8   :  { %s4569_s21 = scalar_lea.vmem %s18_s13, 7680  ;;  %p4574_p4 = scmp.lt.s32.totalorder %s18_s13, %s18_s13 }
   0x9   :  { %p4570_p3 = scmp.ne.s32.totalorder %s18_s13, %s4569_s21  ;;  %p4575_p5 = scmp.lt.s32.totalorder %s4569_s21, %s4569_s21 }
   0xb   :  { %p4576_p6 = por %p4575_p5, %p4574_p4 }
   0xd   :  { %p4577_p7 = pnand %p4576_p6, %p4570_p3 }
   0xf   :  { %4580 = shalt.err (!%p4577_p7)
}
  0x10   :  { %s4608_s22 = smov 128   ;;  %s4609_s23 = smov 8  }
  0x11   :  { %23 = dma.hbm_to_vmem [thread:$0]  %s5632_s1, 7680, %s18_s13, [#allocation3], %s4608_s22, %s4608_s22, %s4609_s23  }
  0x12   :  { %4603 = dma.done.wait [#allocation3], 7680  }
  0x13   :  { %4604 = vsyncadd [#allocation3], 4294959616  ;;  %v4610_v0 = vmov 0.0|0.0   ;;  %vm4611_vm0 = vmmov 0   ;;  %v4612_v1 = vmov 0.0   ;;  %v47_v2 = vld [vmem:[#allocation2] sm:$0xff] }
  0x14   :  { %4180 = vmatprep.subr.bf16.mxu0 %v4610_v0  ;;  %3728 = vmatprep.mubr.msk.f32.mxu0 %vm4611_vm0, %v4612_v1  ;;  %v48_v3 = vld [vmem:[#allocation2 + $0x8] sm:$0xff]  ;;  %v49_v4 = vld [vmem:[#allocation2 + $0x10] sm:$0xff]  ;;  %v50_v6 = vld [vmem:[#allocation2 + $0x18] sm:$0xff]  ;;  %vm70_vm1 = vcmask 523264   ;;  %vm39_vm2 = vcmask 1040384   ;;  %vm205_vm3 = vcmask 261120  }
  0x15   :  { %4192 = vmatprep.subr.bf16.mxu1 %v4610_v0  ;;  %3751 = vmatprep.mubr.msk.f32.mxu1 %vm4611_vm0, %v4612_v1  ;;  %v4181_v5 = vpack.c.bf16 %v48_v3, %v47_v2  ;;  %v4184_v7 = vpack.c.bf16 %v50_v6, %v49_v4  ;;  %v51_v8 = vld [vmem:[#allocation2 + $0x20] sm:$0xff]  ;;  %v52_v9 = vld [vmem:[#allocation2 + $0x28] sm:$0xff]  ;;  %v53_v11 = vld [vmem:[#allocation2 + $0x30] sm:$0xff]  ;;  %vm218_vm4 = vcmask 254976   ;;  %s4613_s21 = smov 96   ;;  %vm419_vm5 = vcmask 130048  }
  0x16   :  { %v4187_v10 = vpack.c.bf16 %v52_v9, %v51_v8  ;;  %v54_v12 = vld [vmem:[#allocation2 + $0x38] sm:$0xff]  ;;  %v29_v14 = vld [vmem:[%s5631_s0] sm:$0xff]  ;;  %v3392_v15 = vld [vmem:[%s5631_s0 + $0x18] sm:$0xff]  ;;  %vm512_vm7 = vcmask 138240   ;;  %vm519_vm8 = vcmask 131072   ;;  %s4614_s22 = smov 64  }
  0x17   :  { %4182 = vmatpush3.bf16.msra.mxu0 %v4181_v5  ;;  %v4190_v13 = vpack.c.bf16 %v54_v12, %v53_v11  ;;  %v30_v16 = vld [vmem:[%s5631_s0 + $0x8] sm:$0xff]  ;;  %v40_v17 = vrot.slane %v3392_v15, 7  ;;  %v31_v18 = vld [vmem:[%s5631_s0 + $0x10] sm:$0x1]  ;;  %v3393_v19 = vld [vmem:[%s5631_s0 + $0x20] sm:$0xff]  ;;  %s4615_s23 = smov 80  }
  0x18   :  { %4183 = vmatprep.subr.bf16.mxu0 %v4610_v0  ;;  %v41_v21 = vrot.slane %v3393_v19, 7  ;;  %v3394_v22 = vld [vmem:[%s5631_s0 + $0x28] sm:$0x1]  ;;  %v55_v26 = vld [vmem:[%s5633_s2] sm:$0xff]  ;;  %v57_v34 = vld [vmem:[%s5633_s2 + $0x10] sm:$0x1] }
  0x19   :  { %v46_v20 = vsel %vm39_vm2, %v31_v18, %v40_v17  ;;  %v43_v24 = vrot.slane %v3394_v22, 7  ;;  %v61_v30 = vrot.slane %v55_v26, 7  ;;  %v56_v31 = vld [vmem:[%s5633_s2 + $0x8] sm:$0xff]  ;;  %v64_v46 = vrot.slane %v57_v34, 7  ;;  %v174_v3 = vld [vmem:[#allocation2 + $0x40] sm:$0xff]  ;;  %v175_v4 = vld [vmem:[#allocation2 + $0x48] sm:$0xff] }
  0x1a   :  { %v42_v23 = vsel %vm39_vm2, %v40_v17, %v41_v21  ;;  %v62_v38 = vrot.slane %v56_v31, 7  ;;  %v4193_v5 = vpack.c.bf16 %v175_v4, %v174_v3  ;;  %v176_v6 = vld [vmem:[#allocation2 + $0x50] sm:$0xff]  ;;  %vm4796_vm6 = vmpackc.low %vm419_vm5, %vm419_vm5  ;;  %vm899_vm9 = vcmask 1046528   ;;  %s4616_s24 = smov 112   ;;  %s4617_s25 = smov 48  }
  0x1b   :  { %4185 = vmatpush3.bf16.msra.mxu0 %v4184_v7  ;;  %v44_v25 = vsel %vm39_vm2, %v41_v21, %v43_v24  ;;  %v69_v39 = vsel %vm39_vm2, %v57_v34, %v61_v30  ;;  %v177_v7 = vld [vmem:[#allocation2 + $0x58] sm:$0xff]  ;;  %s4618_s1 = smov 16   ;;  %s4620_s26 = smov [#allocation5]  }
  0x1c   :  { %4186 = vmatprep.subr.bf16.mxu0 %v4610_v0  ;;  %v63_v47 = vsel %vm39_vm2, %v61_v30, %v62_v38  ;;  %v65_v55 = vsel %vm39_vm2, %v62_v38, %v64_v46  ;;  %4194 = vmatpush3.bf16.msra.mxu1 %v4193_v5  ;;  %v4196_v8 = vpack.c.bf16 %v177_v7, %v176_v6  ;;  %s3380_s27 = sshll.u32 %s4620_s26, 4  ;;  %s3381_s27 = int_to_ptr.vmem [resolvable:$true] %s3380_s27 }
  0x1d   :  { %4195 = vmatprep.subr.bf16.mxu1 %v4610_v0  ;;  %s4581_s28 = scalar_lea.vmem %s3381_s27, 32  ;;  %p4586_p9 = scmp.lt.s32.totalorder %s3381_s27, %s3381_s27 }
  0x1e   :  { %p4582_p8 = scmp.ne.s32.totalorder %s3381_s27, %s4581_s28  ;;  %p4587_p10 = scmp.lt.s32.totalorder %s4581_s28, %s4581_s28 }
  0x1f   :  { %4188 = vmatpush3.bf16.msra.mxu0 %v4187_v10 }
  0x20   :  { %4189 = vmatprep.subr.bf16.mxu0 %v4610_v0  ;;  %4197 = vmatpush3.bf16.msra.mxu1 %v4196_v8  ;;  %p4588_p11 = por %p4587_p10, %p4586_p9 }
  0x21   :  { %4198 = vmatprep.subr.bf16.mxu1 %v4610_v0 }
  0x22   :  { %p4589_p12 = pnand %p4588_p11, %p4582_p8 }
  0x23   :  { %4191 = vmatpush3.bf16.msra.mxu0 %v4190_v13 }
  0x24   :  { %4209 = vmatprep.subr.bf16.mxu0 %v4610_v0 }
  0x26   :  { %3729 = vmatmul.mubr.msk.f32.vlgmr.msra.gmra.mrb[0].mxu0 %vm70_vm1, %v29_v14 }
  0x27   :  { %3731 = vmatprep.mubr.msk.f32.mxu0 %vm4611_vm0, %v4612_v1 }
  0x2a   :  { %3732 = vmatmul.mubr.msk.f32.gmra.mrb[2].mxu0 %vm70_vm1, %v30_v16 }
  0x2b   :  { %3734 = vmatprep.mubr.msk.f32.mxu0 %vm4611_vm0, %v4612_v1 }
  0x2e   :  { %3735 = vmatmul.mubr.msk.f32.gmra.mrb[4].mxu0 %vm70_vm1, %v46_v20 }
  0x2f   :  { %3737 = vmatprep.mubr.msk.f32.mxu0 %vm4611_vm0, %v4612_v1 }
  0x32   :  { %3738 = vmatmul.mubr.msk.f32.gmra.mrb[6].mxu0 %vm70_vm1, %v42_v23 }
  0x33   :  { %3740 = vmatprep.mubr.msk.f32.mxu0 %vm4611_vm0, %v4612_v1 }
  0x36   :  { %3741 = vmatmul.mubr.msk.f32.gmra.mrb[8].mxu0 %vm70_vm1, %v44_v25 }
  0x37   :  { %3817 = vmatprep.mubr.msk.f32.mxu0 %vm4611_vm0, %v4612_v1 }
  0xf9   :  { %v150_v27 = vpop.f32.mrb[0].mxu0 }
  0xfa   :  { %v4703_v28 = vadd.f32 %v150_v27, %v55_v26  ;;  %v3730_v29 = vpop.f32.mrb[1].mxu0 }
  0xfc   :  { %v206_v32 = vsel %vm205_vm3, %v4703_v28, 0.0  ;;  %v228_v33 = vmul.f32 %v4703_v28, %v4703_v28 }
  0xfd   :  { %207 = vadd.xlane.f32.xlu0 %v206_v32  ;;  %v155_v35 = vpop.f32.mrb[2].mxu0 }
  0xfe   :  { %v4715_v36 = vadd.f32 %v155_v35, %v56_v31  ;;  %v3733_v37 = vpop.f32.mrb[3].mxu0  ;;  %v233_v40 = vsel %vm205_vm3, %v228_v33, 0.0 }
 0x100   :  { %v209_v41 = vsel %vm205_vm3, %v4715_v36, 0.0  ;;  %v229_v42 = vmul.f32 %v4715_v36, %v4715_v36 }
 0x101   :  { %234 = vadd.xlane.f32.xlu0 %v233_v40  ;;  %210 = vadd.xlane.f32.xlu1 %v209_v41  ;;  %v160_v43 = vpop.f32.mrb[4].mxu0  ;;  %v3400_v41 = vld [vmem:[%s5633_s2 + $0x11] ss:$0 sm:$0xff] }
 0x102   :  { %v4723_v44 = vadd.f32 %v160_v43, %v69_v39  ;;  %v3736_v45 = vpop.f32.mrb[5].mxu0  ;;  %v236_v48 = vsel %vm205_vm3, %v229_v42, 0.0 }
 0x104   :  { %v212_v49 = vsel %vm205_vm3, %v4723_v44, 0.0  ;;  %v230_v50 = vmul.f32 %v4723_v44, %v4723_v44 }
 0x105   :  { %237 = vadd.xlane.f32.xlu1 %v236_v48  ;;  %213 = vadd.xlane.f32.xlu0 %v212_v49  ;;  %v165_v51 = vpop.f32.mrb[6].mxu0 }
 0x106   :  { %v4731_v52 = vadd.f32 %v165_v51, %v63_v47  ;;  %v239_v53 = vsel %vm205_vm3, %v230_v50, 0.0  ;;  %v3739_v54 = vpop.f32.mrb[7].mxu0  ;;  %v3401_v50 = vld [vmem:[%s5633_s2 + $0x12] ss:$0 sm:$0xff] }
 0x108   :  { %v215_v56 = vsel %vm205_vm3, %v4731_v52, 0.0  ;;  %v231_v57 = vmul.f32 %v4731_v52, %v4731_v52 }
 0x109   :  { %240 = vadd.xlane.f32.xlu1 %v239_v53  ;;  %216 = vadd.xlane.f32.xlu0 %v215_v56  ;;  %v170_v58 = vpop.f32.mrb[8].mxu0 }
 0x10a   :  { %v4739_v59 = vadd.f32 %v170_v58, %v65_v55  ;;  %v242_v60 = vsel %vm205_vm3, %v231_v57, 0.0  ;;  %v3742_v61 = vpop.f32.mrb[9].mxu0 }
 0x10c   :  { %v219_v62 = vsel %vm218_vm4, %v4739_v59, 0.0  ;;  %v232_v63 = vmul.f32 %v4739_v59, %v4739_v59 }
 0x10d   :  { %243 = vadd.xlane.f32.xlu1 %v242_v60  ;;  %220 = vadd.xlane.f32.xlu0 %v219_v62 }
 0x10e   :  { %v245_v2 = vsel %vm218_vm4, %v232_v63, 0.0 }
 0x111   :  { %246 = vadd.xlane.f32.xlu1 %v245_v2 }
 0x18a   :  { %v208_v9 = vpop.xlane.xlu0 %207 }
 0x18b   :  { %v223_v10 = vmul.f32 0.03125, %v208_v9 }
 0x18d   :  { %v253_v13 = vmul.f32 %v223_v10, %v223_v10  ;;  %v273_v47 = vsub.f32 %v4703_v28, %v223_v10 }
 0x18e   :  { %v235_v11 = vpop.xlane.xlu0 %234  ;;  %v211_v12 = vpop.xlane.xlu1 %210 }
 0x18f   :  { %v248_v14 = vmul.f32 0.03125, %v235_v11  ;;  %v224_v15 = vmul.f32 0.03125, %v211_v12 }
 0x191   :  { %v258_v16 = vsub.f32 %v248_v14, %v253_v13  ;;  %v254_v20 = vmul.f32 %v224_v15, %v224_v15  ;;  %v274_v55 = vsub.f32 %v4715_v36, %v224_v15 }
 0x192   :  { %v238_v17 = vpop.xlane.xlu1 %237  ;;  %v214_v18 = vpop.xlane.xlu0 %213 }
 0x193   :  { %v263_v19 = vadd.f32 1e-05, %v258_v16  ;;  %v249_v21 = vmul.f32 0.03125, %v238_v17  ;;  %v225_v22 = vmul.f32 0.03125, %v214_v18  ;;  %v3402_v16 = vld [vmem:[%s5633_s2 + $0x13] ss:$0 sm:$0xff] }
 0x195   :  { %4421 = vrsqrt.f32 %v263_v19  ;;  %v259_v23 = vsub.f32 %v249_v21, %v254_v20  ;;  %v255_v24 = vmul.f32 %v225_v22, %v225_v22  ;;  %v275_v61 = vsub.f32 %v4723_v44, %v225_v22 }
 0x196   :  { %v241_v25 = vpop.xlane.xlu1 %240  ;;  %v217_v26 = vpop.xlane.xlu0 %216 }
 0x197   :  { %v264_v27 = vadd.f32 1e-05, %v259_v23  ;;  %v250_v29 = vmul.f32 0.03125, %v241_v25  ;;  %v226_v30 = vmul.f32 0.03125, %v217_v26 }
 0x199   :  { %4423 = vrsqrt.f32 %v264_v27  ;;  %v260_v31 = vsub.f32 %v250_v29, %v255_v24  ;;  %v256_v32 = vmul.f32 %v226_v30, %v226_v30  ;;  %v276_v2 = vsub.f32 %v4731_v52, %v226_v30 }
 0x19a   :  { %v244_v33 = vpop.xlane.xlu1 %243  ;;  %v221_v34 = vpop.xlane.xlu0 %220 }
 0x19b   :  { %v265_v35 = vadd.f32 1e-05, %v260_v31  ;;  %v251_v37 = vmul.f32 0.03125, %v244_v33  ;;  %v227_v38 = vmul.f32 0.03125, %v221_v34 }
 0x19d   :  { %4425 = vrsqrt.f32 %v265_v35  ;;  %v261_v39 = vsub.f32 %v251_v37, %v256_v32  ;;  %v257_v40 = vmul.f32 %v227_v38, %v227_v38  ;;  %v277_v7 = vsub.f32 %v4739_v59, %v227_v38 }
 0x19e   :  { %v247_v42 = vpop.xlane.xlu1 %246 }
 0x19f   :  { %v4422_v43 = vpop.eup %4421  ;;  %v266_v45 = vadd.f32 1e-05, %v261_v39  ;;  %v252_v46 = vmul.f32 0.03125, %v247_v42 }
 0x1a0   :  { %v282_v48 = vmul.f32 %v4422_v43, %v3400_v41 }
 0x1a1   :  { %4427 = vrsqrt.f32 %v266_v45  ;;  %v262_v49 = vsub.f32 %v252_v46, %v257_v40 }
 0x1a2   :  { %v287_v51 = vmul.f32 %v282_v48, %v273_v47 }
 0x1a3   :  { %v4424_v53 = vpop.eup %4423  ;;  %v267_v54 = vadd.f32 1e-05, %v262_v49 }
 0x1a4   :  { %v296_v56 = vadd.f32 %v3401_v50, %v287_v51  ;;  %v283_v57 = vmul.f32 %v4424_v53, %v3400_v41 }
 0x1a5   :  { %4429 = vrsqrt.f32 %v267_v54 }
 0x1a6   :  { %3752 = vmatmul.mubr.msk.f32.vlgmr.msra.gmra.mrb[0].mxu1 %vm205_vm3, %v296_v56  ;;  %v288_v58 = vmul.f32 %v283_v57, %v274_v55 }
 0x1a7   :  { %v4426_v60 = vpop.eup %4425  ;;  %3754 = vmatprep.mubr.msk.f32.mxu1 %vm4611_vm0, %v4612_v1 }
 0x1a8   :  { %v297_v62 = vadd.f32 %v3401_v50, %v288_v58  ;;  %v284_v63 = vmul.f32 %v4426_v60, %v3400_v41 }
 0x1aa   :  { %3755 = vmatmul.mubr.msk.f32.gmra.mrb[2].mxu1 %vm205_vm3, %v297_v62  ;;  %v289_v3 = vmul.f32 %v284_v63, %v275_v61 }
 0x1ab   :  { %v4428_v4 = vpop.eup %4427  ;;  %3757 = vmatprep.mubr.msk.f32.mxu1 %vm4611_vm0, %v4612_v1 }
 0x1ac   :  { %v298_v5 = vadd.f32 %v3401_v50, %v289_v3  ;;  %v285_v6 = vmul.f32 %v4428_v4, %v3400_v41 }
 0x1ae   :  { %3758 = vmatmul.mubr.msk.f32.gmra.mrb[4].mxu1 %vm205_vm3, %v298_v5  ;;  %v290_v8 = vmul.f32 %v285_v6, %v276_v2 }
 0x1af   :  { %v4430_v9 = vpop.eup %4429  ;;  %3760 = vmatprep.mubr.msk.f32.mxu1 %vm4611_vm0, %v4612_v1 }
 0x1b0   :  { %v299_v10 = vadd.f32 %v3401_v50, %v290_v8  ;;  %v286_v11 = vmul.f32 %v4430_v9, %v3400_v41 }
 0x1b2   :  { %3761 = vmatmul.mubr.msk.f32.gmra.mrb[6].mxu1 %vm205_vm3, %v299_v10  ;;  %v291_v12 = vmul.f32 %v286_v11, %v277_v7 }
 0x1b3   :  { %3763 = vmatprep.mubr.msk.f32.mxu1 %vm4611_vm0, %v4612_v1 }
 0x1b4   :  { %v300_v13 = vadd.f32 %v3401_v50, %v291_v12 }
 0x1b6   :  { %3764 = vmatmul.mubr.msk.f32.gmra.mrb[8].mxu1 %vm205_vm3, %v300_v13 }
 0x1b7   :  { %3772 = vmatprep.mubr.msk.f32.mxu1 %vm4611_vm0, %v4612_v1 }
 0x279   :  { %v386_v14 = vpop.f32.mrb[0].mxu1 }
 0x27a   :  { %v3753_v15 = vpop.f32.mrb[1].mxu1  ;;  %v4778_v18 = vadd.f32 %v3402_v16, %v386_v14 }
 0x27d   :  { %v391_v17 = vpop.f32.mrb[2].mxu1 }
 0x27e   :  { %v4780_v19 = vadd.f32 %v3402_v16, %v391_v17  ;;  %v3756_v20 = vpop.f32.mrb[3].mxu1 }
 0x280   :  { %v4784_v21 = vpack.i.bf16 %v4780_v19, %v4778_v18 }
 0x281   :  { %v396_v22 = vpop.f32.mrb[4].mxu1 }
 0x282   :  { %v4786_v23 = vadd.f32 %v3402_v16, %v396_v22  ;;  %v3759_v24 = vpop.f32.mrb[5].mxu1  ;;  %4342 = vrot.lane.b32.xlu0 %v4784_v21, %s4613_s21 }
 0x284   :  { %417 = vrot.lane.b32.xlu1 %v4786_v23, %s4613_s21  ;;  %v900_v63 = vrot.slane %v4786_v23, 1 }
 0x285   :  { %v401_v25 = vpop.f32.mrb[6].mxu1 }
 0x286   :  { %v4792_v26 = vadd.f32 %v3402_v16, %v401_v25  ;;  %v3762_v27 = vpop.f32.mrb[7].mxu1 }
 0x288   :  { %v901_v62 = vrot.slane %v4792_v26, 1 }
 0x289   :  { %v406_v29 = vpop.f32.mrb[8].mxu1 }
 0x28a   :  { %v407_v30 = vadd.f32 %v3402_v16, %v406_v29  ;;  %v3765_v31 = vpop.f32.mrb[9].mxu1  ;;  %v4839_v3 = vsel %vm899_vm9, %v900_v63, %v901_v62 }
 0x28c   :  { %v4824_v61 = vrot.slane %v407_v30, 1 }
 0x28e   :  { %v4834_v2 = vsel %vm899_vm9, %v901_v62, %v4824_v61 }
 0x28f   :  { %v4843_v4 = vpack.i.bf16 %v4834_v2, %v4839_v3 }
 0x2f4   :  { %v4343_v32 = vpop.permute.xlu0 %4342 }
 0x2f5   :  { %v4345_v33 = vunpack.i.h.bf16 %v4343_v32  ;;  %v4344_v34 = vunpack.i.l.bf16 %v4343_v32 }
 0x2f6   :  { %v418_v38 = vpop.permute.xlu1 %417 }
 0x2f7   :  { %v4199_v37 = vpack.c.bf16 %v4345_v33, %v4344_v34 }
 0x2f9   :  { %4201 = vmatpush3.bf16.xpose.msk.msra.mxu1 %vm4796_vm6, %v4199_v37 }
 0x2fa   :  { %3770 = vmatprep.subr.mxu1 %v4612_v1 }
 0x301   :  { %3771 = vmatpush3.xpose.msk.msra.mxu1 %vm419_vm5, %v418_v38 }
 0x302   :  { %4202 = vmatprep.subr.bf16.mxu1 %v4610_v0 }
 0x304   :  { %3773 = vmatmul.mubr.msk.f32.vlgmr.msra.gmra.mrb[10].mxu1 %vm419_vm5, %v4778_v18 }
 0x305   :  { %3775 = vmatprep.mubr.msk.f32.mxu1 %vm4611_vm0, %v4612_v1 }
 0x308   :  { %3776 = vmatmul.mubr.msk.f32.gmra.mrb[12].mxu1 %vm419_vm5, %v4780_v19 }
 0x309   :  { %3778 = vmatprep.mubr.msk.f32.mxu1 %vm4611_vm0, %v4612_v1 }
 0x30c   :  { %3779 = vmatmul.mubr.msk.f32.gmra.mrb[14].mxu1 %vm419_vm5, %v4786_v23 }
 0x30d   :  { %3787 = vmatprep.mubr.msk.f32.mxu1 %vm4611_vm0, %v4612_v1 }
 0x3d7   :  { %v498_v39 = vpop.f32.mrb[10].mxu1 }
 0x3d8   :  { %v3774_v40 = vpop.f32.mrb[11].mxu1  ;;  %v513_v41 = vsel %vm512_vm7, %v498_v39, -inf }
 0x3d9   :  { %514 = vmax.xlane.f32.xlu1 %v513_v41 }
 0x3db   :  { %v503_v42 = vpop.f32.mrb[12].mxu1 }
 0x3dc   :  { %v3777_v43 = vpop.f32.mrb[13].mxu1  ;;  %v516_v45 = vsel %vm512_vm7, %v503_v42, -inf }
 0x3dd   :  { %517 = vmax.xlane.f32.xlu0 %v516_v45 }
 0x3df   :  { %v508_v46 = vpop.f32.mrb[14].mxu1 }
 0x3e0   :  { %v3780_v47 = vpop.f32.mrb[15].mxu1  ;;  %v520_v48 = vsel %vm519_vm8, %v508_v46, -inf }
 0x3e1   :  { %521 = vmax.xlane.f32.xlu0 %v520_v48 }
 0x466   :  { %v515_v49 = vpop.xlane.xlu1 %514 }
 0x467   :  { %v523_v50 = vsub.f32 %v498_v39, %v515_v49 }
 0x469   :  { %v526_v51 = vmul.f32 1.442695, %v523_v50 }
 0x46a   :  { %v518_v53 = vpop.xlane.xlu0 %517 }
 0x46b   :  { %4431 = vpow2.f32 %v526_v51  ;;  %v524_v54 = vsub.f32 %v503_v42, %v518_v53 }
 0x46d   :  { %v528_v55 = vmul.f32 1.442695, %v524_v54 }
 0x46e   :  { %v522_v5 = vpop.xlane.xlu0 %521 }
 0x46f   :  { %4433 = vpow2.f32 %v528_v55  ;;  %v525_v6 = vsub.f32 %v508_v46, %v522_v5 }
 0x471   :  { %v530_v7 = vmul.f32 1.442695, %v525_v6 }
 0x473   :  { %4435 = vpow2.f32 %v530_v7 }
 0x475   :  { %v4432_v56 = vpop.eup %4431 }
 0x476   :  { %v532_v57 = vsel %vm512_vm7, %v4432_v56, 0.0 }
 0x477   :  { %533 = vadd.xlane.f32.xlu1 %v532_v57 }
 0x479   :  { %v4434_v58 = vpop.eup %4433 }
 0x47a   :  { %v535_v60 = vsel %vm512_vm7, %v4434_v58, 0.0 }
 0x47b   :  { %536 = vadd.xlane.f32.xlu0 %v535_v60 }
 0x47d   :  { %v4436_v8 = vpop.eup %4435 }
 0x47e   :  { %v538_v9 = vsel %vm519_vm8, %v4436_v8, 0.0 }
 0x488   :  { %551 = vrot.lane.b32.xlu1 %v4786_v23, %s4614_s22 }
 0x48c   :  { %4352 = vrot.lane.b32.xlu1 %v4784_v21, %s4615_s23 }
 0x490   :  { %656 = vrot.lane.b32.xlu1 %v4786_v23, %s4615_s23 }
 0x491   :  { %4347 = vrot.lane.b32.xlu0 %v4784_v21, %s4614_s22 }
 0x495   :  { %4357 = vrot.lane.b32.xlu0 %v4843_v4, %s4613_s21 }
 0x499   :  { %648 = vrot.lane.b32.xlu0 %v4780_v19, %s4616_s24 }
 0x49d   :  { %909 = vrot.lane.b32.xlu0 %v4824_v61, %s4613_s21 }
 0x4a1   :  { %1145 = vrot.lane.b32.xlu0 %v4824_v61, %s4615_s23 }
 0x4a5   :  { %1137 = vrot.lane.b32.xlu0 %v4834_v2, %s4616_s24 }
 0x4b4   :  { %539 = vadd.xlane.f32.xlu1 %v538_v9 }
 0x4c5   :  { %646 = vrot.lane.b32.xlu1 %v4778_v18, %s4616_s24 }
 0x4c9   :  { %650 = vrot.lane.b32.xlu1 %v4786_v23, %s4616_s24 }
 0x4cd   :  { %4362 = vrot.lane.b32.xlu1 %v4843_v4, %s4615_s23 }
 0x4d1   :  { %1135 = vrot.lane.b32.xlu1 %v4839_v3, %s4616_s24 }
 0x4d5   :  { %1139 = vrot.lane.b32.xlu1 %v4824_v61, %s4616_s24 }
 0x504   :  { %v534_v10 = vpop.xlane.xlu1 %533 }
 0x505   :  { %4437 = vrcp.f32 %v534_v10 }
 0x508   :  { %v537_v11 = vpop.xlane.xlu0 %536  ;;  %v552_v13 = vpop.permute.xlu1 %551 }
 0x509   :  { %4439 = vrcp.f32 %v537_v11 }
 0x50c   :  { %v4348_v12 = vpop.permute.xlu0 %4347  ;;  %v4353_v18 = vpop.permute.xlu1 %4352 }
 0x50d   :  { %v4350_v14 = vunpack.i.h.bf16 %v4348_v12  ;;  %v4349_v15 = vunpack.i.l.bf16 %v4348_v12  ;;  %v4355_v22 = vunpack.i.h.bf16 %v4353_v18  ;;  %v4354_v24 = vunpack.i.l.bf16 %v4353_v18 }
 0x50f   :  { %v4203_v16 = vpack.c.bf16 %v4350_v14, %v4349_v15  ;;  %v4438_v17 = vpop.eup %4437  ;;  %v4206_v26 = vpack.c.bf16 %v4355_v22, %v4354_v24 }
 0x510   :  { %v544_v19 = vmul.f32 %v4438_v17, %v4432_v56  ;;  %v657_v27 = vpop.permute.xlu1 %656  ;;  %v4358_v30 = vpop.permute.xlu0 %4357 }
 0x511   :  { %4204 = vmatpush3.bf16.msra.mxu1 %v4203_v16  ;;  %v4360_v34 = vunpack.i.h.bf16 %v4358_v30  ;;  %v4359_v37 = vunpack.i.l.bf16 %v4358_v30 }
 0x512   :  { %3785 = vmatprep.subr.mxu1 %v4612_v1 }
 0x513   :  { %v4440_v20 = vpop.eup %4439  ;;  %v4213_v39 = vpack.c.bf16 %v4360_v34, %v4359_v37 }
 0x514   :  { %v545_v25 = vmul.f32 %v4440_v20, %v4434_v58  ;;  %v649_v40 = vpop.permute.xlu0 %648 }
 0x515   :  { %3786 = vmatpush3.msk.msra.mxu1 %vm39_vm2, %v552_v13 }
 0x516   :  { %3788 = vmatmul.mubr.msk.f32.vlgmr.msra.gmra.mrb[16].mxu1 %vm512_vm7, %v544_v19  ;;  %4205 = vmatprep.subr.bf16.mxu1 %v4610_v0 }
 0x517   :  { %3790 = vmatprep.mubr.msk.f32.mxu1 %vm4611_vm0, %v4612_v1 }
 0x518   :  { %v910_v45 = vpop.permute.xlu0 %909 }
 0x51a   :  { %3791 = vmatmul.mubr.msk.f32.gmra.mrb[18].mxu1 %vm512_vm7, %v545_v25 }
 0x51b   :  { %3793 = vmatprep.mubr.msk.f32.mxu1 %vm4611_vm0, %v4612_v1 }
 0x51c   :  { %4208 = vmatpush3.bf16.xpose.msk.msra.mxu1 %vm4796_vm6, %v4206_v26  ;;  %v1146_v47 = vpop.permute.xlu0 %1145 }
 0x51d   :  { %3800 = vmatprep.subr.mxu1 %v4612_v1 }
 0x520   :  { %v1138_v49 = vpop.permute.xlu0 %1137 }
 0x524   :  { %3801 = vmatpush3.xpose.msk.msra.mxu1 %vm419_vm5, %v657_v27 }
 0x525   :  { %4212 = vmatprep.subr.bf16.mxu1 %v4610_v0 }
 0x541   :  { %v540_v29 = vpop.xlane.xlu1 %539 }
 0x542   :  { %4441 = vrcp.f32 %v540_v29 }
 0x545   :  { %v647_v31 = vpop.permute.xlu1 %646 }
 0x549   :  { %v651_v38 = vpop.permute.xlu1 %650 }
 0x54c   :  { %v4442_v32 = vpop.eup %4441 }
 0x54d   :  { %v546_v33 = vmul.f32 %v4442_v32, %v4436_v8  ;;  %v4363_v41 = vpop.permute.xlu1 %4362 }
 0x54e   :  { %v4365_v42 = vunpack.i.h.bf16 %v4363_v41  ;;  %v4364_v43 = vunpack.i.l.bf16 %v4363_v41 }
 0x54f   :  { %3794 = vmatmul.mubr.msk.f32.gmra.mrb[20].mxu1 %vm512_vm7, %v546_v33 }
 0x550   :  { %3802 = vmatprep.mubr.msk.f32.mxu1 %vm4611_vm0, %v4612_v1  ;;  %v4220_v46 = vpack.c.bf16 %v4365_v42, %v4364_v43 }
 0x551   :  { %v1136_v48 = vpop.permute.xlu1 %1135 }
 0x553   :  { %3803 = vmatmul.mubr.msk.f32.vlgmr.msra.gmra.mrb[22].mxu1 %vm419_vm5, %v647_v31 }
 0x554   :  { %4215 = vmatpush3.bf16.xpose.msk.msra.mxu1 %vm4796_vm6, %v4213_v39  ;;  %3805 = vmatprep.mubr.msk.f32.mxu1 %vm4611_vm0, %v4612_v1 }
 0x555   :  { %3830 = vmatprep.subr.mxu1 %v4612_v1  ;;  %v1140_v50 = vpop.permute.xlu1 %1139 }
 0x557   :  { %3806 = vmatmul.mubr.msk.f32.gmra.mrb[24].mxu1 %vm419_vm5, %v649_v40 }
 0x558   :  { %3808 = vmatprep.mubr.msk.f32.mxu1 %vm4611_vm0, %v4612_v1 }
 0x55b   :  { %3809 = vmatmul.mubr.msk.f32.gmra.mrb[26].mxu1 %vm419_vm5, %v651_v38 }
 0x55c   :  { %3831 = vmatpush3.xpose.msk.msra.mxu1 %vm419_vm5, %v910_v45  ;;  %3832 = vmatprep.mubr.msk.f32.mxu1 %vm4611_vm0, %v4612_v1 }
 0x55d   :  { %4219 = vmatprep.subr.bf16.mxu1 %v4610_v0 }
 0x55f   :  { %3833 = vmatmul.mubr.msk.f32.vlgmr.msra.gmra.mrb[28].mxu1 %vm419_vm5, %v4839_v3 }
 0x560   :  { %4222 = vmatpush3.bf16.xpose.msk.msra.mxu1 %vm4796_vm6, %v4220_v46  ;;  %3835 = vmatprep.mubr.msk.f32.mxu1 %vm4611_vm0, %v4612_v1 }
 0x561   :  { %3860 = vmatprep.subr.mxu1 %v4612_v1 }
 0x563   :  { %3836 = vmatmul.mubr.msk.f32.gmra.mrb[30].mxu1 %vm419_vm5, %v4834_v2 }
 0x564   :  { %3838 = vmatprep.mubr.msk.f32.mxu1 %vm4611_vm0, %v4612_v1 }
 0x567   :  { %3839 = vmatmul.mubr.msk.f32.gmra.mrb[32].mxu1 %vm419_vm5, %v4824_v61 }
 0x568   :  { %3861 = vmatpush3.xpose.msk.msra.mxu1 %vm419_vm5, %v1146_v47  ;;  %3862 = vmatprep.mubr.msk.f32.mxu1 %vm4611_vm0, %v4612_v1 }
 0x569   :  { %4226 = vmatprep.subr.bf16.mxu1 %v4610_v0 }
 0x56b   :  { %3863 = vmatmul.mubr.msk.f32.vlgmr.msra.gmra.mrb[34].mxu1 %vm419_vm5, %v1136_v48 }
 0x56c   :  { %3865 = vmatprep.mubr.msk.f32.mxu1 %vm4611_vm0, %v4612_v1 }
 0x56f   :  { %3866 = vmatmul.mubr.msk.f32.gmra.mrb[36].mxu1 %vm419_vm5, %v1138_v49 }
 0x570   :  { %3868 = vmatprep.mubr.msk.f32.mxu1 %vm4611_vm0, %v4612_v1 }
 0x573   :  { %3869 = vmatmul.mubr.msk.f32.gmra.mrb[38].mxu1 %vm419_vm5, %v1140_v50 }
 0x574   :  { %3894 = vmatprep.mubr.msk.f32.mxu1 %vm4611_vm0, %v4612_v1 }
 0x5e9   :  { %v4923_v51 = vpop.f32.mrb[16].mxu1 }
 0x5ea   :  { %v3789_v53 = vpop.f32.mrb[17].mxu1 }
 0x5ed   :  { %v4925_v54 = vpop.f32.mrb[18].mxu1 }
 0x5ee   :  { %v3792_v55 = vpop.f32.mrb[19].mxu1 }
 0x622   :  { %v4927_v56 = vpop.f32.mrb[20].mxu1 }
 0x623   :  { %v3795_v57 = vpop.f32.mrb[21].mxu1 }
 0x626   :  { %v736_v58 = vpop.f32.mrb[22].mxu1 }
 0x627   :  { %v3804_v60 = vpop.f32.mrb[23].mxu1  ;;  %v750_v62 = vsel %vm512_vm7, %v736_v58, -inf }
 0x628   :  { %751 = vmax.xlane.f32.xlu0 %v750_v62 }
 0x62a   :  { %v741_v63 = vpop.f32.mrb[24].mxu1 }
 0x62b   :  { %v3807_v2 = vpop.f32.mrb[25].mxu1  ;;  %v753_v3 = vsel %vm512_vm7, %v741_v63, -inf }
 0x62c   :  { %754 = vmax.xlane.f32.xlu1 %v753_v3 }
 0x62e   :  { %v746_v5 = vpop.f32.mrb[26].mxu1 }
 0x62f   :  { %v3810_v6 = vpop.f32.mrb[27].mxu1  ;;  %v756_v7 = vsel %vm519_vm8, %v746_v5, -inf }
 0x630   :  { %757 = vmax.xlane.f32.xlu0 %v756_v7 }
 0x632   :  { %v989_v8 = vpop.f32.mrb[28].mxu1 }
 0x633   :  { %v3834_v9 = vpop.f32.mrb[29].mxu1  ;;  %v1003_v10 = vsel %vm512_vm7, %v989_v8, -inf }
 0x634   :  { %1004 = vmax.xlane.f32.xlu0 %v1003_v10 }
 0x636   :  { %v994_v11 = vpop.f32.mrb[30].mxu1 }
 0x637   :  { %v3837_v12 = vpop.f32.mrb[31].mxu1  ;;  %v1006_v13 = vsel %vm512_vm7, %v994_v11, -inf }
 0x638   :  { %1007 = vmax.xlane.f32.xlu0 %v1006_v13 }
 0x63a   :  { %v999_v14 = vpop.f32.mrb[32].mxu1 }
 0x63b   :  { %v3840_v15 = vpop.f32.mrb[33].mxu1  ;;  %v1009_v16 = vsel %vm519_vm8, %v999_v14, -inf }
 0x63c   :  { %1010 = vmax.xlane.f32.xlu1 %v1009_v16 }
 0x63e   :  { %v1225_v17 = vpop.f32.mrb[34].mxu1 }
 0x63f   :  { %v3864_v18 = vpop.f32.mrb[35].mxu1  ;;  %v1239_v19 = vsel %vm512_vm7, %v1225_v17, -inf }
 0x640   :  { %1240 = vmax.xlane.f32.xlu0 %v1239_v19 }
 0x642   :  { %v4936_v20 = vpop.f32.mrb[36].mxu1 }
 0x643   :  { %v3867_v22 = vpop.f32.mrb[37].mxu1  ;;  %v1242_v24 = vsel %vm512_vm7, %v4936_v20, -inf }
 0x644   :  { %1243 = vmax.xlane.f32.xlu1 %v1242_v24 }
 0x646   :  { %v1235_v25 = vpop.f32.mrb[38].mxu1 }
 0x647   :  { %v3870_v26 = vpop.f32.mrb[39].mxu1  ;;  %v1245_v27 = vsel %vm519_vm8, %v1235_v25, -inf }
 0x648   :  { %1246 = vmax.xlane.f32.xlu0 %v1245_v27 }
 0x655   :  { %787 = vrot.lane.b32.xlu1 %v4786_v23, %s4617_s25 }
 0x659   :  { %4372 = vrot.lane.b32.xlu1 %v4843_v4, %s4614_s22 }
 0x65e   :  { %4367 = vrot.lane.b32.xlu0 %v4784_v21, %s4617_s25 }
 0x6b5   :  { %v752_v29 = vpop.xlane.xlu0 %751 }
 0x6b6   :  { %v759_v30 = vsub.f32 %v736_v58, %v752_v29 }
 0x6b8   :  { %v762_v31 = vmul.f32 1.442695, %v759_v30 }
 0x6b9   :  { %v755_v32 = vpop.xlane.xlu1 %754 }
 0x6ba   :  { %4443 = vpow2.f32 %v762_v31  ;;  %v760_v33 = vsub.f32 %v741_v63, %v755_v32 }
 0x6bc   :  { %v764_v34 = vmul.f32 1.442695, %v760_v33 }
 0x6bd   :  { %v758_v37 = vpop.xlane.xlu0 %757 }
 0x6be   :  { %4445 = vpow2.f32 %v764_v34  ;;  %v761_v38 = vsub.f32 %v746_v5, %v758_v37 }
 0x6c0   :  { %v766_v39 = vmul.f32 1.442695, %v761_v38 }
 0x6c1   :  { %v1005_v40 = vpop.xlane.xlu0 %1004 }
 0x6c2   :  { %4447 = vpow2.f32 %v766_v39  ;;  %v1012_v23 = vsub.f32 %v989_v8, %v1005_v40 }
 0x6c4   :  { %v4947_v41 = vpop.eup %4443  ;;  %v1015_v42 = vmul.f32 1.442695, %v1012_v23 }
 0x6c5   :  { %v1008_v43 = vpop.xlane.xlu0 %1007  ;;  %v768_v21 = vsel %vm512_vm7, %v4947_v41, 0.0 }
 0x6c6   :  { %4449 = vpow2.f32 %v1015_v42  ;;  %v1013_v45 = vsub.f32 %v994_v11, %v1008_v43  ;;  %769 = vadd.xlane.f32.xlu1 %v768_v21 }
 0x6c8   :  { %v4951_v46 = vpop.eup %4445  ;;  %v1017_v47 = vmul.f32 1.442695, %v1013_v45 }
 0x6c9   :  { %v1011_v48 = vpop.xlane.xlu1 %1010  ;;  %v771_v49 = vsel %vm512_vm7, %v4951_v46, 0.0 }
 0x6ca   :  { %4451 = vpow2.f32 %v1017_v47  ;;  %v1014_v50 = vsub.f32 %v999_v14, %v1011_v48  ;;  %772 = vadd.xlane.f32.xlu0 %v771_v49 }
 0x6cc   :  { %v4955_v53 = vpop.eup %4447  ;;  %v1019_v55 = vmul.f32 1.442695, %v1014_v50 }
 0x6cd   :  { %v1241_v57 = vpop.xlane.xlu0 %1240  ;;  %v774_v58 = vsel %vm519_vm8, %v4955_v53, 0.0 }
 0x6ce   :  { %4453 = vpow2.f32 %v1019_v55  ;;  %v1248_v60 = vsub.f32 %v1225_v17, %v1241_v57  ;;  %775 = vadd.xlane.f32.xlu1 %v774_v58 }
 0x6d0   :  { %v4959_v62 = vpop.eup %4449  ;;  %v1251_v63 = vmul.f32 1.442695, %v1248_v60 }
 0x6d1   :  { %v1021_v2 = vsel %vm512_vm7, %v4959_v62, 0.0  ;;  %v1244_v15 = vpop.xlane.xlu1 %1243 }
 0x6d2   :  { %4455 = vpow2.f32 %v1251_v63  ;;  %1022 = vadd.xlane.f32.xlu0 %v1021_v2  ;;  %v1249_v24 = vsub.f32 %v4936_v20, %v1244_v15 }
 0x6d4   :  { %v4963_v3 = vpop.eup %4451 }
 0x6d5   :  { %v1247_v5 = vpop.xlane.xlu0 %1246  ;;  %v1024_v6 = vsel %vm512_vm7, %v4963_v3, 0.0  ;;  %v788_v18 = vpop.permute.xlu1 %787 }
 0x6d6   :  { %v1250_v7 = vsub.f32 %v1235_v25, %v1247_v5  ;;  %1025 = vadd.xlane.f32.xlu1 %v1024_v6  ;;  %v1253_v25 = vmul.f32 1.442695, %v1249_v24 }
 0x6d8   :  { %v4967_v8 = vpop.eup %4453  ;;  %v1255_v9 = vmul.f32 1.442695, %v1250_v7 }
 0x6d9   :  { %v4368_v10 = vpop.permute.xlu0 %4367  ;;  %v1027_v11 = vsel %vm519_vm8, %v4967_v8, 0.0  ;;  %v4373_v29 = vpop.permute.xlu1 %4372 }
 0x6da   :  { %4457 = vpow2.f32 %v1255_v9  ;;  %v4370_v12 = vunpack.i.h.bf16 %v4368_v10  ;;  %1028 = vadd.xlane.f32.xlu1 %v1027_v11  ;;  %v4369_v13 = vunpack.i.l.bf16 %v4368_v10  ;;  %v4375_v32 = vunpack.i.h.bf16 %v4373_v29 }
 0x6db   :  { %4459 = vpow2.f32 %v1253_v25  ;;  %v4374_v33 = vunpack.i.l.bf16 %v4373_v29 }
 0x6dc   :  { %v4971_v14 = vpop.eup %4455  ;;  %v4210_v16 = vpack.c.bf16 %v4370_v12, %v4369_v13 }
 0x6dd   :  { %v1257_v17 = vsel %vm512_vm7, %v4971_v14, 0.0  ;;  %v4217_v38 = vpack.c.bf16 %v4375_v32, %v4374_v33 }
 0x6de   :  { %1258 = vadd.xlane.f32.xlu1 %v1257_v17  ;;  %4211 = vmatpush3.bf16.msra.mxu0 %v4210_v16 }
 0x6df   :  { %3815 = vmatprep.subr.mxu0 %v4612_v1 }
 0x6e2   :  { %3816 = vmatpush3.msk.msra.mxu0 %vm39_vm2, %v788_v18 }
 0x6e3   :  { %4216 = vmatprep.subr.bf16.mxu0 %v4610_v0 }
 0x6e4   :  { %v4977_v19 = vpop.eup %4457 }
 0x6e5   :  { %v1263_v22 = vsel %vm519_vm8, %v4977_v19, 0.0  ;;  %v4987_v26 = vpop.eup %4459 }
 0x6e6   :  { %1264 = vadd.xlane.f32.xlu1 %v1263_v22  ;;  %v1260_v27 = vsel %vm512_vm7, %v4987_v26, 0.0 }
 0x6e8   :  { %1040 = vrot.lane.b32.xlu0 %v4824_v61, %s4614_s22 }
 0x6f7   :  { %4377 = vrot.lane.b32.xlu1 %v4843_v4, %s4617_s25 }
 0x707   :  { %1261 = vadd.xlane.f32.xlu0 %v1260_v27 }
 0x71d   :  { %1276 = vrot.lane.b32.xlu0 %v4824_v61, %s4617_s25 }
 0x753   :  { %v770_v30 = vpop.xlane.xlu1 %769 }
 0x754   :  { %4461 = vrcp.f32 %v770_v30 }
 0x757   :  { %v773_v31 = vpop.xlane.xlu0 %772 }
 0x758   :  { %4463 = vrcp.f32 %v773_v31 }
 0x75b   :  { %v776_v20 = vpop.xlane.xlu1 %775 }
 0x75c   :  { %4465 = vrcp.f32 %v776_v20 }
 0x75e   :  { %v4462_v4 = vpop.eup %4461 }
 0x75f   :  { %v780_v34 = vmul.f32 %v4462_v4, %v4947_v41  ;;  %v1023_v37 = vpop.xlane.xlu0 %1022 }
 0x760   :  { %4467 = vrcp.f32 %v1023_v37 }
 0x761   :  { %3818 = vmatmul.mubr.msk.f32.vlgmr.msra.gmra.mrb[10].mxu0 %vm512_vm7, %v780_v34 }
 0x762   :  { %v4464_v39 = vpop.eup %4463  ;;  %4218 = vmatpush3.bf16.msra.mxu0 %v4217_v38  ;;  %3820 = vmatprep.mubr.msk.f32.mxu0 %vm4611_vm0, %v4612_v1 }
 0x763   :  { %v1026_v61 = vpop.xlane.xlu1 %1025  ;;  %v1041_v40 = vpop.permute.xlu0 %1040  ;;  %3845 = vmatprep.subr.mxu0 %v4612_v1  ;;  %v781_v23 = vmul.f32 %v4464_v39, %v4951_v46 }
 0x764   :  { %4469 = vrcp.f32 %v1026_v61 }
 0x765   :  { %3821 = vmatmul.mubr.msk.f32.gmra.mrb[12].mxu0 %vm512_vm7, %v781_v23  ;;  %v179_v23 = vld [vmem:[#allocation2 + $0x68] sm:$0xff] }
 0x766   :  { %v4466_v41 = vpop.eup %4465  ;;  %3846 = vmatpush3.msk.msra.mxu0 %vm39_vm2, %v1041_v40  ;;  %3823 = vmatprep.mubr.msk.f32.mxu0 %vm4611_vm0, %v4612_v1  ;;  %v178_v40 = vld [vmem:[#allocation2 + $0x60] sm:$0xff] }
 0x767   :  { %v1029_v42 = vpop.xlane.xlu1 %1028  ;;  %v782_v43 = vmul.f32 %v4466_v41, %v4955_v53  ;;  %4223 = vmatprep.subr.bf16.mxu0 %v4610_v0  ;;  %v181_v41 = vld [vmem:[#allocation2 + $0x78] sm:$0xff] }
 0x768   :  { %4471 = vrcp.f32 %v1029_v42 }
 0x769   :  { %3824 = vmatmul.mubr.msk.f32.gmra.mrb[14].mxu0 %vm512_vm7, %v782_v43 }
 0x76a   :  { %v4468_v21 = vpop.eup %4467  ;;  %3847 = vmatprep.mubr.msk.f32.mxu0 %vm4611_vm0, %v4612_v1 }
 0x76b   :  { %v1033_v45 = vmul.f32 %v4468_v21, %v4959_v62  ;;  %v1259_v47 = vpop.xlane.xlu1 %1258 }
 0x76c   :  { %4473 = vrcp.f32 %v1259_v47 }
 0x76d   :  { %3848 = vmatmul.mubr.msk.f32.vlgmr.msra.gmra.mrb[16].mxu0 %vm512_vm7, %v1033_v45 }
 0x76e   :  { %v4470_v46 = vpop.eup %4469  ;;  %3850 = vmatprep.mubr.msk.f32.mxu0 %vm4611_vm0, %v4612_v1 }
 0x76f   :  { %v1034_v48 = vmul.f32 %v4470_v46, %v4963_v3 }
 0x771   :  { %3851 = vmatmul.mubr.msk.f32.gmra.mrb[18].mxu0 %vm512_vm7, %v1034_v48 }
 0x772   :  { %v4472_v49 = vpop.eup %4471  ;;  %3853 = vmatprep.mubr.msk.f32.mxu0 %vm4611_vm0, %v4612_v1 }
 0x773   :  { %v1265_v50 = vpop.xlane.xlu1 %1264  ;;  %v1035_v53 = vmul.f32 %v4472_v49, %v4967_v8 }
 0x775   :  { %3854 = vmatmul.mubr.msk.f32.gmra.mrb[20].mxu0 %vm512_vm7, %v1035_v53 }
 0x776   :  { %3877 = vmatprep.mubr.msk.f32.mxu0 %vm4611_vm0, %v4612_v1  ;;  %v4474_v63 = vpop.eup %4473 }
 0x777   :  { %v4378_v55 = vpop.permute.xlu1 %4377  ;;  %v1269_v2 = vmul.f32 %v4474_v63, %v4971_v14 }
 0x778   :  { %v4380_v57 = vunpack.i.h.bf16 %v4378_v55  ;;  %v4379_v58 = vunpack.i.l.bf16 %v4378_v55 }
 0x77a   :  { %v4224_v60 = vpack.c.bf16 %v4380_v57, %v4379_v58 }
 0x77c   :  { %4225 = vmatpush3.bf16.msra.mxu0 %v4224_v60 }
 0x77d   :  { %3875 = vmatprep.subr.mxu0 %v4612_v1 }
 0x794   :  { %v1262_v62 = vpop.xlane.xlu0 %1261 }
 0x795   :  { %4475 = vrcp.f32 %v1262_v62 }
 0x796   :  { %4477 = vrcp.f32 %v1265_v50 }
 0x798   :  { %v1277_v3 = vpop.permute.xlu0 %1276 }
 0x799   :  { %3876 = vmatpush3.msk.msra.mxu0 %vm39_vm2, %v1277_v3 }
 0x79a   :  { %3878 = vmatmul.mubr.msk.f32.vlgmr.msra.gmra.mrb[22].mxu0 %vm512_vm7, %v1269_v2  ;;  %4232 = vmatprep.subr.bf16.mxu0 %v4610_v0 }
 0x79b   :  { %3880 = vmatprep.mubr.msk.f32.mxu0 %vm4611_vm0, %v4612_v1 }
 0x79f   :  { %v4476_v5 = vpop.eup %4475 }
 0x7a0   :  { %v1270_v6 = vmul.f32 %v4476_v5, %v4987_v26  ;;  %v4478_v7 = vpop.eup %4477 }
 0x7a1   :  { %v1271_v8 = vmul.f32 %v4478_v7, %v4977_v19 }
 0x7a2   :  { %3881 = vmatmul.mubr.msk.f32.gmra.mrb[24].mxu0 %vm512_vm7, %v1270_v6 }
 0x7a3   :  { %3883 = vmatprep.mubr.msk.f32.mxu0 %vm4611_vm0, %v4612_v1 }
 0x7a6   :  { %3884 = vmatmul.mubr.msk.f32.gmra.mrb[26].mxu0 %vm512_vm7, %v1271_v8 }
 0x7a7   :  { %3941 = vmatprep.mubr.msk.f32.mxu0 %vm4611_vm0, %v4612_v1 }
 0x834   :  { %v868_v9 = vpop.f32.mrb[10].mxu0 }
 0x835   :  { %885 = vrot.lane.b32.xlu0 %v868_v9, %s4618_s1  ;;  %v3819_v10 = vpop.f32.mrb[11].mxu0 }
 0x838   :  { %v873_v11 = vpop.f32.mrb[12].mxu0 }
 0x839   :  { %887 = vrot.lane.b32.xlu1 %v873_v11, %s4618_s1  ;;  %v3822_v12 = vpop.f32.mrb[13].mxu0  ;;  %v182_v11 = vld [vmem:[#allocation2 + $0x80] sm:$0xff] }
 0x83a   :  { %v183_v12 = vld [vmem:[#allocation2 + $0x88] sm:$0xff] }
 0x83c   :  { %v878_v13 = vpop.f32.mrb[14].mxu0 }
 0x83d   :  { %889 = vrot.lane.b32.xlu1 %v878_v13, %s4618_s1  ;;  %v3825_v14 = vpop.f32.mrb[15].mxu0  ;;  %v184_v13 = vld [vmem:[#allocation2 + $0x90] sm:$0xff] }
 0x83e   :  { %v4233_v14 = vpack.c.bf16 %v183_v12, %v182_v11 }
 0x840   :  { %v1121_v15 = vpop.f32.mrb[16].mxu0  ;;  %4234 = vmatpush3.bf16.msra.mxu0 %v4233_v14 }
 0x841   :  { %v3849_v16 = vpop.f32.mrb[17].mxu0  ;;  %4235 = vmatprep.subr.bf16.mxu0 %v4610_v0 }
 0x842   :  { %v186_v16 = vld [vmem:[#allocation2 + $0xa0] sm:$0xff] }
 0x844   :  { %v1126_v17 = vpop.f32.mrb[18].mxu0 }
 0x845   :  { %v3852_v18 = vpop.f32.mrb[19].mxu0 }
 0x848   :  { %v1131_v19 = vpop.f32.mrb[20].mxu0 }
 0x849   :  { %v3855_v22 = vpop.f32.mrb[21].mxu0 }
 0x84a   :  { %v189_v22 = vld [vmem:[#allocation2 + $0xb8] sm:$0xff] }
 0x86d   :  { %v1357_v24 = vpop.f32.mrb[22].mxu0 }
 0x86e   :  { %1374 = vrot.lane.b32.xlu0 %v1357_v24, %s4618_s1  ;;  %v3879_v25 = vpop.f32.mrb[23].mxu0 }
 0x86f   :  { %v190_v25 = vld [vmem:[#allocation2 + $0xc0] sm:$0xff] }
 0x875   :  { %v1362_v26 = vpop.f32.mrb[24].mxu0 }
 0x876   :  { %1376 = vrot.lane.b32.xlu0 %v1362_v26, %s4618_s1  ;;  %v3882_v27 = vpop.f32.mrb[25].mxu0  ;;  %v191_v26 = vld [vmem:[#allocation2 + $0xc8] sm:$0xff] }
 0x877   :  { %v4245_v27 = vpack.c.bf16 %v191_v26, %v190_v25 }
 0x879   :  { %v1367_v29 = vpop.f32.mrb[26].mxu0 }
 0x87a   :  { %1378 = vrot.lane.b32.xlu1 %v1367_v29, %s4618_s1  ;;  %v3885_v30 = vpop.f32.mrb[27].mxu0  ;;  %v192_v29 = vld [vmem:[#allocation2 + $0xd0] sm:$0xff] }
 0x87b   :  { %v193_v30 = vld [vmem:[#allocation2 + $0xd8] sm:$0xff] }
 0x8a7   :  { %v886_v31 = vpop.permute.xlu0 %885 }
 0x8a8   :  { %v894_v20 = vsel %vm419_vm5, %v4923_v51, %v886_v31  ;;  %v4248_v31 = vpack.c.bf16 %v193_v30, %v192_v29 }
 0x8a9   :  { %v5044_v32 = vadd.f32 %v894_v20, %v4703_v28  ;;  %v194_v20 = vld [vmem:[#allocation2 + $0xe0] sm:$0xff] }
 0x8ab   :  { %v888_v33 = vpop.permute.xlu1 %887  ;;  %v1403_v4 = vsel %vm205_vm3, %v5044_v32, 0.0  ;;  %v1423_v34 = vmul.f32 %v5044_v32, %v5044_v32 }
 0x8ac   :  { %v895_v37 = vsel %vm419_vm5, %v4925_v54, %v888_v33  ;;  %1404 = vadd.xlane.f32.xlu0 %v1403_v4  ;;  %v4227_v54 = vpack.c.bf16 %v179_v23, %v178_v40  ;;  %v195_v33 = vld [vmem:[#allocation2 + $0xe8] sm:$0xff] }
 0x8ad   :  { %v5053_v38 = vadd.f32 %v895_v37, %v4715_v36  ;;  %v1428_v39 = vsel %vm205_vm3, %v1423_v34, 0.0  ;;  %v180_v36 = vld [vmem:[#allocation2 + $0x70] sm:$0xff]  ;;  %v4251_v4 = vpack.c.bf16 %v195_v33, %v194_v20 }
 0x8ae   :  { %1429 = vadd.xlane.f32.xlu1 %v1428_v39  ;;  %4228 = vmatpush3.bf16.msra.mxu1 %v4227_v54  ;;  %v4230_v42 = vpack.c.bf16 %v181_v41, %v180_v36 }
 0x8af   :  { %v1406_v28 = vsel %vm205_vm3, %v5053_v38, 0.0  ;;  %v1424_v51 = vmul.f32 %v5053_v38, %v5053_v38  ;;  %4229 = vmatprep.subr.bf16.mxu1 %v4610_v0  ;;  %v890_v43 = vpop.permute.xlu1 %889 }
 0x8b0   :  { %1407 = vadd.xlane.f32.xlu0 %v1406_v28  ;;  %v896_v47 = vsel %vm419_vm5, %v4927_v56, %v890_v43 }
 0x8b1   :  { %v1431_v61 = vsel %vm205_vm3, %v1424_v51, 0.0 }
 0x8b2   :  { %4231 = vmatpush3.bf16.msra.mxu1 %v4230_v42 }
 0x8b3   :  { %4256 = vmatprep.subr.bf16.mxu1 %v4610_v0 }
 0x8b4   :  { %1432 = vadd.xlane.f32.xlu0 %v1431_v61 }
 0x8e0   :  { %v1375_v21 = vpop.permute.xlu0 %1374 }
 0x8e1   :  { %v1383_v45 = vsel %vm419_vm5, %v1121_v15, %v1375_v21  ;;  %v185_v15 = vld [vmem:[#allocation2 + $0x98] sm:$0xff] }
 0x8e2   :  { %v1389_v46 = vrot.slane %v1383_v45, 7  ;;  %v3448_v45 = vld [vmem:[%s5633_s2 + $0x14] ss:$0 sm:$0xff] }
 0x8e4   :  { %v1397_v48 = vsel %vm39_vm2, %v896_v47, %v1389_v46 }
 0x8e5   :  { %v5068_v49 = vadd.f32 %v1397_v48, %v4723_v44 }
 0x8e7   :  { %v1409_v50 = vsel %vm205_vm3, %v5068_v49, 0.0  ;;  %v1425_v53 = vmul.f32 %v5068_v49, %v5068_v49 }
 0x8e8   :  { %1410 = vadd.xlane.f32.xlu0 %v1409_v50  ;;  %v1377_v55 = vpop.permute.xlu0 %1376  ;;  %v3449_v50 = vld [vmem:[%s5633_s2 + $0x15] ss:$0 sm:$0xff] }
 0x8e9   :  { %v1384_v57 = vsel %vm419_vm5, %v1126_v17, %v1377_v55  ;;  %v1434_v58 = vsel %vm205_vm3, %v1425_v53, 0.0  ;;  %v187_v17 = vld [vmem:[#allocation2 + $0xa8] sm:$0xff] }
 0x8ea   :  { %v1390_v60 = vrot.slane %v1384_v57, 7  ;;  %1435 = vadd.xlane.f32.xlu1 %v1434_v58  ;;  %v4239_v18 = vpack.c.bf16 %v187_v17, %v186_v16 }
 0x8ec   :  { %v1391_v56 = vsel %vm39_vm2, %v1389_v46, %v1390_v60  ;;  %v1379_v62 = vpop.permute.xlu1 %1378 }
 0x8ed   :  { %v5078_v44 = vadd.f32 %v1391_v56, %v4731_v52  ;;  %v1385_v63 = vsel %vm419_vm5, %v1131_v19, %v1379_v62  ;;  %v188_v19 = vld [vmem:[#allocation2 + $0xb0] sm:$0xff] }
 0x8ee   :  { %v1392_v2 = vrot.slane %v1385_v63, 7  ;;  %v4242_v24 = vpack.c.bf16 %v189_v22, %v188_v19 }
 0x8ef   :  { %v1412_v3 = vsel %vm205_vm3, %v5078_v44, 0.0  ;;  %v1426_v5 = vmul.f32 %v5078_v44, %v5078_v44 }
 0x8f0   :  { %v1393_v6 = vsel %vm39_vm2, %v1390_v60, %v1392_v2  ;;  %1413 = vadd.xlane.f32.xlu0 %v1412_v3 }
 0x8f1   :  { %v5087_v7 = vadd.f32 %v1393_v6, %v4739_v59  ;;  %v1437_v8 = vsel %vm205_vm3, %v1426_v5, 0.0  ;;  %v4236_v59 = vpack.c.bf16 %v185_v15, %v184_v13 }
 0x8f2   :  { %1438 = vadd.xlane.f32.xlu1 %v1437_v8 }
 0x8f3   :  { %v1415_v52 = vsel %vm218_vm4, %v5087_v7, 0.0  ;;  %v1427_v9 = vmul.f32 %v5087_v7, %v5087_v7  ;;  %4237 = vmatpush3.bf16.msra.mxu0 %v4236_v59 }
 0x8f4   :  { %1416 = vadd.xlane.f32.xlu0 %v1415_v52  ;;  %4238 = vmatprep.subr.bf16.mxu0 %v4610_v0 }
 0x8f5   :  { %v1440_v10 = vsel %vm218_vm4, %v1427_v9, 0.0 }
 0x8f6   :  { %1441 = vadd.xlane.f32.xlu1 %v1440_v10 }
 0x8f7   :  { %4240 = vmatpush3.bf16.msra.mxu0 %v4239_v18 }
 0x8f8   :  { %4241 = vmatprep.subr.bf16.mxu0 %v4610_v0 }
 0x8fb   :  { %4243 = vmatpush3.bf16.msra.mxu0 %v4242_v24 }
 0x8fc   :  { %4244 = vmatprep.subr.bf16.mxu0 %v4610_v0 }
 0x8ff   :  { %4246 = vmatpush3.bf16.msra.mxu0 %v4245_v27 }
 0x900   :  { %4247 = vmatprep.subr.bf16.mxu0 %v4610_v0 }
 0x903   :  { %4249 = vmatpush3.bf16.msra.mxu0 %v4248_v31 }
 0x904   :  { %4250 = vmatprep.subr.bf16.mxu0 %v4610_v0 }
 0x907   :  { %4252 = vmatpush3.bf16.msra.mxu0 %v4251_v4 }
 0x908   :  { %4253 = vmatprep.subr.bf16.mxu0 %v4610_v0 }
 0x939   :  { %v1405_v34 = vpop.xlane.xlu0 %1404 }
 0x93a   :  { %v1418_v37 = vmul.f32 0.03125, %v1405_v34 }
 0x93b   :  { %v1430_v39 = vpop.xlane.xlu1 %1429 }
 0x93c   :  { %v1448_v28 = vmul.f32 %v1418_v37, %v1418_v37  ;;  %v1443_v51 = vmul.f32 0.03125, %v1430_v39  ;;  %v1468_v47 = vsub.f32 %v5044_v32, %v1418_v37 }
 0x93d   :  { %v1408_v61 = vpop.xlane.xlu0 %1407 }
 0x93e   :  { %v1453_v40 = vsub.f32 %v1443_v51, %v1448_v28  ;;  %v1419_v23 = vmul.f32 0.03125, %v1408_v61 }
 0x940   :  { %v1458_v54 = vadd.f32 1e-05, %v1453_v40  ;;  %v1449_v41 = vmul.f32 %v1419_v23, %v1419_v23  ;;  %v1469_v58 = vsub.f32 %v5053_v38, %v1419_v23  ;;  %v196_v40 = vld [vmem:[#allocation2 + $0xf0] sm:$0xff]  ;;  %v197_v23 = vld [vmem:[#allocation2 + $0xf8] sm:$0xff] }
 0x941   :  { %v1433_v36 = vpop.xlane.xlu0 %1432 }
 0x942   :  { %4479 = vrsqrt.f32 %v1458_v54  ;;  %v1444_v42 = vmul.f32 0.03125, %v1433_v36  ;;  %v4254_v54 = vpack.c.bf16 %v197_v23, %v196_v40  ;;  %v3450_v36 = vld [vmem:[%s5633_s2 + $0x16] ss:$0 sm:$0xff] }
 0x944   :  { %v1454_v43 = vsub.f32 %v1444_v42, %v1449_v41  ;;  %4255 = vmatpush3.bf16.msra.mxu0 %v4254_v54 }
 0x945   :  { %4266 = vmatprep.subr.bf16.mxu0 %v4610_v0 }
 0x946   :  { %v1459_v21 = vadd.f32 1e-05, %v1454_v43 }
 0x948   :  { %4481 = vrsqrt.f32 %v1459_v21 }
 0x94c   :  { %v4480_v46 = vpop.eup %4479 }
 0x94d   :  { %v1477_v48 = vmul.f32 %v4480_v46, %v3448_v45 }
 0x94f   :  { %v1482_v53 = vmul.f32 %v1477_v48, %v1468_v47 }
 0x951   :  { %v1491_v55 = vadd.f32 %v3449_v50, %v1482_v53 }
 0x952   :  { %v4482_v57 = vpop.eup %4481 }
 0x953   :  { %3895 = vmatmul.mubr.msk.f32.vlgmr.msra.gmra.mrb[40].mxu1 %vm205_vm3, %v1491_v55  ;;  %v1478_v60 = vmul.f32 %v4482_v57, %v3448_v45 }
 0x954   :  { %3897 = vmatprep.mubr.msk.f32.mxu1 %vm4611_vm0, %v4612_v1 }
 0x955   :  { %v1483_v56 = vmul.f32 %v1478_v60, %v1469_v58 }
 0x957   :  { %v1492_v62 = vadd.f32 %v3449_v50, %v1483_v56 }
 0x959   :  { %3898 = vmatmul.mubr.msk.f32.gmra.mrb[42].mxu1 %vm205_vm3, %v1492_v62 }
 0x95a   :  { %3900 = vmatprep.mubr.msk.f32.mxu1 %vm4611_vm0, %v4612_v1 }
 0x975   :  { %v1411_v63 = vpop.xlane.xlu0 %1410 }
 0x976   :  { %v1420_v2 = vmul.f32 0.03125, %v1411_v63 }
 0x977   :  { %v1436_v3 = vpop.xlane.xlu1 %1435 }
 0x978   :  { %v1450_v5 = vmul.f32 %v1420_v2, %v1420_v2  ;;  %v1445_v6 = vmul.f32 0.03125, %v1436_v3  ;;  %v1470_v26 = vsub.f32 %v5068_v49, %v1420_v2 }
 0x97a   :  { %v1455_v8 = vsub.f32 %v1445_v6, %v1450_v5  ;;  %v3456_v6 = vld [vmem:[%s5633_s2 + $0x17] ss:$0 sm:$0xff] }
 0x97c   :  { %v1460_v52 = vadd.f32 1e-05, %v1455_v8 }
 0x97d   :  { %v1414_v9 = vpop.xlane.xlu0 %1413 }
 0x97e   :  { %4483 = vrsqrt.f32 %v1460_v52  ;;  %v1421_v10 = vmul.f32 0.03125, %v1414_v9 }
 0x97f   :  { %v1439_v11 = vpop.xlane.xlu1 %1438 }
 0x980   :  { %v1451_v12 = vmul.f32 %v1421_v10, %v1421_v10  ;;  %v1446_v13 = vmul.f32 0.03125, %v1439_v11  ;;  %v1471_v20 = vsub.f32 %v5078_v44, %v1421_v10 }
 0x981   :  { %v1417_v14 = vpop.xlane.xlu0 %1416 }
 0x982   :  { %v1456_v15 = vsub.f32 %v1446_v13, %v1451_v12  ;;  %v1422_v59 = vmul.f32 0.03125, %v1417_v14 }
 0x983   :  { %v1442_v16 = vpop.xlane.xlu1 %1441 }
 0x984   :  { %v1461_v17 = vadd.f32 1e-05, %v1456_v15  ;;  %v1452_v18 = vmul.f32 %v1422_v59, %v1422_v59  ;;  %v1447_v19 = vmul.f32 0.03125, %v1442_v16  ;;  %v1472_v37 = vsub.f32 %v5087_v7, %v1422_v59 }
 0x986   :  { %4485 = vrsqrt.f32 %v1461_v17  ;;  %v1457_v22 = vsub.f32 %v1447_v19, %v1452_v18  ;;  %v1714_v19 = vld [vmem:[#allocation2 + $0x100] sm:$0xff] }
 0x988   :  { %v4484_v24 = vpop.eup %4483  ;;  %v1462_v25 = vadd.f32 1e-05, %v1457_v22  ;;  %v1715_v22 = vld [vmem:[#allocation2 + $0x108] sm:$0xff] }
 0x989   :  { %v1479_v27 = vmul.f32 %v4484_v24, %v3448_v45  ;;  %v4257_v24 = vpack.c.bf16 %v1715_v22, %v1714_v19 }
 0x98a   :  { %4487 = vrsqrt.f32 %v1462_v25  ;;  %v1717_v25 = vld [vmem:[#allocation2 + $0x118] sm:$0xff] }
 0x98b   :  { %v1484_v29 = vmul.f32 %v1479_v27, %v1470_v26  ;;  %4258 = vmatpush3.bf16.msra.mxu1 %v4257_v24 }
 0x98c   :  { %4259 = vmatprep.subr.bf16.mxu1 %v4610_v0 }
 0x98d   :  { %v1493_v30 = vadd.f32 %v3449_v50, %v1484_v29 }
 0x98f   :  { %3901 = vmatmul.mubr.msk.f32.gmra.mrb[44].mxu1 %vm205_vm3, %v1493_v30 }
 0x990   :  { %v4486_v31 = vpop.eup %4485  ;;  %3903 = vmatprep.mubr.msk.f32.mxu1 %vm4611_vm0, %v4612_v1 }
 0x991   :  { %v1480_v33 = vmul.f32 %v4486_v31, %v3448_v45 }
 0x993   :  { %v1485_v4 = vmul.f32 %v1480_v33, %v1471_v20 }
 0x994   :  { %v4488_v34 = vpop.eup %4487 }
 0x995   :  { %v1494_v39 = vadd.f32 %v3449_v50, %v1485_v4  ;;  %v1481_v28 = vmul.f32 %v4488_v34, %v3448_v45 }
 0x997   :  { %3904 = vmatmul.mubr.msk.f32.gmra.mrb[46].mxu1 %vm205_vm3, %v1494_v39  ;;  %v1486_v51 = vmul.f32 %v1481_v28, %v1472_v37 }
 0x998   :  { %3906 = vmatprep.mubr.msk.f32.mxu1 %vm4611_vm0, %v4612_v1 }
 0x999   :  { %v1495_v61 = vadd.f32 %v3449_v50, %v1486_v51 }
 0x99b   :  { %3907 = vmatmul.mubr.msk.f32.gmra.mrb[48].mxu1 %vm205_vm3, %v1495_v61 }
 0x99c   :  { %3964 = vmatprep.mubr.msk.f32.mxu1 %vm4611_vm0, %v4612_v1 }
 0xa26   :  { %v1581_v41 = vpop.f32.mrb[40].mxu1 }
 0xa27   :  { %v1582_v42 = vadd.f32 %v3450_v36, %v1581_v41  ;;  %v3896_v43 = vpop.f32.mrb[41].mxu1 }
 0xa29   :  { %v1605_v21 = vmax.f32 %v1582_v42, 0.0 }
 0xa2b   :  { %3942 = vmatmul.mubr.f32.vlgmr.msra.gmra.mrb[28].mxu0 %v1605_v21 }
 0xa2c   :  { %v1586_v45 = vpop.f32.mrb[42].mxu1  ;;  %3944 = vmatprep.mubr.msk.f32.mxu0 %vm4611_vm0, %v4612_v1 }
 0xa2d   :  { %v1587_v46 = vadd.f32 %v3450_v36, %v1586_v45  ;;  %v3899_v47 = vpop.f32.mrb[43].mxu1 }
 0xa2f   :  { %v1606_v48 = vmax.f32 %v1587_v46, 0.0 }
 0xa31   :  { %3945 = vmatmul.mubr.f32.gmra.mrb[30].mxu0 %v1606_v48 }
 0xa32   :  { %3947 = vmatprep.mubr.msk.f32.mxu0 %vm4611_vm0, %v4612_v1 }
 0xa62   :  { %v1591_v50 = vpop.f32.mrb[44].mxu1 }
 0xa63   :  { %v1592_v53 = vadd.f32 %v3450_v36, %v1591_v50  ;;  %v3902_v55 = vpop.f32.mrb[45].mxu1 }
 0xa65   :  { %v1607_v57 = vmax.f32 %v1592_v53, 0.0 }
 0xa67   :  { %3948 = vmatmul.mubr.f32.gmra.mrb[32].mxu0 %v1607_v57 }
 0xa68   :  { %3950 = vmatprep.mubr.msk.f32.mxu0 %vm4611_vm0, %v4612_v1 }
 0xa6a   :  { %v1596_v58 = vpop.f32.mrb[46].mxu1 }
 0xa6b   :  { %v1597_v60 = vadd.f32 %v3450_v36, %v1596_v58  ;;  %v3905_v56 = vpop.f32.mrb[47].mxu1 }
 0xa6d   :  { %v1608_v62 = vmax.f32 %v1597_v60, 0.0 }
 0xa6e   :  { %v1601_v63 = vpop.f32.mrb[48].mxu1 }
 0xa6f   :  { %v1602_v2 = vadd.f32 %v3450_v36, %v1601_v63  ;;  %v3908_v3 = vpop.f32.mrb[49].mxu1  ;;  %3951 = vmatmul.mubr.f32.gmra.mrb[34].mxu0 %v1608_v62  ;;  %v3457_v62 = vld [vmem:[%s5633_s2 + $0x18] ss:$0 sm:$0xff] }
 0xa70   :  { %3953 = vmatprep.mubr.msk.f32.mxu0 %vm4611_vm0, %v4612_v1 }
 0xa71   :  { %v1609_v5 = vmax.f32 %v1602_v2, 0.0 }
 0xa73   :  { %3954 = vmatmul.mubr.f32.gmra.mrb[36].mxu0 %v1609_v5  ;;  %v3458_v5 = vld [vmem:[%s5633_s2 + $0x19] ss:$0 sm:$0xff] }
 0xa74   :  { %4000 = vmatprep.mubr.msk.f32.mxu0 %vm4611_vm0, %v4612_v1 }
 0xafe   :  { %v1676_v8 = vpop.f32.mrb[28].mxu0 }
 0xaff   :  { %v1700_v52 = vadd.f32 %v1676_v8, %v5044_v32  ;;  %v3943_v9 = vpop.f32.mrb[29].mxu0 }
 0xb01   :  { %v5146_v10 = vadd.f32 %v3456_v6, %v1700_v52 }
 0xb03   :  { %v1745_v11 = vsel %vm205_vm3, %v5146_v10, 0.0  ;;  %v1765_v12 = vmul.f32 %v5146_v10, %v5146_v10 }
 0xb04   :  { %1746 = vadd.xlane.f32.xlu0 %v1745_v11  ;;  %v1681_v13 = vpop.f32.mrb[30].mxu0 }
 0xb05   :  { %v1701_v14 = vadd.f32 %v1681_v13, %v5053_v38  ;;  %v3946_v15 = vpop.f32.mrb[31].mxu0  ;;  %v1770_v59 = vsel %vm205_vm3, %v1765_v12, 0.0  ;;  %v1716_v38 = vld [vmem:[#allocation2 + $0x110] sm:$0xff] }
 0xb06   :  { %1771 = vadd.xlane.f32.xlu1 %v1770_v59  ;;  %v4260_v26 = vpack.c.bf16 %v1717_v25, %v1716_v38 }
 0xb07   :  { %v5154_v16 = vadd.f32 %v3456_v6, %v1701_v14 }
 0xb08   :  { %4261 = vmatpush3.bf16.msra.mxu1 %v4260_v26 }
 0xb09   :  { %v1748_v32 = vsel %vm205_vm3, %v5154_v16, 0.0  ;;  %v1766_v17 = vmul.f32 %v5154_v16, %v5154_v16  ;;  %4262 = vmatprep.subr.bf16.mxu1 %v4610_v0 }
 0xb0a   :  { %1749 = vadd.xlane.f32.xlu0 %v1748_v32 }
 0xb0b   :  { %v1773_v18 = vsel %vm205_vm3, %v1766_v17, 0.0 }
 0xb0c   :  { %1774 = vadd.xlane.f32.xlu1 %v1773_v18 }
 0xb3a   :  { %v1686_v27 = vpop.f32.mrb[32].mxu0 }
 0xb3b   :  { %v1702_v29 = vadd.f32 %v1686_v27, %v5068_v49  ;;  %v3949_v30 = vpop.f32.mrb[33].mxu0 }
 0xb3d   :  { %v5164_v31 = vadd.f32 %v3456_v6, %v1702_v29 }
 0xb3f   :  { %v1751_v20 = vsel %vm205_vm3, %v5164_v31, 0.0  ;;  %v1767_v33 = vmul.f32 %v5164_v31, %v5164_v31 }
 0xb40   :  { %1752 = vadd.xlane.f32.xlu0 %v1751_v20 }
 0xb41   :  { %v1776_v4 = vsel %vm205_vm3, %v1767_v33, 0.0 }
 0xb42   :  { %1777 = vadd.xlane.f32.xlu1 %v1776_v4  ;;  %v1691_v34 = vpop.f32.mrb[34].mxu0 }
 0xb43   :  { %v1703_v37 = vadd.f32 %v1691_v34, %v5078_v44  ;;  %v3952_v39 = vpop.f32.mrb[35].mxu0 }
 0xb45   :  { %v5172_v28 = vadd.f32 %v3456_v6, %v1703_v37 }
 0xb46   :  { %v1696_v49 = vpop.f32.mrb[36].mxu0 }
 0xb47   :  { %v1704_v51 = vadd.f32 %v1696_v49, %v5087_v7  ;;  %v3955_v61 = vpop.f32.mrb[37].mxu0  ;;  %v1754_v40 = vsel %vm205_vm3, %v5172_v28, 0.0  ;;  %v1768_v23 = vmul.f32 %v5172_v28, %v5172_v28 }
 0xb48   :  { %1755 = vadd.xlane.f32.xlu0 %v1754_v40 }
 0xb49   :  { %v5179_v54 = vadd.f32 %v3456_v6, %v1704_v51  ;;  %v1779_v36 = vsel %vm205_vm3, %v1768_v23, 0.0 }
 0xb4a   :  { %1780 = vadd.xlane.f32.xlu1 %v1779_v36 }
 0xb4b   :  { %v1757_v44 = vsel %vm218_vm4, %v5179_v54, 0.0  ;;  %v1769_v41 = vmul.f32 %v5179_v54, %v5179_v54 }
 0xb4c   :  { %1758 = vadd.xlane.f32.xlu0 %v1757_v44 }
 0xb4d   :  { %v1782_v7 = vsel %vm218_vm4, %v1769_v41, 0.0 }
 0xb4e   :  { %1783 = vadd.xlane.f32.xlu1 %v1782_v7 }
 0xb91   :  { %v1747_v42 = vpop.xlane.xlu0 %1746 }
 0xb92   :  { %v1760_v43 = vmul.f32 0.03125, %v1747_v42 }
 0xb93   :  { %v1772_v21 = vpop.xlane.xlu1 %1771 }
 0xb94   :  { %v1790_v45 = vmul.f32 %v1760_v43, %v1760_v43  ;;  %v1785_v46 = vmul.f32 0.03125, %v1772_v21  ;;  %v1810_v2 = vsub.f32 %v5146_v10, %v1760_v43 }
 0xb96   :  { %v1795_v47 = vsub.f32 %v1785_v46, %v1790_v45 }
 0xb97   :  { %v1750_v48 = vpop.xlane.xlu0 %1749 }
 0xb98   :  { %v1800_v50 = vadd.f32 1e-05, %v1795_v47  ;;  %v1761_v53 = vmul.f32 0.03125, %v1750_v48 }
 0xb99   :  { %v1775_v55 = vpop.xlane.xlu1 %1774 }
 0xb9a   :  { %4489 = vrsqrt.f32 %v1800_v50  ;;  %v1791_v57 = vmul.f32 %v1761_v53, %v1761_v53  ;;  %v1786_v58 = vmul.f32 0.03125, %v1775_v55  ;;  %v1811_v9 = vsub.f32 %v5154_v16, %v1761_v53  ;;  %v3459_v53 = vld [vmem:[%s5633_s2 + $0x1a] ss:$0 sm:$0xff] }
 0xb9c   :  { %v1796_v60 = vsub.f32 %v1786_v58, %v1791_v57 }
 0xb9e   :  { %v1801_v56 = vadd.f32 1e-05, %v1796_v60 }
 0xba0   :  { %4491 = vrsqrt.f32 %v1801_v56 }
 0xba4   :  { %v4490_v63 = vpop.eup %4489 }
 0xba5   :  { %v1819_v3 = vmul.f32 %v4490_v63, %v3457_v62 }
 0xba7   :  { %v1824_v6 = vmul.f32 %v1819_v3, %v1810_v2 }
 0xba9   :  { %v1833_v8 = vadd.f32 %v3458_v5, %v1824_v6 }
 0xbaa   :  { %v4492_v52 = vpop.eup %4491 }
 0xbab   :  { %3965 = vmatmul.mubr.msk.f32.vlgmr.msra.gmra.mrb[50].mxu1 %vm205_vm3, %v1833_v8  ;;  %v1820_v11 = vmul.f32 %v4492_v52, %v3457_v62 }
 0xbac   :  { %3967 = vmatprep.mubr.msk.f32.mxu1 %vm4611_vm0, %v4612_v1 }
 0xbad   :  { %v1825_v12 = vmul.f32 %v1820_v11, %v1811_v9 }
 0xbaf   :  { %v1834_v13 = vadd.f32 %v3458_v5, %v1825_v12 }
 0xbb1   :  { %3968 = vmatmul.mubr.msk.f32.gmra.mrb[52].mxu1 %vm205_vm3, %v1834_v13 }
 0xbb2   :  { %3970 = vmatprep.mubr.msk.f32.mxu1 %vm4611_vm0, %v4612_v1 }
 0xbcd   :  { %v1753_v14 = vpop.xlane.xlu0 %1752 }
 0xbce   :  { %v1762_v15 = vmul.f32 0.03125, %v1753_v14 }
 0xbcf   :  { %v1778_v59 = vpop.xlane.xlu1 %1777 }
 0xbd0   :  { %v1792_v32 = vmul.f32 %v1762_v15, %v1762_v15  ;;  %v1787_v17 = vmul.f32 0.03125, %v1778_v59  ;;  %v1812_v51 = vsub.f32 %v5164_v31, %v1762_v15 }
 0xbd2   :  { %v1797_v18 = vsub.f32 %v1787_v17, %v1792_v32 }
 0xbd4   :  { %v1802_v19 = vadd.f32 1e-05, %v1797_v18 }
 0xbd5   :  { %v1756_v22 = vpop.xlane.xlu0 %1755 }
 0xbd6   :  { %4493 = vrsqrt.f32 %v1802_v19  ;;  %v1763_v24 = vmul.f32 0.03125, %v1756_v22 }
 0xbd7   :  { %v1781_v38 = vpop.xlane.xlu1 %1780 }
 0xbd8   :  { %v1793_v25 = vmul.f32 %v1763_v24, %v1763_v24  ;;  %v1788_v26 = vmul.f32 0.03125, %v1781_v38  ;;  %v1813_v44 = vsub.f32 %v5172_v28, %v1763_v24 }
 0xbd9   :  { %v1759_v27 = vpop.xlane.xlu0 %1758 }
 0xbda   :  { %v1798_v29 = vsub.f32 %v1788_v26, %v1793_v25  ;;  %v1764_v30 = vmul.f32 0.03125, %v1759_v27 }
 0xbdb   :  { %v1784_v20 = vpop.xlane.xlu1 %1783 }
 0xbdc   :  { %v1803_v33 = vadd.f32 1e-05, %v1798_v29  ;;  %v1794_v4 = vmul.f32 %v1764_v30, %v1764_v30  ;;  %v1789_v34 = vmul.f32 0.03125, %v1784_v20  ;;  %v1814_v43 = vsub.f32 %v5179_v54, %v1764_v30 }
 0xbde   :  { %4495 = vrsqrt.f32 %v1803_v33  ;;  %v1799_v37 = vsub.f32 %v1789_v34, %v1794_v4 }
 0xbe0   :  { %v4494_v39 = vpop.eup %4493  ;;  %v1804_v49 = vadd.f32 1e-05, %v1799_v37 }
 0xbe1   :  { %v1821_v61 = vmul.f32 %v4494_v39, %v3457_v62 }
 0xbe2   :  { %4497 = vrsqrt.f32 %v1804_v49 }
 0xbe3   :  { %v1826_v40 = vmul.f32 %v1821_v61, %v1812_v51 }
 0xbe5   :  { %v1835_v23 = vadd.f32 %v3458_v5, %v1826_v40 }
 0xbe7   :  { %3971 = vmatmul.mubr.msk.f32.gmra.mrb[54].mxu1 %vm205_vm3, %v1835_v23 }
 0xbe8   :  { %v4496_v36 = vpop.eup %4495  ;;  %3973 = vmatprep.mubr.msk.f32.mxu1 %vm4611_vm0, %v4612_v1 }
 0xbe9   :  { %v1822_v41 = vmul.f32 %v4496_v36, %v3457_v62 }
 0xbeb   :  { %v1827_v7 = vmul.f32 %v1822_v41, %v1813_v44 }
 0xbec   :  { %v4498_v42 = vpop.eup %4497 }
 0xbed   :  { %v1836_v21 = vadd.f32 %v3458_v5, %v1827_v7  ;;  %v1823_v45 = vmul.f32 %v4498_v42, %v3457_v62 }
 0xbef   :  { %3974 = vmatmul.mubr.msk.f32.gmra.mrb[56].mxu1 %vm205_vm3, %v1836_v21  ;;  %v1828_v46 = vmul.f32 %v1823_v45, %v1814_v43 }
 0xbf0   :  { %3976 = vmatprep.mubr.msk.f32.mxu1 %vm4611_vm0, %v4612_v1 }
 0xbf1   :  { %v1837_v47 = vadd.f32 %v3458_v5, %v1828_v46 }
 0xbf3   :  { %3977 = vmatmul.mubr.msk.f32.gmra.mrb[58].mxu1 %vm205_vm3, %v1837_v47 }
 0xbf4   :  { %3985 = vmatprep.mubr.msk.f32.mxu1 %vm4611_vm0, %v4612_v1 }
 0xc7e   :  { %v1923_v48 = vpop.f32.mrb[50].mxu1 }
 0xc7f   :  { %v3966_v50 = vpop.f32.mrb[51].mxu1  ;;  %v1924_v57 = vadd.f32 %v3459_v53, %v1923_v48 }
 0xc84   :  { %v1928_v55 = vpop.f32.mrb[52].mxu1 }
 0xc85   :  { %v1929_v58 = vadd.f32 %v3459_v53, %v1928_v55  ;;  %v3969_v60 = vpop.f32.mrb[53].mxu1 }
 0xc87   :  { %v5216_v56 = vpack.i.bf16 %v1929_v58, %v1924_v57 }
 0xc89   :  { %4382 = vrot.lane.b32.xlu0 %v5216_v56, %s4613_s21 }
 0xcba   :  { %v1933_v62 = vpop.f32.mrb[54].mxu1 }
 0xcbb   :  { %v5220_v63 = vadd.f32 %v3459_v53, %v1933_v62  ;;  %v3972_v2 = vpop.f32.mrb[55].mxu1 }
 0xcbd   :  { %1954 = vrot.lane.b32.xlu1 %v5220_v63, %s4613_s21  ;;  %v2433_v12 = vrot.slane %v5220_v63, 1 }
 0xcc1   :  { %4387 = vrot.lane.b32.xlu1 %v5216_v56, %s4615_s23 }
 0xcc2   :  { %v1938_v3 = vpop.f32.mrb[56].mxu1 }
 0xcc3   :  { %v1939_v5 = vadd.f32 %v3459_v53, %v1938_v3  ;;  %v3975_v6 = vpop.f32.mrb[57].mxu1 }
 0xcc5   :  { %2190 = vrot.lane.b32.xlu1 %v5220_v63, %s4615_s23  ;;  %v2434_v52 = vrot.slane %v1939_v5, 1 }
 0xcc6   :  { %v1943_v8 = vpop.f32.mrb[58].mxu1 }
 0xcc7   :  { %v1944_v9 = vadd.f32 %v3459_v53, %v1943_v8  ;;  %v3978_v11 = vpop.f32.mrb[59].mxu1  ;;  %v5233_v14 = vsel %vm899_vm9, %v2433_v12, %v2434_v52 }
 0xcc9   :  { %v5229_v13 = vrot.slane %v1944_v9, 1  ;;  %2180 = vrot.lane.b32.xlu1 %v1924_v57, %s4616_s24 }
 0xccb   :  { %v5237_v15 = vsel %vm899_vm9, %v2434_v52, %v5229_v13 }
 0xccc   :  { %v5241_v59 = vpack.i.bf16 %v5237_v15, %v5233_v14 }
 0xccd   :  { %2184 = vrot.lane.b32.xlu1 %v5220_v63, %s4616_s24 }
 0xcce   :  { %4392 = vrot.lane.b32.xlu0 %v5241_v59, %s4613_s21 }
 0xcd1   :  { %4397 = vrot.lane.b32.xlu1 %v5241_v59, %s4615_s23 }
 0xcd2   :  { %2182 = vrot.lane.b32.xlu0 %v1929_v58, %s4616_s24 }
 0xcd5   :  { %2668 = vrot.lane.b32.xlu1 %v5233_v14, %s4616_s24 }
 0xcd6   :  { %2442 = vrot.lane.b32.xlu0 %v5229_v13, %s4613_s21 }
 0xcd9   :  { %2672 = vrot.lane.b32.xlu1 %v5229_v13, %s4616_s24 }
 0xcda   :  { %2678 = vrot.lane.b32.xlu0 %v5229_v13, %s4615_s23 }
 0xcdd   :  { %4402 = vrot.lane.b32.xlu1 %v5216_v56, %s4614_s22 }
 0xcde   :  { %2670 = vrot.lane.b32.xlu0 %v5237_v15, %s4616_s24 }
 0xcfb   :  { %v4383_v32 = vpop.permute.xlu0 %4382 }
 0xcfc   :  { %v4385_v17 = vunpack.i.h.bf16 %v4383_v32  ;;  %v4384_v18 = vunpack.i.l.bf16 %v4383_v32 }
 0xcfe   :  { %v4263_v19 = vpack.c.bf16 %v4385_v17, %v4384_v18 }
 0xd00   :  { %4265 = vmatpush3.bf16.xpose.msk.msra.mxu1 %vm4796_vm6, %v4263_v19 }
 0xd01   :  { %3983 = vmatprep.subr.mxu1 %v4612_v1 }
 0xd2f   :  { %v1955_v22 = vpop.permute.xlu1 %1954 }
 0xd30   :  { %3984 = vmatpush3.xpose.msk.msra.mxu1 %vm419_vm5, %v1955_v22 }
 0xd31   :  { %4269 = vmatprep.subr.bf16.mxu1 %v4610_v0 }
 0xd33   :  { %v4388_v24 = vpop.permute.xlu1 %4387  ;;  %3986 = vmatmul.mubr.msk.f32.vlgmr.msra.gmra.mrb[60].mxu1 %vm419_vm5, %v1924_v57 }
 0xd34   :  { %v4390_v38 = vunpack.i.h.bf16 %v4388_v24  ;;  %v4389_v25 = vunpack.i.l.bf16 %v4388_v24  ;;  %3988 = vmatprep.mubr.msk.f32.mxu1 %vm4611_vm0, %v4612_v1 }
 0xd36   :  { %v4270_v26 = vpack.c.bf16 %v4390_v38, %v4389_v25 }
 0xd37   :  { %v2191_v27 = vpop.permute.xlu1 %2190  ;;  %3989 = vmatmul.mubr.msk.f32.gmra.mrb[62].mxu1 %vm419_vm5, %v1929_v58 }
 0xd38   :  { %4272 = vmatpush3.bf16.xpose.msk.msra.mxu1 %vm4796_vm6, %v4270_v26  ;;  %3991 = vmatprep.mubr.msk.f32.mxu1 %vm4611_vm0, %v4612_v1 }
 0xd39   :  { %4013 = vmatprep.subr.mxu1 %v4612_v1 }
 0xd3b   :  { %v2181_v29 = vpop.permute.xlu1 %2180  ;;  %3992 = vmatmul.mubr.msk.f32.gmra.mrb[64].mxu1 %vm419_vm5, %v5220_v63 }
 0xd3c   :  { %4015 = vmatprep.mubr.msk.f32.mxu1 %vm4611_vm0, %v4612_v1 }
 0xd3f   :  { %v2185_v30 = vpop.permute.xlu1 %2184 }
 0xd40   :  { %v4393_v20 = vpop.permute.xlu0 %4392  ;;  %4014 = vmatpush3.xpose.msk.msra.mxu1 %vm419_vm5, %v2191_v27 }
 0xd41   :  { %v4395_v33 = vunpack.i.h.bf16 %v4393_v20  ;;  %v4394_v4 = vunpack.i.l.bf16 %v4393_v20  ;;  %4276 = vmatprep.subr.bf16.mxu1 %v4610_v0 }
 0xd43   :  { %v4277_v34 = vpack.c.bf16 %v4395_v33, %v4394_v4  ;;  %v4398_v37 = vpop.permute.xlu1 %4397  ;;  %4016 = vmatmul.mubr.msk.f32.vlgmr.msra.gmra.mrb[66].mxu1 %vm419_vm5, %v2181_v29 }
 0xd44   :  { %4018 = vmatprep.mubr.msk.f32.mxu1 %vm4611_vm0, %v4612_v1  ;;  %v2183_v39 = vpop.permute.xlu0 %2182  ;;  %v4400_v51 = vunpack.i.h.bf16 %v4398_v37  ;;  %v4399_v61 = vunpack.i.l.bf16 %v4398_v37 }
 0xd45   :  { %4279 = vmatpush3.bf16.xpose.msk.msra.mxu1 %vm4796_vm6, %v4277_v34 }
 0xd46   :  { %4043 = vmatprep.subr.mxu1 %v4612_v1  ;;  %v4284_v36 = vpack.c.bf16 %v4400_v51, %v4399_v61 }
 0xd47   :  { %v2669_v49 = vpop.permute.xlu1 %2668  ;;  %4019 = vmatmul.mubr.msk.f32.gmra.mrb[68].mxu1 %vm419_vm5, %v2183_v39 }
 0xd48   :  { %4021 = vmatprep.mubr.msk.f32.mxu1 %vm4611_vm0, %v4612_v1  ;;  %v2443_v23 = vpop.permute.xlu0 %2442 }
 0xd4b   :  { %v2673_v40 = vpop.permute.xlu1 %2672  ;;  %4022 = vmatmul.mubr.msk.f32.gmra.mrb[70].mxu1 %vm419_vm5, %v2185_v30 }
 0xd4c   :  { %4045 = vmatprep.mubr.msk.f32.mxu1 %vm4611_vm0, %v4612_v1  ;;  %v2679_v43 = vpop.permute.xlu0 %2678 }
 0xd4d   :  { %4044 = vmatpush3.xpose.msk.msra.mxu1 %vm419_vm5, %v2443_v23 }
 0xd4e   :  { %4283 = vmatprep.subr.bf16.mxu1 %v4610_v0 }
 0xd4f   :  { %v4403_v44 = vpop.permute.xlu1 %4402 }
 0xd50   :  { %v4405_v41 = vunpack.i.h.bf16 %v4403_v44  ;;  %v4404_v7 = vunpack.i.l.bf16 %v4403_v44  ;;  %4046 = vmatmul.mubr.msk.f32.vlgmr.msra.gmra.mrb[72].mxu1 %vm419_vm5, %v5233_v14  ;;  %v2671_v35 = vpop.permute.xlu0 %2670 }
 0xd51   :  { %4286 = vmatpush3.bf16.xpose.msk.msra.mxu1 %vm4796_vm6, %v4284_v36  ;;  %4048 = vmatprep.mubr.msk.f32.mxu1 %vm4611_vm0, %v4612_v1 }
 0xd52   :  { %v4267_v42 = vpack.c.bf16 %v4405_v41, %v4404_v7  ;;  %4073 = vmatprep.subr.mxu1 %v4612_v1 }
 0xd54   :  { %4268 = vmatpush3.bf16.msra.mxu0 %v4267_v42  ;;  %4049 = vmatmul.mubr.msk.f32.gmra.mrb[74].mxu1 %vm419_vm5, %v5237_v15 }
 0xd55   :  { %4051 = vmatprep.mubr.msk.f32.mxu1 %vm4611_vm0, %v4612_v1  ;;  %3998 = vmatprep.subr.mxu0 %v4612_v1 }
 0xd58   :  { %4052 = vmatmul.mubr.msk.f32.gmra.mrb[76].mxu1 %vm419_vm5, %v5229_v13 }
 0xd59   :  { %4074 = vmatpush3.xpose.msk.msra.mxu1 %vm419_vm5, %v2679_v43  ;;  %4075 = vmatprep.mubr.msk.f32.mxu1 %vm4611_vm0, %v4612_v1 }
 0xd5a   :  { %4290 = vmatprep.subr.bf16.mxu1 %v4610_v0 }
 0xd5c   :  { %4076 = vmatmul.mubr.msk.f32.vlgmr.msra.gmra.mrb[78].mxu1 %vm419_vm5, %v2669_v49 }
 0xd5d   :  { %4078 = vmatprep.mubr.msk.f32.mxu1 %vm4611_vm0, %v4612_v1 }
 0xd60   :  { %4079 = vmatmul.mubr.msk.f32.gmra.mrb[80].mxu1 %vm419_vm5, %v2671_v35 }
 0xd61   :  { %4081 = vmatprep.mubr.msk.f32.mxu1 %vm4611_vm0, %v4612_v1 }
 0xd64   :  { %4082 = vmatmul.mubr.msk.f32.gmra.mrb[82].mxu1 %vm419_vm5, %v2673_v40 }
 0xd65   :  { %4107 = vmatprep.mubr.msk.f32.mxu1 %vm4611_vm0, %v4612_v1 }
 0xe06   :  { %v2034_v21 = vpop.f32.mrb[60].mxu1 }
 0xe07   :  { %v3987_v45 = vpop.f32.mrb[61].mxu1  ;;  %v2048_v46 = vsel %vm512_vm7, %v2034_v21, -inf }
 0xe08   :  { %2049 = vmax.xlane.f32.xlu0 %v2048_v46 }
 0xe0a   :  { %v2039_v47 = vpop.f32.mrb[62].mxu1 }
 0xe0b   :  { %v3990_v48 = vpop.f32.mrb[63].mxu1  ;;  %v2051_v50 = vsel %vm512_vm7, %v2039_v47, -inf }
 0xe0c   :  { %2052 = vmax.xlane.f32.xlu1 %v2051_v50 }
 0xe0e   :  { %v2044_v53 = vpop.f32.mrb[64].mxu1 }
 0xe0f   :  { %v3993_v55 = vpop.f32.mrb[65].mxu1  ;;  %v2054_v57 = vsel %vm519_vm8, %v2044_v53, -inf }
 0xe10   :  { %2055 = vmax.xlane.f32.xlu0 %v2054_v57 }
 0xe16   :  { %v2270_v58 = vpop.f32.mrb[66].mxu1 }
 0xe17   :  { %v4017_v60 = vpop.f32.mrb[67].mxu1  ;;  %v2284_v62 = vsel %vm512_vm7, %v2270_v58, -inf }
 0xe18   :  { %2285 = vmax.xlane.f32.xlu0 %v2284_v62 }
 0xe1a   :  { %v2275_v2 = vpop.f32.mrb[68].mxu1 }
 0xe1b   :  { %v4020_v3 = vpop.f32.mrb[69].mxu1  ;;  %v2287_v5 = vsel %vm512_vm7, %v2275_v2, -inf }
 0xe1c   :  { %2288 = vmax.xlane.f32.xlu0 %v2287_v5 }
 0xe1e   :  { %v2280_v6 = vpop.f32.mrb[70].mxu1 }
 0xe1f   :  { %v4023_v8 = vpop.f32.mrb[71].mxu1  ;;  %v2290_v52 = vsel %vm519_vm8, %v2280_v6, -inf }
 0xe20   :  { %2291 = vmax.xlane.f32.xlu1 %v2290_v52 }
 0xe23   :  { %v5329_v9 = vpop.f32.mrb[72].mxu1 }
 0xe24   :  { %v4047_v11 = vpop.f32.mrb[73].mxu1  ;;  %v2536_v27 = vsel %vm512_vm7, %v5329_v9, -inf }
 0xe27   :  { %v5331_v12 = vpop.f32.mrb[74].mxu1 }
 0xe28   :  { %v4050_v14 = vpop.f32.mrb[75].mxu1  ;;  %v2539_v15 = vsel %vm512_vm7, %v5331_v12, -inf }
 0xe29   :  { %2540 = vmax.xlane.f32.xlu1 %v2539_v15 }
 0xe2b   :  { %v5335_v32 = vpop.f32.mrb[76].mxu1 }
 0xe2c   :  { %v4053_v17 = vpop.f32.mrb[77].mxu1  ;;  %v2542_v29 = vsel %vm519_vm8, %v5335_v32, -inf }
 0xe2f   :  { %v5337_v18 = vpop.f32.mrb[78].mxu1 }
 0xe30   :  { %v4077_v19 = vpop.f32.mrb[79].mxu1  ;;  %v2772_v22 = vsel %vm512_vm7, %v5337_v18, -inf }
 0xe31   :  { %2773 = vmax.xlane.f32.xlu1 %v2772_v22 }
 0xe32   :  { %2085 = vrot.lane.b32.xlu0 %v5220_v63, %s4614_s22 }
 0xe33   :  { %v5343_v24 = vpop.f32.mrb[80].mxu1 }
 0xe34   :  { %v4080_v38 = vpop.f32.mrb[81].mxu1 }
 0xe37   :  { %v5345_v25 = vpop.f32.mrb[82].mxu1 }
 0xe38   :  { %v4083_v26 = vpop.f32.mrb[83].mxu1 }
 0xe42   :  { %2321 = vrot.lane.b32.xlu1 %v5220_v63, %s4617_s25 }
 0xe51   :  { %2537 = vmax.xlane.f32.xlu0 %v2536_v27 }
 0xe55   :  { %2543 = vmax.xlane.f32.xlu0 %v2542_v29 }
 0xe6b   :  { %4407 = vrot.lane.b32.xlu0 %v5216_v56, %s4617_s25 }
 0xe95   :  { %v2050_v30 = vpop.xlane.xlu0 %2049 }
 0xe96   :  { %v2057_v20 = vsub.f32 %v2034_v21, %v2050_v30 }
 0xe98   :  { %v2060_v33 = vmul.f32 1.442695, %v2057_v20 }
 0xe99   :  { %v2053_v4 = vpop.xlane.xlu1 %2052 }
 0xe9a   :  { %4499 = vpow2.f32 %v2060_v33  ;;  %v2058_v34 = vsub.f32 %v2039_v47, %v2053_v4  ;;  %v2775_v33 = vsel %vm512_vm7, %v5343_v24, -inf }
 0xe9c   :  { %v2062_v37 = vmul.f32 1.442695, %v2058_v34 }
 0xe9d   :  { %v2056_v39 = vpop.xlane.xlu0 %2055 }
 0xe9e   :  { %4501 = vpow2.f32 %v2062_v37  ;;  %v2059_v63 = vsub.f32 %v2044_v53, %v2056_v39 }
 0xea0   :  { %v2064_v49 = vmul.f32 1.442695, %v2059_v63 }
 0xea2   :  { %4503 = vpow2.f32 %v2064_v49 }
 0xea4   :  { %v5355_v51 = vpop.eup %4499 }
 0xea5   :  { %v2286_v61 = vpop.xlane.xlu0 %2285  ;;  %v2066_v40 = vsel %vm512_vm7, %v5355_v51, 0.0 }
 0xea6   :  { %v2293_v23 = vsub.f32 %v2270_v58, %v2286_v61  ;;  %2067 = vadd.xlane.f32.xlu1 %v2066_v40 }
 0xea8   :  { %v5359_v56 = vpop.eup %4501  ;;  %v2296_v36 = vmul.f32 1.442695, %v2293_v23 }
 0xea9   :  { %v2289_v44 = vpop.xlane.xlu0 %2288  ;;  %v2069_v41 = vsel %vm512_vm7, %v5359_v56, 0.0 }
 0xeaa   :  { %4505 = vpow2.f32 %v2296_v36  ;;  %v2294_v7 = vsub.f32 %v2275_v2, %v2289_v44  ;;  %2070 = vadd.xlane.f32.xlu0 %v2069_v41 }
 0xeac   :  { %v5363_v42 = vpop.eup %4503  ;;  %v2298_v43 = vmul.f32 1.442695, %v2294_v7 }
 0xead   :  { %v2086_v35 = vpop.permute.xlu0 %2085  ;;  %v2292_v21 = vpop.xlane.xlu1 %2291  ;;  %v2072_v45 = vsel %vm519_vm8, %v5363_v42, 0.0 }
 0xeae   :  { %4507 = vpow2.f32 %v2298_v43  ;;  %v2295_v46 = vsub.f32 %v2280_v6, %v2292_v21  ;;  %3999 = vmatpush3.msk.msra.mxu0 %vm39_vm2, %v2086_v35  ;;  %2073 = vadd.xlane.f32.xlu0 %v2072_v45 }
 0xeaf   :  { %4273 = vmatprep.subr.bf16.mxu0 %v4610_v0 }
 0xeb0   :  { %v2300_v47 = vmul.f32 1.442695, %v2295_v46 }
 0xeb2   :  { %4509 = vpow2.f32 %v2300_v47 }
 0xeb4   :  { %v5369_v48 = vpop.eup %4505 }
 0xeb5   :  { %v2302_v50 = vsel %vm512_vm7, %v5369_v48, 0.0 }
 0xeb6   :  { %v2541_v53 = vpop.xlane.xlu1 %2540  ;;  %2303 = vadd.xlane.f32.xlu1 %v2302_v50 }
 0xeb7   :  { %v2546_v55 = vsub.f32 %v5331_v12, %v2541_v53 }
 0xeb8   :  { %v5374_v57 = vpop.eup %4507 }
 0xeb9   :  { %v2550_v58 = vmul.f32 1.442695, %v2546_v55  ;;  %v2305_v60 = vsel %vm512_vm7, %v5374_v57, 0.0 }
 0xeba   :  { %2306 = vadd.xlane.f32.xlu0 %v2305_v60 }
 0xebb   :  { %4511 = vpow2.f32 %v2550_v58 }
 0xebc   :  { %v5378_v62 = vpop.eup %4509 }
 0xebd   :  { %v2308_v2 = vsel %vm519_vm8, %v5378_v62, 0.0 }
 0xebe   :  { %2309 = vadd.xlane.f32.xlu0 %v2308_v2  ;;  %v2774_v15 = vpop.xlane.xlu1 %2773 }
 0xebf   :  { %v2781_v17 = vsub.f32 %v5337_v18, %v2774_v15  ;;  %v2778_v18 = vsel %vm519_vm8, %v5345_v25, -inf }
 0xec1   :  { %v2784_v22 = vmul.f32 1.442695, %v2781_v17 }
 0xec2   :  { %v2322_v29 = vpop.permute.xlu1 %2321 }
 0xec5   :  { %v5382_v3 = vpop.eup %4511 }
 0xec6   :  { %v2557_v5 = vsel %vm512_vm7, %v5382_v3, 0.0 }
 0xec7   :  { %2558 = vadd.xlane.f32.xlu1 %v2557_v5 }
 0xed8   :  { %2573 = vrot.lane.b32.xlu1 %v5229_v13, %s4614_s22 }
 0xedc   :  { %4417 = vrot.lane.b32.xlu1 %v5241_v59, %s4617_s25 }
 0xede   :  { %v2538_v6 = vpop.xlane.xlu0 %2537 }
 0xedf   :  { %v2545_v8 = vsub.f32 %v5329_v9, %v2538_v6 }
 0xee1   :  { %v2548_v52 = vmul.f32 1.442695, %v2545_v8 }
 0xee2   :  { %v2544_v11 = vpop.xlane.xlu0 %2543 }
 0xee3   :  { %4513 = vpow2.f32 %v2548_v52  ;;  %v2547_v12 = vsub.f32 %v5335_v32, %v2544_v11 }
 0xee5   :  { %v2552_v14 = vmul.f32 1.442695, %v2547_v12 }
 0xee6   :  { %v4408_v30 = vpop.permute.xlu0 %4407 }
 0xee7   :  { %4515 = vpow2.f32 %v2552_v14  ;;  %v4410_v37 = vunpack.i.h.bf16 %v4408_v30 }
 0xee8   :  { %4517 = vpow2.f32 %v2784_v22 }
 0xeed   :  { %v5393_v19 = vpop.eup %4513 }
 0xeee   :  { %v2554_v38 = vsel %vm512_vm7, %v5393_v19, 0.0 }
 0xeef   :  { %2555 = vadd.xlane.f32.xlu0 %v2554_v38 }
 0xef1   :  { %v5397_v26 = vpop.eup %4515 }
 0xef2   :  { %v2560_v9 = vsel %vm519_vm8, %v5397_v26, 0.0  ;;  %v5401_v32 = vpop.eup %4517 }
 0xef3   :  { %2561 = vadd.xlane.f32.xlu0 %v2560_v9  ;;  %v2790_v27 = vsel %vm512_vm7, %v5401_v32, 0.0 }
 0xf00   :  { %2791 = vadd.xlane.f32.xlu1 %v2790_v27 }
 0xf09   :  { %4412 = vrot.lane.b32.xlu0 %v5241_v59, %s4614_s22  ;;  %v4409_v59 = vunpack.i.l.bf16 %v4408_v30 }
 0xf0b   :  { %v4274_v63 = vpack.c.bf16 %v4410_v37, %v4409_v59 }
 0xf11   :  { %2809 = vrot.lane.b32.xlu1 %v5229_v13, %s4617_s25 }
 0xf28   :  { %2779 = vmax.xlane.f32.xlu0 %v2778_v18 }
 0xf33   :  { %v2068_v20 = vpop.xlane.xlu1 %2067 }
 0xf34   :  { %4519 = vrcp.f32 %v2068_v20 }
 0xf35   :  { %2776 = vmax.xlane.f32.xlu1 %v2775_v33 }
 0xf37   :  { %v2071_v4 = vpop.xlane.xlu0 %2070 }
 0xf38   :  { %4521 = vrcp.f32 %v2071_v4 }
 0xf3b   :  { %v2074_v34 = vpop.xlane.xlu0 %2073 }
 0xf3c   :  { %4523 = vrcp.f32 %v2074_v34 }
 0xf3e   :  { %v4520_v39 = vpop.eup %4519 }
 0xf3f   :  { %v2078_v13 = vmul.f32 %v4520_v39, %v5355_v51 }
 0xf41   :  { %4001 = vmatmul.mubr.msk.f32.vlgmr.msra.gmra.mrb[38].mxu0 %vm512_vm7, %v2078_v13 }
 0xf42   :  { %v4522_v49 = vpop.eup %4521  ;;  %4275 = vmatpush3.bf16.msra.mxu0 %v4274_v63  ;;  %4003 = vmatprep.mubr.msk.f32.mxu0 %vm4611_vm0, %v4612_v1 }
 0xf43   :  { %v2304_v61 = vpop.xlane.xlu1 %2303  ;;  %4028 = vmatprep.subr.mxu0 %v4612_v1  ;;  %v2079_v40 = vmul.f32 %v4522_v49, %v5359_v56 }
 0xf44   :  { %4525 = vrcp.f32 %v2304_v61 }
 0xf45   :  { %4004 = vmatmul.mubr.msk.f32.gmra.mrb[40].mxu0 %vm512_vm7, %v2079_v40 }
 0xf46   :  { %v4524_v23 = vpop.eup %4523  ;;  %4029 = vmatpush3.msk.msra.mxu0 %vm39_vm2, %v2322_v29  ;;  %4006 = vmatprep.mubr.msk.f32.mxu0 %vm4611_vm0, %v4612_v1 }
 0xf47   :  { %v2307_v51 = vpop.xlane.xlu0 %2306  ;;  %v2080_v36 = vmul.f32 %v4524_v23, %v5363_v42  ;;  %4280 = vmatprep.subr.bf16.mxu0 %v4610_v0 }
 0xf48   :  { %4527 = vrcp.f32 %v2307_v51 }
 0xf49   :  { %4007 = vmatmul.mubr.msk.f32.gmra.mrb[42].mxu0 %vm512_vm7, %v2080_v36 }
 0xf4a   :  { %4030 = vmatprep.mubr.msk.f32.mxu0 %vm4611_vm0, %v4612_v1 }
 0xf4b   :  { %v2310_v56 = vpop.xlane.xlu0 %2309 }
 0xf4c   :  { %4529 = vrcp.f32 %v2310_v56 }
 0xf4e   :  { %v4526_v44 = vpop.eup %4525 }
 0xf4f   :  { %v2314_v41 = vmul.f32 %v4526_v44, %v5369_v48 }
 0xf51   :  { %4031 = vmatmul.mubr.msk.f32.vlgmr.msra.gmra.mrb[44].mxu0 %vm512_vm7, %v2314_v41 }
 0xf52   :  { %v4528_v7 = vpop.eup %4527  ;;  %4033 = vmatprep.mubr.msk.f32.mxu0 %vm4611_vm0, %v4612_v1 }
 0xf53   :  { %v2315_v42 = vmul.f32 %v4528_v7, %v5374_v57 }
 0xf54   :  { %v2559_v21 = vpop.xlane.xlu1 %2558 }
 0xf55   :  { %4034 = vmatmul.mubr.msk.f32.gmra.mrb[46].mxu0 %vm512_vm7, %v2315_v42 }
 0xf56   :  { %v4530_v43 = vpop.eup %4529  ;;  %4036 = vmatprep.mubr.msk.f32.mxu0 %vm4611_vm0, %v4612_v1 }
 0xf57   :  { %v2316_v35 = vmul.f32 %v4530_v43, %v5378_v62 }
 0xf58   :  { %v2574_v46 = vpop.permute.xlu1 %2573 }
 0xf59   :  { %4037 = vmatmul.mubr.msk.f32.gmra.mrb[48].mxu0 %vm512_vm7, %v2316_v35 }
 0xf5a   :  { %4060 = vmatprep.mubr.msk.f32.mxu0 %vm4611_vm0, %v4612_v1 }
 0xf5c   :  { %v4418_v55 = vpop.permute.xlu1 %4417 }
 0xf5d   :  { %v4420_v60 = vunpack.i.h.bf16 %v4418_v55  ;;  %v4419_v62 = vunpack.i.l.bf16 %v4418_v55  ;;  %v1719_v55 = vld [vmem:[#allocation2 + $0x128] sm:$0xff] }
 0xf5f   :  { %v4288_v6 = vpack.c.bf16 %v4420_v60, %v4419_v62 }
 0xf7c   :  { %v2556_v45 = vpop.xlane.xlu0 %2555 }
 0xf7d   :  { %4531 = vrcp.f32 %v2556_v45 }
 0xf7e   :  { %4533 = vrcp.f32 %v2559_v21 }
 0xf80   :  { %v2562_v47 = vpop.xlane.xlu0 %2561 }
 0xf81   :  { %4535 = vrcp.f32 %v2562_v47 }
 0xf84   :  { %v4413_v48 = vpop.permute.xlu0 %4412 }
 0xf85   :  { %v4415_v50 = vunpack.i.h.bf16 %v4413_v48  ;;  %v4414_v53 = vunpack.i.l.bf16 %v4413_v48 }
 0xf87   :  { %v4281_v57 = vpack.c.bf16 %v4415_v50, %v4414_v53  ;;  %v4532_v58 = vpop.eup %4531  ;;  %v1718_v53 = vld [vmem:[#allocation2 + $0x120] sm:$0xff] }
 0xf88   :  { %v2566_v2 = vmul.f32 %v4532_v58, %v5393_v19  ;;  %v4534_v5 = vpop.eup %4533  ;;  %v1721_v58 = vld [vmem:[#allocation2 + $0x138] sm:$0xff] }
 0xf89   :  { %4282 = vmatpush3.bf16.msra.mxu0 %v4281_v57  ;;  %v2567_v52 = vmul.f32 %v4534_v5, %v5382_v3  ;;  %v4291_v57 = vpack.c.bf16 %v1719_v55, %v1718_v53 }
 0xf8a   :  { %4058 = vmatprep.subr.mxu0 %v4612_v1 }
 0xf8b   :  { %v4536_v11 = vpop.eup %4535  ;;  %4292 = vmatpush3.bf16.msra.mxu1 %v4291_v57 }
 0xf8c   :  { %v2568_v14 = vmul.f32 %v4536_v11, %v5397_v26  ;;  %4293 = vmatprep.subr.bf16.mxu1 %v4610_v0 }
 0xf8d   :  { %4059 = vmatpush3.msk.msra.mxu0 %vm39_vm2, %v2574_v46  ;;  %v2792_v8 = vpop.xlane.xlu1 %2791 }
 0xf8e   :  { %4537 = vrcp.f32 %v2792_v8  ;;  %4061 = vmatmul.mubr.msk.f32.vlgmr.msra.gmra.mrb[50].mxu0 %vm512_vm7, %v2566_v2  ;;  %4287 = vmatprep.subr.bf16.mxu0 %v4610_v0 }
 0xf8f   :  { %4289 = vmatpush3.bf16.msra.mxu0 %v4288_v6  ;;  %4063 = vmatprep.mubr.msk.f32.mxu0 %vm4611_vm0, %v4612_v1 }
 0xf90   :  { %4088 = vmatprep.subr.mxu0 %v4612_v1 }
 0xf91   :  { %v2810_v12 = vpop.permute.xlu1 %2809 }
 0xf92   :  { %4064 = vmatmul.mubr.msk.f32.gmra.mrb[52].mxu0 %vm512_vm7, %v2567_v52 }
 0xf93   :  { %4089 = vmatpush3.msk.msra.mxu0 %vm39_vm2, %v2810_v12  ;;  %4066 = vmatprep.mubr.msk.f32.mxu0 %vm4611_vm0, %v4612_v1 }
 0xf94   :  { %4296 = vmatprep.subr.bf16.mxu0 %v4610_v0 }
 0xf96   :  { %4067 = vmatmul.mubr.msk.f32.gmra.mrb[54].mxu0 %vm512_vm7, %v2568_v14 }
 0xf97   :  { %4090 = vmatprep.mubr.msk.f32.mxu0 %vm4611_vm0, %v4612_v1 }
 0xf98   :  { %v4538_v3 = vpop.eup %4537 }
 0xf99   :  { %v2802_v15 = vmul.f32 %v4538_v3, %v5401_v32 }
 0xf9b   :  { %4091 = vmatmul.mubr.msk.f32.vlgmr.msra.gmra.mrb[56].mxu0 %vm512_vm7, %v2802_v15 }
 0xf9c   :  { %4093 = vmatprep.mubr.msk.f32.mxu0 %vm4611_vm0, %v4612_v1 }
 0xfc2   :  { %v2777_v30 = vpop.xlane.xlu1 %2776 }
 0xfc3   :  { %v2782_v4 = vsub.f32 %v5343_v24, %v2777_v30  ;;  %v2780_v24 = vpop.xlane.xlu0 %2779 }
 0xfc4   :  { %v2783_v36 = vsub.f32 %v5345_v25, %v2780_v24 }
 0xfc5   :  { %v2786_v34 = vmul.f32 1.442695, %v2782_v4 }
 0xfc6   :  { %v2788_v56 = vmul.f32 1.442695, %v2783_v36  ;;  %v5524_v36 = vld [vmem:[%s5633_s2 + $0x1b] ss:$0 sm:$0xff] }
 0xfc7   :  { %4539 = vpow2.f32 %v2786_v34  ;;  %v1722_v34 = vld [vmem:[#allocation2 + $0x140] sm:$0xff] }
 0xfc8   :  { %4541 = vpow2.f32 %v2788_v56 }
 0xfd1   :  { %v4540_v37 = vpop.eup %4539 }
 0xfd2   :  { %v2793_v59 = vsel %vm512_vm7, %v4540_v37, 0.0  ;;  %v4542_v44 = vpop.eup %4541 }
 0xfd3   :  { %v2796_v41 = vsel %vm519_vm8, %v4542_v44, 0.0 }
0x1014   :  { %v2166_v17 = vpop.f32.mrb[38].mxu0 }
0x1015   :  { %v4002_v19 = vpop.f32.mrb[39].mxu0 }
0x1018   :  { %v2171_v22 = vpop.f32.mrb[40].mxu0 }
0x1019   :  { %v4005_v38 = vpop.f32.mrb[41].mxu0 }
0x101c   :  { %v5462_v26 = vpop.f32.mrb[42].mxu0 }
0x101d   :  { %v4008_v9 = vpop.f32.mrb[43].mxu0 }
0x1024   :  { %v2402_v27 = vpop.f32.mrb[44].mxu0 }
0x1025   :  { %2419 = vrot.lane.b32.xlu0 %v2402_v27, %s4618_s1  ;;  %v4032_v18 = vpop.f32.mrb[45].mxu0 }
0x1028   :  { %v2407_v29 = vpop.f32.mrb[46].mxu0 }
0x1029   :  { %2421 = vrot.lane.b32.xlu1 %v2407_v29, %s4618_s1  ;;  %v4035_v32 = vpop.f32.mrb[47].mxu0 }
0x102c   :  { %v2412_v20 = vpop.f32.mrb[48].mxu0 }
0x102d   :  { %v4038_v33 = vpop.f32.mrb[49].mxu0 }
0x1044   :  { %2794 = vadd.xlane.f32.xlu0 %v2793_v59  ;;  %v1724_v59 = vld [vmem:[#allocation2 + $0x150] sm:$0xff] }
0x1061   :  { %v2654_v39 = vpop.f32.mrb[50].mxu0 }
0x1062   :  { %v4062_v13 = vpop.f32.mrb[51].mxu0 }
0x1065   :  { %v5468_v63 = vpop.f32.mrb[52].mxu0 }
0x1066   :  { %v4065_v49 = vpop.f32.mrb[53].mxu0 }
0x1069   :  { %v5470_v61 = vpop.f32.mrb[54].mxu0 }
0x106a   :  { %v4068_v40 = vpop.f32.mrb[55].mxu0 }
0x106b   :  { %v1725_v40 = vld [vmem:[#allocation2 + $0x158] sm:$0xff] }
0x106e   :  { %v2890_v23 = vpop.f32.mrb[56].mxu0 }
0x106f   :  { %2907 = vrot.lane.b32.xlu1 %v2890_v23, %s4618_s1  ;;  %v4092_v51 = vpop.f32.mrb[57].mxu0 }
0x1070   :  { %v4300_v51 = vpack.c.bf16 %v1725_v40, %v1724_v59  ;;  %v5559_v59 = vld [vmem:[%s5633_s2 + $0x1d] ss:$0 sm:$0xff] }
0x1073   :  { %2423 = vrot.lane.b32.xlu1 %v2412_v20, %s4618_s1 }
0x1097   :  { %v2420_v7 = vpop.permute.xlu0 %2419  ;;  %2797 = vadd.xlane.f32.xlu1 %v2796_v41 }
0x1098   :  { %v2428_v42 = vsel %vm419_vm5, %v2166_v17, %v2420_v7  ;;  %v5531_v7 = vld [vmem:[%s5633_s2 + $0x1c] ss:$0 sm:$0xff] }
0x1099   :  { %v5478_v43 = vadd.f32 %v2428_v42, %v5146_v10 }
0x109b   :  { %v2422_v35 = vpop.permute.xlu1 %2421  ;;  %v2936_v21 = vsel %vm205_vm3, %v5478_v43, 0.0  ;;  %v2956_v45 = vmul.f32 %v5478_v43, %v5478_v43 }
0x109c   :  { %v2429_v25 = vsel %vm419_vm5, %v2171_v22, %v2422_v35  ;;  %2937 = vadd.xlane.f32.xlu0 %v2936_v21 }
0x109d   :  { %v5486_v46 = vadd.f32 %v2429_v25, %v5154_v16  ;;  %v2961_v47 = vsel %vm205_vm3, %v2956_v45, 0.0  ;;  %v1720_v16 = vld [vmem:[#allocation2 + $0x130] sm:$0xff] }
0x109e   :  { %v4294_v60 = vpack.c.bf16 %v1721_v58, %v1720_v16  ;;  %v1726_v58 = vld [vmem:[#allocation2 + $0x160] sm:$0xff] }
0x109f   :  { %v2957_v48 = vmul.f32 %v5486_v46, %v5486_v46  ;;  %v2939_v50 = vsel %vm205_vm3, %v5486_v46, 0.0 }
0x10a0   :  { %2962 = vadd.xlane.f32.xlu0 %v2961_v47  ;;  %4295 = vmatpush3.bf16.msra.mxu1 %v4294_v60  ;;  %v1727_v60 = vld [vmem:[#allocation2 + $0x168] sm:$0xff] }
0x10a1   :  { %v2964_v10 = vsel %vm205_vm3, %v2957_v48, 0.0  ;;  %4320 = vmatprep.subr.bf16.mxu1 %v4610_v0 }
0x10a2   :  { %2965 = vadd.xlane.f32.xlu1 %v2964_v10 }
0x10a4   :  { %2940 = vadd.xlane.f32.xlu0 %v2939_v50 }
0x10d1   :  { %v2795_v62 = vpop.xlane.xlu0 %2794 }
0x10d2   :  { %4543 = vrcp.f32 %v2795_v62  ;;  %v4303_v62 = vpack.c.bf16 %v1727_v60, %v1726_v58 }
0x10dc   :  { %v4544_v2 = vpop.eup %4543 }
0x10dd   :  { %v2803_v5 = vmul.f32 %v4544_v2, %v4540_v37  ;;  %v1723_v37 = vld [vmem:[#allocation2 + $0x148] sm:$0xff]  ;;  %v1728_v2 = vld [vmem:[#allocation2 + $0x170] sm:$0xff] }
0x10de   :  { %v4297_v49 = vpack.c.bf16 %v1723_v37, %v1722_v34 }
0x10df   :  { %4094 = vmatmul.mubr.msk.f32.gmra.mrb[58].mxu0 %vm512_vm7, %v2803_v5  ;;  %v1729_v5 = vld [vmem:[#allocation2 + $0x178] sm:$0xff] }
0x10e0   :  { %4096 = vmatprep.mubr.msk.f32.mxu0 %vm4611_vm0, %v4612_v1  ;;  %4298 = vmatpush3.bf16.msra.mxu0 %v4297_v49 }
0x10e1   :  { %v2908_v6 = vpop.permute.xlu1 %2907  ;;  %4299 = vmatprep.subr.bf16.mxu0 %v4610_v0 }
0x10e2   :  { %v5500_v8 = vsel %vm419_vm5, %v2654_v39, %v2908_v6  ;;  %v4306_v6 = vpack.c.bf16 %v1729_v5, %v1728_v2 }
0x10e3   :  { %v2922_v52 = vrot.slane %v5500_v8, 7 }
0x10e4   :  { %4301 = vmatpush3.bf16.msra.mxu0 %v4300_v51 }
0x10e5   :  { %v2424_v11 = vpop.permute.xlu1 %2423  ;;  %4302 = vmatprep.subr.bf16.mxu0 %v4610_v0 }
0x10e6   :  { %v2430_v12 = vsel %vm419_vm5, %v5462_v26, %v2424_v11  ;;  %v1730_v11 = vld [vmem:[#allocation2 + $0x180] sm:$0xff] }
0x10e7   :  { %v2930_v14 = vsel %vm39_vm2, %v2430_v12, %v2922_v52  ;;  %v1731_v12 = vld [vmem:[#allocation2 + $0x188] sm:$0xff] }
0x10e8   :  { %v5509_v3 = vadd.f32 %v2930_v14, %v5164_v31  ;;  %4304 = vmatpush3.bf16.msra.mxu0 %v4303_v62 }
0x10e9   :  { %4305 = vmatprep.subr.bf16.mxu0 %v4610_v0 }
0x10ea   :  { %v2942_v15 = vsel %vm205_vm3, %v5509_v3, 0.0  ;;  %v2958_v17 = vmul.f32 %v5509_v3, %v5509_v3 }
0x10eb   :  { %2943 = vadd.xlane.f32.xlu0 %v2942_v15  ;;  %v4309_v15 = vpack.c.bf16 %v1731_v12, %v1730_v11 }
0x10ec   :  { %v2967_v19 = vsel %vm205_vm3, %v2958_v17, 0.0  ;;  %4307 = vmatpush3.bf16.msra.mxu0 %v4306_v6 }
0x10ed   :  { %2968 = vadd.xlane.f32.xlu1 %v2967_v19  ;;  %4308 = vmatprep.subr.bf16.mxu0 %v4610_v0 }
0x10f0   :  { %4310 = vmatpush3.bf16.msra.mxu0 %v4309_v15 }
0x10f1   :  { %4311 = vmatprep.subr.bf16.mxu0 %v4610_v0 }
0x1124   :  { %v2798_v22 = vpop.xlane.xlu1 %2797 }
0x1125   :  { %4545 = vrcp.f32 %v2798_v22  ;;  %v1732_v22 = vld [vmem:[#allocation2 + $0x190] sm:$0xff] }
0x1129   :  { %v2938_v38 = vpop.xlane.xlu0 %2937 }
0x112a   :  { %v2951_v26 = vmul.f32 0.03125, %v2938_v38  ;;  %v1733_v38 = vld [vmem:[#allocation2 + $0x198] sm:$0xff] }
0x112c   :  { %v2981_v27 = vmul.f32 %v2951_v26, %v2951_v26 }
0x112d   :  { %v2963_v9 = vpop.xlane.xlu0 %2962 }
0x112e   :  { %v2976_v18 = vmul.f32 0.03125, %v2963_v9  ;;  %v4312_v9 = vpack.c.bf16 %v1733_v38, %v1732_v22 }
0x112f   :  { %v4546_v29 = vpop.eup %4545  ;;  %v2966_v30 = vpop.xlane.xlu1 %2965 }
0x1130   :  { %v2986_v31 = vsub.f32 %v2976_v18, %v2981_v27  ;;  %v2804_v32 = vmul.f32 %v4546_v29, %v4542_v44  ;;  %v2977_v39 = vmul.f32 0.03125, %v2966_v30  ;;  %v3001_v44 = vsub.f32 %v5478_v43, %v2951_v26  ;;  %v1734_v18 = vld [vmem:[#allocation2 + $0x1a0] sm:$0xff]  ;;  %v1735_v29 = vld [vmem:[#allocation2 + $0x1a8] sm:$0xff]  ;;  %4313 = vmatpush3.bf16.msra.mxu0 %v4312_v9  ;;  %v1737_v30 = vld [vmem:[#allocation2 + $0x1b8] sm:$0xff] }
0x1131   :  { %v2941_v20 = vpop.xlane.xlu0 %2940  ;;  %4314 = vmatprep.subr.bf16.mxu0 %v4610_v0 }
0x1132   :  { %v2991_v33 = vadd.f32 1e-05, %v2986_v31  ;;  %v2952_v4 = vmul.f32 0.03125, %v2941_v20  ;;  %4097 = vmatmul.mubr.msk.f32.gmra.mrb[60].mxu0 %vm512_vm7, %v2804_v32  ;;  %v4315_v31 = vpack.c.bf16 %v1735_v29, %v1734_v18  ;;  %v1736_v32 = vld [vmem:[#allocation2 + $0x1b0] sm:$0xff] }
0x1133   :  { %4154 = vmatprep.mubr.msk.f32.mxu0 %vm4611_vm0, %v4612_v1  ;;  %v4318_v20 = vpack.c.bf16 %v1737_v30, %v1736_v32 }
0x1134   :  { %4547 = vrsqrt.f32 %v2991_v33  ;;  %v2982_v13 = vmul.f32 %v2952_v4, %v2952_v4  ;;  %v3002_v45 = vsub.f32 %v5486_v46, %v2952_v4  ;;  %4316 = vmatpush3.bf16.msra.mxu0 %v4315_v31 }
0x1135   :  { %4317 = vmatprep.subr.bf16.mxu0 %v4610_v0 }
0x1136   :  { %v2987_v23 = vsub.f32 %v2977_v39, %v2982_v13 }
0x1138   :  { %v2992_v24 = vadd.f32 1e-05, %v2987_v23  ;;  %4319 = vmatpush3.bf16.msra.mxu0 %v4318_v20 }
0x113a   :  { %4549 = vrsqrt.f32 %v2992_v24 }
0x113e   :  { %v4548_v56 = vpop.eup %4547 }
0x113f   :  { %v3010_v41 = vmul.f32 %v4548_v56, %v5524_v36 }
0x1141   :  { %v3015_v42 = vmul.f32 %v3010_v41, %v3001_v44 }
0x1143   :  { %v3024_v35 = vadd.f32 %v5531_v7, %v3015_v42 }
0x1144   :  { %v4550_v21 = vpop.eup %4549 }
0x1145   :  { %v3011_v25 = vmul.f32 %v4550_v21, %v5524_v36  ;;  %4108 = vmatmul.mubr.msk.f32.vlgmr.msra.gmra.mrb[84].mxu1 %vm205_vm3, %v3024_v35 }
0x1146   :  { %4110 = vmatprep.mubr.msk.f32.mxu1 %vm4611_vm0, %v4612_v1 }
0x1147   :  { %v3016_v47 = vmul.f32 %v3011_v25, %v3002_v45 }
0x1149   :  { %v3025_v48 = vadd.f32 %v5531_v7, %v3016_v47 }
0x114b   :  { %4111 = vmatmul.mubr.msk.f32.gmra.mrb[86].mxu1 %vm205_vm3, %v3025_v48 }
0x114c   :  { %4113 = vmatprep.mubr.msk.f32.mxu1 %vm4611_vm0, %v4612_v1 }
0x1178   :  { %v2944_v10 = vpop.xlane.xlu0 %2943 }
0x1179   :  { %v2953_v50 = vmul.f32 0.03125, %v2944_v10 }
0x117a   :  { %v2969_v53 = vpop.xlane.xlu1 %2968 }
0x117b   :  { %v2983_v55 = vmul.f32 %v2953_v50, %v2953_v50  ;;  %v2978_v46 = vmul.f32 0.03125, %v2969_v53  ;;  %v3003_v17 = vsub.f32 %v5509_v3, %v2953_v50 }
0x117d   :  { %v2988_v57 = vsub.f32 %v2978_v46, %v2983_v55 }
0x117f   :  { %v2993_v16 = vadd.f32 1e-05, %v2988_v57 }
0x1181   :  { %4551 = vrsqrt.f32 %v2993_v16 }
0x118b   :  { %v4552_v14 = vpop.eup %4551 }
0x118c   :  { %v3012_v19 = vmul.f32 %v4552_v14, %v5524_v36 }
0x118e   :  { %v3017_v26 = vmul.f32 %v3012_v19, %v3003_v17 }
0x1190   :  { %v3026_v27 = vadd.f32 %v5531_v7, %v3017_v26 }
0x1192   :  { %4114 = vmatmul.mubr.msk.f32.gmra.mrb[88].mxu1 %vm205_vm3, %v3026_v27 }
0x1193   :  { %4116 = vmatprep.mubr.msk.f32.mxu1 %vm4611_vm0, %v4612_v1 }
0x11b2   :  { %v2895_v33 = vpop.f32.mrb[58].mxu0 }
0x11b3   :  { %2909 = vrot.lane.b32.xlu0 %v2895_v33, %s4618_s1  ;;  %v4095_v4 = vpop.f32.mrb[59].mxu0 }
0x1205   :  { %v2900_v34 = vpop.f32.mrb[60].mxu0 }
0x1206   :  { %2911 = vrot.lane.b32.xlu1 %v2900_v34, %s4618_s1  ;;  %v4098_v37 = vpop.f32.mrb[61].mxu0 }
0x1218   :  { %v3114_v39 = vpop.f32.mrb[84].mxu1 }
0x1219   :  { %v3115_v13 = vadd.f32 %v5559_v59, %v3114_v39  ;;  %v4109_v49 = vpop.f32.mrb[85].mxu1  ;;  %v3513_v39 = vld [vmem:[%s5633_s2 + $0x1e] ss:$0 sm:$0xff] }
0x121b   :  { %v3138_v40 = vmax.f32 %v3115_v13, 0.0 }
0x121d   :  { %4155 = vmatmul.mubr.f32.vlgmr.msra.gmra.mrb[62].mxu0 %v3138_v40 }
0x121e   :  { %v3119_v23 = vpop.f32.mrb[86].mxu1  ;;  %4157 = vmatprep.mubr.msk.f32.mxu0 %vm4611_vm0, %v4612_v1 }
0x121f   :  { %v3120_v51 = vadd.f32 %v5559_v59, %v3119_v23  ;;  %v4112_v24 = vpop.f32.mrb[87].mxu1 }
0x1221   :  { %v3139_v56 = vmax.f32 %v3120_v51, 0.0 }
0x1223   :  { %4158 = vmatmul.mubr.f32.gmra.mrb[64].mxu0 %v3139_v56 }
0x1224   :  { %4160 = vmatprep.mubr.msk.f32.mxu0 %vm4611_vm0, %v4612_v1 }
0x1225   :  { %v2910_v44 = vpop.permute.xlu0 %2909 }
0x1226   :  { %v2917_v41 = vsel %vm419_vm5, %v5468_v63, %v2910_v44  ;;  %v3267_v44 = vld [vmem:[#allocation2 + $0x1c8] sm:$0xff] }
0x1227   :  { %v2923_v42 = vrot.slane %v2917_v41, 7 }
0x1229   :  { %v2924_v35 = vsel %vm39_vm2, %v2922_v52, %v2923_v42 }
0x122a   :  { %v2934_v21 = vadd.f32 %v2924_v35, %v5172_v28 }
0x122c   :  { %v2945_v45 = vsel %vm205_vm3, %v2934_v21, 0.0  ;;  %v2959_v25 = vmul.f32 %v2934_v21, %v2934_v21 }
0x122d   :  { %2946 = vadd.xlane.f32.xlu1 %v2945_v45 }
0x122e   :  { %v2970_v47 = vsel %vm205_vm3, %v2959_v25, 0.0 }
0x122f   :  { %2971 = vadd.xlane.f32.xlu0 %v2970_v47 }
0x1265   :  { %v3124_v48 = vpop.f32.mrb[88].mxu1 }
0x1266   :  { %v3125_v10 = vadd.f32 %v5559_v59, %v3124_v48  ;;  %v4115_v50 = vpop.f32.mrb[89].mxu1 }
0x1268   :  { %v3140_v53 = vmax.f32 %v3125_v10, 0.0 }
0x126a   :  { %4161 = vmatmul.mubr.f32.gmra.mrb[66].mxu0 %v3140_v53 }
0x126b   :  { %4163 = vmatprep.mubr.msk.f32.mxu0 %vm4611_vm0, %v4612_v1 }
0x1278   :  { %v2912_v63 = vpop.permute.xlu1 %2911 }
0x1279   :  { %v2918_v28 = vsel %vm419_vm5, %v5470_v61, %v2912_v63 }
0x127a   :  { %v2925_v8 = vrot.slane %v2918_v28, 7 }
0x127c   :  { %v2926_v52 = vsel %vm39_vm2, %v2923_v42, %v2925_v8  ;;  %v3268_v42 = vld [vmem:[#allocation2 + $0x1d0] sm:$0xff]  ;;  %v3514_v8 = vld [vmem:[%s5633_s2 + $0x1f] ss:$0 sm:$0xff] }
0x127d   :  { %v2935_v55 = vadd.f32 %v2926_v52, %v5179_v54 }
0x127f   :  { %v2948_v46 = vsel %vm218_vm4, %v2935_v55, 0.0  ;;  %v2960_v57 = vmul.f32 %v2935_v55, %v2935_v55 }
0x1280   :  { %2949 = vadd.xlane.f32.xlu0 %v2948_v46 }
0x1281   :  { %v2973_v16 = vsel %vm218_vm4, %v2960_v57, 0.0  ;;  %v3515_v57 = vld [vmem:[%s5633_s2 + $0x20] ss:$0 sm:$0xff] }
0x1282   :  { %2974 = vadd.xlane.f32.xlu1 %v2973_v16 }
0x12ba   :  { %v2947_v58 = vpop.xlane.xlu1 %2946 }
0x12bb   :  { %v2954_v60 = vmul.f32 0.03125, %v2947_v58 }
0x12bc   :  { %v2972_v62 = vpop.xlane.xlu0 %2971 }
0x12bd   :  { %v2984_v2 = vmul.f32 %v2954_v60, %v2954_v60  ;;  %v2979_v5 = vmul.f32 0.03125, %v2972_v62  ;;  %v3004_v12 = vsub.f32 %v2934_v21, %v2954_v60 }
0x12bf   :  { %v2989_v6 = vsub.f32 %v2979_v5, %v2984_v2 }
0x12c1   :  { %v2994_v11 = vadd.f32 1e-05, %v2989_v6 }
0x12c3   :  { %4553 = vrsqrt.f32 %v2994_v11  ;;  %v4619_v11 = vmov 1966171168  }
0x12cd   :  { %v4554_v61 = vpop.eup %4553 }
0x12ce   :  { %v3013_v14 = vmul.f32 %v4554_v61, %v5524_v36  ;;  %v3350_v61 = vunpack.c.l.s4 %v4619_v11 }
0x12d0   :  { %v3018_v54 = vmul.f32 %v3013_v14, %v3004_v12  ;;  %v3352_v12 = vlaneseq  ;;  %v3351_v14 = vunpack.c.0.s8 %v3350_v61 }
0x12d2   :  { %v3027_v15 = vadd.f32 %v5531_v7, %v3018_v54  ;;  %v3353_v54 = vshrl.u32 %v3352_v12, 7 }
0x12d4   :  { %4117 = vmatmul.mubr.msk.f32.gmra.mrb[90].mxu1 %vm205_vm3, %v3027_v15  ;;  %v3516_v15 = vld [vmem:[%s5633_s2 + $0x21] ss:$0 sm:$0xff] }
0x12d5   :  { %4119 = vmatprep.mubr.msk.f32.mxu1 %vm4611_vm0, %v4612_v1 }
0x12f0   :  { %v3209_v17 = vpop.f32.mrb[62].mxu0 }
0x12f1   :  { %v4156_v19 = vpop.f32.mrb[63].mxu0  ;;  %v3230_v37 = vadd.f32 %v3209_v17, %v5478_v43  ;;  %v3266_v43 = vld [vmem:[#allocation2 + $0x1c0] sm:$0xff]  ;;  %v3354_v17 = vsub.s32 %v3351_v14, %v3353_v54 }
0x12f2   :  { %v4321_v41 = vpack.c.bf16 %v3267_v44, %v3266_v43 }
0x12f3   :  { %v3236_v23 = vadd.f32 %v3513_v39, %v3230_v37 }
0x12f4   :  { %4322 = vmatpush3.bf16.msra.mxu1 %v4321_v41 }
0x12f5   :  { %4323 = vmatprep.subr.bf16.mxu1 %v4610_v0 }
0x12f6   :  { %v3214_v22 = vpop.f32.mrb[64].mxu0 }
0x12f7   :  { %v4159_v38 = vpop.f32.mrb[65].mxu0 }
0x130d   :  { %v2950_v26 = vpop.xlane.xlu0 %2949 }
0x130e   :  { %v2955_v9 = vmul.f32 0.03125, %v2950_v26 }
0x130f   :  { %v2975_v27 = vpop.xlane.xlu1 %2974 }
0x1310   :  { %v2985_v18 = vmul.f32 %v2955_v9, %v2955_v9  ;;  %v2980_v29 = vmul.f32 0.03125, %v2975_v27  ;;  %v3005_v20 = vsub.f32 %v2935_v55, %v2955_v9 }
0x1312   :  { %v2990_v31 = vsub.f32 %v2980_v29, %v2985_v18 }
0x1314   :  { %v2995_v32 = vadd.f32 1e-05, %v2990_v31 }
0x1316   :  { %4555 = vrsqrt.f32 %v2995_v32 }
0x1320   :  { %v4556_v30 = vpop.eup %4555 }
0x1321   :  { %v3014_v33 = vmul.f32 %v4556_v30, %v5524_v36 }
0x1323   :  { %v3019_v4 = vmul.f32 %v3014_v33, %v3005_v20 }
0x1325   :  { %v3028_v34 = vadd.f32 %v5531_v7, %v3019_v4 }
0x1327   :  { %4120 = vmatmul.mubr.msk.f32.gmra.mrb[92].mxu1 %vm205_vm3, %v3028_v34 }
0x1328   :  { %4177 = vmatprep.mubr.msk.f32.mxu1 %vm4611_vm0, %v4612_v1 }
0x133d   :  { %v3218_v13 = vpop.f32.mrb[66].mxu0 }
0x133e   :  { %v3231_v49 = vadd.f32 %v3218_v13, %v5509_v3  ;;  %v4162_v40 = vpop.f32.mrb[67].mxu0  ;;  %v3269_v3 = vld [vmem:[#allocation2 + $0x1d8] sm:$0xff] }
0x133f   :  { %v4324_v35 = vpack.c.bf16 %v3269_v3, %v3268_v42 }
0x1340   :  { %v3237_v36 = vadd.f32 %v3513_v39, %v3231_v49 }
0x1341   :  { %4325 = vmatpush3.bf16.msra.mxu1 %v4324_v35 }
0x1342   :  { %v3238_v51 = vsel %vm39_vm2, %v3236_v23, %v3237_v36 }
0x1343   :  { %v3241_v7 = vsel %vm218_vm4, %v3238_v51, 0.0  ;;  %v3245_v24 = vmul.f32 %v3238_v51, %v3238_v51 }
0x1344   :  { %3242 = vadd.xlane.f32.xlu0 %v3241_v7 }
0x1345   :  { %v3246_v56 = vsel %vm218_vm4, %v3245_v24, 0.0 }
0x1346   :  { %3247 = vadd.xlane.f32.xlu1 %v3246_v56 }
0x13a7   :  { %v3129_v21 = vpop.f32.mrb[90].mxu1 }
0x13a8   :  { %v3130_v45 = vadd.f32 %v5559_v59, %v3129_v21  ;;  %v4118_v25 = vpop.f32.mrb[91].mxu1 }
0x13aa   :  { %v3141_v47 = vmax.f32 %v3130_v45, 0.0 }
0x13ac   :  { %4164 = vmatmul.mubr.f32.gmra.mrb[68].mxu0 %v3141_v47 }
0x13ad   :  { %4166 = vmatprep.mubr.msk.f32.mxu0 %vm4611_vm0, %v4612_v1 }
0x13d1   :  { %v3243_v48 = vpop.xlane.xlu0 %3242 }
0x13d2   :  { %v3244_v10 = vmul.f32 0.03125, %v3243_v48 }
0x13d3   :  { %v3248_v50 = vpop.xlane.xlu1 %3247 }
0x13d4   :  { %v3250_v53 = vmul.f32 %v3244_v10, %v3244_v10  ;;  %v3249_v63 = vmul.f32 0.03125, %v3248_v50  ;;  %v3254_v55 = vsub.f32 %v3238_v51, %v3244_v10 }
0x13d6   :  { %v3251_v28 = vsub.f32 %v3249_v63, %v3250_v53 }
0x13d8   :  { %v3252_v0 = vadd.f32 1e-05, %v3251_v28 }
0x13da   :  { %4557 = vrsqrt.f32 %v3252_v0 }
0x13e4   :  { %v4558_v52 = vpop.eup %4557 }
0x13e5   :  { %v3259_v46 = vmul.f32 %v4558_v52, %v3514_v8 }
0x13e7   :  { %v3260_v1 = vmul.f32 %v3259_v46, %v3254_v55 }
0x13e9   :  { %v3265_v16 = vadd.f32 %v3515_v57, %v3260_v1 }
0x13eb   :  { %4178 = vmatmul.mubr.msk.f32.vlgmr.msra.gmra.mrb[94].mxu1 %vm205_vm3, %v3265_v16 }
0x13fa   :  { %v3134_v58 = vpop.f32.mrb[92].mxu1 }
0x13fb   :  { %v3135_v60 = vadd.f32 %v5559_v59, %v3134_v58  ;;  %v4121_v62 = vpop.f32.mrb[93].mxu1 }
0x13fd   :  { %v3142_v2 = vmax.f32 %v3135_v60, 0.0 }
0x13ff   :  { %4167 = vmatmul.mubr.f32.gmra.mrb[70].mxu0 %v3142_v2 }
0x147f   :  { %v3223_v5 = vpop.f32.mrb[68].mxu0 }
0x1480   :  { %v4165_v6 = vpop.f32.mrb[69].mxu0 }
0x14be   :  { %v3344_v19 = vpop.f32.mrb[94].mxu1 }
0x14bf   :  { %v3345_v22 = vadd.f32 %v3516_v15, %v3344_v19  ;;  %v4179_v38 = vpop.f32.mrb[95].mxu1 }
0x14c1   :  { %v3355_v59 = vrot.slane %v3345_v22, %v3354_v17 }
0x14c3   :  { %v3356_v26 = vcombine.high %v3355_v59, %v3355_v59  ;;  %3518 = vst.sshfl [vmem:[#allocation5] sm:$0x1 pattern:$0x73625140] %v3355_v59 }
0x14c5   :  { %3519 = vst.sshfl [vmem:[#allocation5 + $0x1] sm:$0x1 pattern:$0x73625140] %v3356_v26 }
0x14c6   :  { %4592 = shalt.err (!%p4589_p12)
}
0x14c7   :  { %s4593_s30 = scalar_lea.hbm %s5634_s3, 32 }
0x14c8   :  { %p4594_p13 = scmp.ne.s32.totalorder %s5634_s3, %s4593_s30  ;;  %p4597_p0 = scmp.lt.u32.totalorder %s4593_s30, %s5634_s3 }
0x14ca   :  { %p4599_p1 = pnand %p4597_p0, %p4594_p13 }
0x14cc   :  { %4602 = shalt.err (!%p4599_p1)
}
0x14cd   :  { %s4621_s8 = smov 1  }
0x14ce   :  { %3386 = dma.vmem_to_hbm [thread:$0]  %s3381_s27, 32, %s5634_s3, [#allocation4], %s4618_s1, %s4618_s1, %s4621_s8  }
0x14d2   :  { %v3227_v9 = vpop.f32.mrb[70].mxu0 }
0x14d3   :  { %v4168_v27 = vpop.f32.mrb[71].mxu0 }
0x14d4   :  { %4605 = dma.done.wait [#allocation4], 32  }
0x14d5   :  { %4606 = vsyncadd [#allocation4], 4294967264 }
0x14d6   :  { %3390 = vsyncpa [#allocation3], 1 }
0x14d7   :  { %3391 = vsyncpa [#allocation4], 1 }

</bundles_post_ra>
